<compile_context>
chip_gen: v7x
topology: tpu7x:2x2x1
jax: 0.10.0
libtpu: 0.0.40
codegen_flags: <defaults>
</compile_context>

<pallas_src>
import functools

import jax
import jax.numpy as jnp
import numpy as np
from jax import lax
from jax.experimental import pallas as pl
from jax.experimental.pallas import tpu as pltpu

EPS = 1e-5


def _bottleneck_kernel(x_ref, w1_ref, b1_ref, w2_ref, b2_ref, w3_ref, b3_ref,
                       o_ref, pad_ref, *, H, W):
    HW, Cin = x_ref.shape
    width = w1_ref.shape[1]

    # ---- conv1 (1x1, BN scale folded into weights) + bias + relu -----------
    x2d = x_ref[...]                                            # bf16 (H*W, Cin)
    h1 = jnp.dot(x2d, w1_ref[...], preferred_element_type=jnp.float32)
    h1 = jnp.maximum(h1 + b1_ref[...], 0.0)

    # ---- conv2 (3x3, pad=1, stride=1) ---------------------------------------
    # Padded activation scratch: interior at rows [1, H+1) and columns
    # [8, 8+W) so the big interior store is sublane-aligned; the 1-pixel halo
    # ring sits at row 0 / row H+1 / col 7 / col 8+W.  Halo is re-zeroed every
    # step (cheap, and megacore-safe since scratch persists per core).
    zrow = jnp.zeros((1, W + 2, width), jnp.bfloat16)
    pad_ref[0:1, 7:9 + W, :] = zrow
    pad_ref[H + 1:H + 2, 7:9 + W, :] = zrow
    zcol = jnp.zeros((H + 2, 1, width), jnp.bfloat16)
    pad_ref[:, 7:8, :] = zcol
    pad_ref[:, 8 + W:9 + W, :] = zcol
    pad_ref[1:H + 1, 8:8 + W, :] = h1.reshape(H, W, width).astype(jnp.bfloat16)

    # dy-stacked formulation: for each dx, concat the 3 dy-shifted windows
    # along channels -> (H*W, 3*width) and do one K = 3*width matmul, f32
    # accumulation.  No intermediate im2col buffer is written or re-read.
    h2 = None
    for dx in range(3):
        stacked = jnp.concatenate(
            [pad_ref[dy:dy + H, 7 + dx:7 + dx + W, :].reshape(HW, width)
             for dy in range(3)], axis=-1)                      # (H*W, 3*width)
        term = jnp.dot(stacked, w2_ref[dx],
                       preferred_element_type=jnp.float32)
        h2 = term if h2 is None else h2 + term
    h2 = jnp.maximum(h2 + b2_ref[...], 0.0)

    # ---- conv3 (1x1) + bias + residual add + relu ---------------------------
    h3 = jnp.dot(h2.astype(jnp.bfloat16), w3_ref[...],
                 preferred_element_type=jnp.float32)
    h3 = h3 + b3_ref[...]
    identity = x_ref[...].astype(jnp.float32)                   # Cin == Cout
    o_ref[...] = jnp.maximum(h3 + identity, 0.0).astype(o_ref.dtype)


def _fold_bn(gamma, beta, mean, var):
    scale = gamma / jnp.sqrt(var + EPS)          # (C,)
    bias = (beta - mean * scale)[None, :]        # (1, C) for lane broadcast
    return scale, bias


@jax.jit
def bottleneck_forward(x_nchw, params):
    """x_nchw: (N, Cin, H, W) float32, PyTorch layout. Returns (N, Cout, H, W) bf16."""
    # NOTE: in a full NHWC bf16 model these transposes/casts would be elided.
    x = jnp.transpose(x_nchw, (0, 2, 3, 1)).astype(jnp.bfloat16)   # NHWC, bf16
    N, H, W, Cin = x.shape
    x_flat = x.reshape(N, H * W, Cin)                               # free HBM reshape

    s1, b1 = _fold_bn(params["bn1_g"], params["bn1_b"], params["bn1_m"], params["bn1_v"])
    s2, b2 = _fold_bn(params["bn2_g"], params["bn2_b"], params["bn2_m"], params["bn2_v"])
    s3, b3 = _fold_bn(params["bn3_g"], params["bn3_b"], params["bn3_m"], params["bn3_v"])

    # torch conv weights (O, I, kh, kw) -> matmul shapes, BN scale folded in,
    # pre-cast to bf16 for the MXU.
    w1 = (jnp.transpose(params["conv1_w"][:, :, 0, 0], (1, 0)) * s1[None, :]
          ).astype(jnp.bfloat16)                                   # (Cin, width)
    width = w1.shape[1]
    # conv2 regrouped per dx, dy-major over K:  w2[dx, dy*I + i, o]
    w2 = params["conv2_w"] * s2[:, None, None, None]               # (O, I, 3, 3)
    w2 = jnp.transpose(w2, (3, 2, 1, 0)).reshape(3, 3 * width, width
                                                 ).astype(jnp.bfloat16)
    w3 = (jnp.transpose(params["conv3_w"][:, :, 0, 0], (1, 0)) * s3[None, :]
          ).astype(jnp.bfloat16)                                   # (width, Cout)
    Cout = w3.shape[1]
    assert Cout == Cin, "no-downsample bottleneck requires inplanes == planes*4"

    grid_spec = pltpu.PrefetchScalarGridSpec(
        num_scalar_prefetch=0,
        grid=(N,),                                     # one image per grid step
        in_specs=[
            pl.BlockSpec((None, H * W, Cin), lambda n: (n, 0, 0)),     # x (pipelined, bf16)
            pl.BlockSpec((Cin, width), lambda n: (0, 0)),              # w1 (resident)
            pl.BlockSpec((1, width), lambda n: (0, 0)),                # b1
            pl.BlockSpec((3, 3 * width, width), lambda n: (0, 0, 0)),  # w2 (per-dx groups)
            pl.BlockSpec((1, width), lambda n: (0, 0)),                # b2
            pl.BlockSpec((width, Cout), lambda n: (0, 0)),             # w3
            pl.BlockSpec((1, Cout), lambda n: (0, 0)),                 # b3
        ],
        out_specs=pl.BlockSpec((None, H * W, Cout), lambda n: (n, 0, 0)),
        scratch_shapes=[
            pltpu.VMEM((H + 2, W + 16, width), jnp.bfloat16),          # padded act
        ],
    )

    out = pl.pallas_call(
        functools.partial(_bottleneck_kernel, H=H, W=W),
        out_shape=jax.ShapeDtypeStruct((N, H * W, Cout), jnp.bfloat16),
        grid_spec=grid_spec,
        compiler_params=pltpu.CompilerParams(
            dimension_semantics=("parallel",),          # megacore sharding
            vmem_limit_bytes=48 * 1024 * 1024,
        ),
    )(x_flat, w1, b1, w2, b2, w3, b3)

    out = out.reshape(N, H, W, Cout)
    return jnp.transpose(out, (0, 3, 1, 2))             # NHWC -> NCHW (bf16)


# ----------------------------- pure-JAX reference ----------------------------
def _ref_forward(x_nchw, params):
    x = jnp.transpose(x_nchw, (0, 2, 3, 1)).astype(jnp.float32)

    def bn(h, g, b, m, v):
        return (h - m) / jnp.sqrt(v + EPS) * g + b

    def conv(h, w_oihw, pad):
        w_hwio = jnp.transpose(w_oihw, (2, 3, 1, 0))
        return lax.conv_general_dilated(
            h, w_hwio, window_strides=(1, 1), padding=pad,
            dimension_numbers=("NHWC", "HWIO", "NHWC"))

    h = conv(x, params["conv1_w"], "VALID")
    h = jax.nn.relu(bn(h, params["bn1_g"], params["bn1_b"], params["bn1_m"], params["bn1_v"]))
    h = conv(h, params["conv2_w"], "SAME")
    h = jax.nn.relu(bn(h, params["bn2_g"], params["bn2_b"], params["bn2_m"], params["bn2_v"]))
    h = conv(h, params["conv3_w"], "VALID")
    h = bn(h, params["bn3_g"], params["bn3_b"], params["bn3_m"], params["bn3_v"])
    out = jax.nn.relu(h + x)
    return jnp.transpose(out, (0, 3, 1, 2))


def _init_params(key, inplanes, planes, expansion=4, base_width=64, groups=1):
    width = int(planes * (base_width / 64.0)) * groups
    cout = planes * expansion
    ks = jax.random.split(key, 12)
    u = lambda k, s, lo, hi: jax.random.uniform(k, s, jnp.float32, lo, hi)
    return {
        "conv1_w": 0.2 * jax.random.normal(ks[0], (width, inplanes, 1, 1), jnp.float32),
        "conv2_w": 0.2 * jax.random.normal(ks[1], (width, width, 3, 3), jnp.float32),
        "conv3_w": 0.2 * jax.random.normal(ks[2], (cout, width, 1, 1), jnp.float32),
        "bn1_g": u(ks[3], (width,), 0.8, 1.2), "bn1_b": 0.1 * jax.random.normal(ks[4], (width,)),
        "bn1_m": 0.1 * jax.random.normal(ks[5], (width,)), "bn1_v": u(ks[5], (width,), 0.5, 1.5),
        "bn2_g": u(ks[6], (width,), 0.8, 1.2), "bn2_b": 0.1 * jax.random.normal(ks[7], (width,)),
        "bn2_m": 0.1 * jax.random.normal(ks[8], (width,)), "bn2_v": u(ks[8], (width,), 0.5, 1.5),
        "bn3_g": u(ks[9], (cout,), 0.8, 1.2), "bn3_b": 0.1 * jax.random.normal(ks[10], (cout,)),
        "bn3_m": 0.1 * jax.random.normal(ks[11], (cout,)), "bn3_v": u(ks[11], (cout,), 0.5, 1.5),
    }


if __name__ == "__main__":
    key = jax.random.PRNGKey(0)
    k_x, k_p = jax.random.split(key)

    N, inplanes, planes, H, W = 2, 16, 4, 16, 16   # Cout = planes*4 = inplanes
    x = jax.random.normal(k_x, (N, inplanes, H, W), jnp.float32)
    params = _init_params(k_p, inplanes, planes)

    out = jax.block_until_ready(bottleneck_forward(x, params))
    ref = jax.block_until_ready(_ref_forward(x, params))

    # bf16 weights/activations/outputs (f32 accumulation) vs f32 reference.
    np.testing.assert_allclose(np.asarray(out.astype(jnp.float32)),
                               np.asarray(ref), rtol=5e-2, atol=5e-2)

    print("KERNEL_OK")
</pallas_src>

<mosaic_0001>
module attributes {stable_mosaic.version = 11 : i64} {
  func.func @_bottleneck_kernel(%arg0: i32, %arg1: memref<1x256x16xbf16, #tpu.memory_space<vmem>>, %arg2: memref<16x4xbf16, #tpu.memory_space<vmem>>, %arg3: memref<1x4xf32, #tpu.memory_space<vmem>>, %arg4: memref<3x12x4xbf16, #tpu.memory_space<vmem>>, %arg5: memref<1x4xf32, #tpu.memory_space<vmem>>, %arg6: memref<4x16xbf16, #tpu.memory_space<vmem>>, %arg7: memref<1x16xf32, #tpu.memory_space<vmem>>, %arg8: memref<1x256x16xbf16, #tpu.memory_space<vmem>>, %arg9: memref<18x32x4xbf16, #tpu.memory_space<vmem>>) attributes {dimension_semantics = [#tpu.dimension_semantics<parallel>], iteration_bounds = array<i64: 2>, scalar_prefetch = 0 : i64, scratch_operands = 1 : i64, tpu.core_type = #tpu.core_type<tc>, window_params = [{transform_indices = @transform_0, window_bounds = array<i64: 1, 256, 16>}, {pipeline_mode = #tpu.pipeline_mode<synchronous>, transform_indices = @transform_1, window_bounds = array<i64: 16, 4>}, {pipeline_mode = #tpu.pipeline_mode<synchronous>, transform_indices = @transform_2, window_bounds = array<i64: 1, 4>}, {pipeline_mode = #tpu.pipeline_mode<synchronous>, transform_indices = @transform_3, window_bounds = array<i64: 3, 12, 4>}, {pipeline_mode = #tpu.pipeline_mode<synchronous>, transform_indices = @transform_4, window_bounds = array<i64: 1, 4>}, {pipeline_mode = #tpu.pipeline_mode<synchronous>, transform_indices = @transform_5, window_bounds = array<i64: 4, 16>}, {pipeline_mode = #tpu.pipeline_mode<synchronous>, transform_indices = @transform_6, window_bounds = array<i64: 1, 16>}, {transform_indices = @transform_7, window_bounds = array<i64: 1, 256, 16>}]} {
    %c0 = arith.constant 0 : index
    %c0_0 = arith.constant 0 : index
    %c0_1 = arith.constant 0 : index
    %0 = vector.load %arg1[%c0, %c0_0, %c0_1] : memref<1x256x16xbf16, #tpu.memory_space<vmem>>, vector<1x256x16xbf16>
    %1 = vector.shape_cast %0 : vector<1x256x16xbf16> to vector<256x16xbf16>
    %c0_2 = arith.constant 0 : index
    %c0_3 = arith.constant 0 : index
    %2 = vector.load %arg2[%c0_2, %c0_3] : memref<16x4xbf16, #tpu.memory_space<vmem>>, vector<16x4xbf16>
    %cst = arith.constant dense<0.000000e+00> : vector<256x4xf32>
    %3 = tpu.matmul %1, %2, %cst {dimension_numbers = #tpu.dot_dimension_numbers<[1], [0], [0], [1], [0, 0, 1, 1], [], []>} : vector<256x16xbf16>, vector<16x4xbf16>, vector<256x4xf32> -> vector<256x4xf32>
    %c0_4 = arith.constant 0 : index
    %c0_5 = arith.constant 0 : index
    %4 = vector.load %arg3[%c0_4, %c0_5] : memref<1x4xf32, #tpu.memory_space<vmem>>, vector<1x4xf32>
    %5 = vector.broadcast %4 : vector<1x4xf32> to vector<256x4xf32>
    %6 = arith.addf %3, %5 : vector<256x4xf32>
    %cst_6 = arith.constant 0.000000e+00 : f32
    %7 = vector.broadcast %cst_6 : f32 to vector<256x4xf32>
    %8 = arith.maximumf %6, %7 : vector<256x4xf32>
    %cst_7 = arith.constant 0.000000e+00 : bf16
    %9 = vector.broadcast %cst_7 : bf16 to vector<1x18x4xbf16>
    %c0_8 = arith.constant 0 : index
    %c7 = arith.constant 7 : index
    %c0_9 = arith.constant 0 : index
    %10 = vector.load %arg9[%c0_8, %c7, %c0_9] : memref<18x32x4xbf16, #tpu.memory_space<vmem>>, vector<1x18x4xbf16>
    tpu.vector_store %arg9[%c0_8, %c7, %c0_9], %9 {strides = array<i32>} : memref<18x32x4xbf16, #tpu.memory_space<vmem>>, vector<1x18x4xbf16>,
    %c17 = arith.constant 17 : index
    %c7_10 = arith.constant 7 : index
    %c0_11 = arith.constant 0 : index
    %11 = vector.load %arg9[%c17, %c7_10, %c0_11] : memref<18x32x4xbf16, #tpu.memory_space<vmem>>, vector<1x18x4xbf16>
    tpu.vector_store %arg9[%c17, %c7_10, %c0_11], %9 {strides = array<i32>} : memref<18x32x4xbf16, #tpu.memory_space<vmem>>, vector<1x18x4xbf16>,
    %cst_12 = arith.constant 0.000000e+00 : bf16
    %12 = vector.broadcast %cst_12 : bf16 to vector<18x1x4xbf16>
    %c0_13 = arith.constant 0 : index
    %c7_14 = arith.constant 7 : index
    %c0_15 = arith.constant 0 : index
    %13 = vector.load %arg9[%c0_13, %c7_14, %c0_15] : memref<18x32x4xbf16, #tpu.memory_space<vmem>>, vector<18x1x4xbf16>
    tpu.vector_store %arg9[%c0_13, %c7_14, %c0_15], %12 {strides = array<i32>} : memref<18x32x4xbf16, #tpu.memory_space<vmem>>, vector<18x1x4xbf16>,
    %c0_16 = arith.constant 0 : index
    %c24 = arith.constant 24 : index
    %c0_17 = arith.constant 0 : index
    %14 = vector.load %arg9[%c0_16, %c24, %c0_17] : memref<18x32x4xbf16, #tpu.memory_space<vmem>>, vector<18x1x4xbf16>
    tpu.vector_store %arg9[%c0_16, %c24, %c0_17], %12 {strides = array<i32>} : memref<18x32x4xbf16, #tpu.memory_space<vmem>>, vector<18x1x4xbf16>,
    %15 = vector.shape_cast %8 : vector<256x4xf32> to vector<16x16x4xf32>
    %16 = arith.truncf %15 : vector<16x16x4xf32> to vector<16x16x4xbf16>
    %c1 = arith.constant 1 : index
    %c8 = arith.constant 8 : index
    %c0_18 = arith.constant 0 : index
    %17 = vector.load %arg9[%c1, %c8, %c0_18] : memref<18x32x4xbf16, #tpu.memory_space<vmem>>, vector<16x16x4xbf16>
    tpu.vector_store %arg9[%c1, %c8, %c0_18], %16 {strides = array<i32>} : memref<18x32x4xbf16, #tpu.memory_space<vmem>>, vector<16x16x4xbf16>,
    %c0_19 = arith.constant 0 : index
    %c7_20 = arith.constant 7 : index
    %c0_21 = arith.constant 0 : index
    %18 = vector.load %arg9[%c0_19, %c7_20, %c0_21] : memref<18x32x4xbf16, #tpu.memory_space<vmem>>, vector<16x16x4xbf16>
    %19 = vector.shape_cast %18 : vector<16x16x4xbf16> to vector<256x4xbf16>
    %c1_22 = arith.constant 1 : index
    %c7_23 = arith.constant 7 : index
    %c0_24 = arith.constant 0 : index
    %20 = vector.load %arg9[%c1_22, %c7_23, %c0_24] : memref<18x32x4xbf16, #tpu.memory_space<vmem>>, vector<16x16x4xbf16>
    %21 = vector.shape_cast %20 : vector<16x16x4xbf16> to vector<256x4xbf16>
    %c2 = arith.constant 2 : index
    %c7_25 = arith.constant 7 : index
    %c0_26 = arith.constant 0 : index
    %22 = vector.load %arg9[%c2, %c7_25, %c0_26] : memref<18x32x4xbf16, #tpu.memory_space<vmem>>, vector<16x16x4xbf16>
    %23 = vector.shape_cast %22 : vector<16x16x4xbf16> to vector<256x4xbf16>
    %24 = tpu.concatenate %19, %21, %23 in 1 : vector<256x4xbf16>, vector<256x4xbf16>, vector<256x4xbf16> -> vector<256x12xbf16>
    %c0_27 = arith.constant 0 : index
    %c0_28 = arith.constant 0 : index
    %c0_29 = arith.constant 0 : index
    %25 = vector.load %arg4[%c0_27, %c0_28, %c0_29] : memref<3x12x4xbf16, #tpu.memory_space<vmem>>, vector<1x12x4xbf16>
    %26 = vector.shape_cast %25 : vector<1x12x4xbf16> to vector<12x4xbf16>
    %cst_30 = arith.constant dense<0.000000e+00> : vector<256x4xf32>
    %27 = tpu.matmul %24, %26, %cst_30 {dimension_numbers = #tpu.dot_dimension_numbers<[1], [0], [0], [1], [0, 0, 1, 1], [], []>} : vector<256x12xbf16>, vector<12x4xbf16>, vector<256x4xf32> -> vector<256x4xf32>
    %c0_31 = arith.constant 0 : index
    %c8_32 = arith.constant 8 : index
    %c0_33 = arith.constant 0 : index
    %28 = vector.load %arg9[%c0_31, %c8_32, %c0_33] : memref<18x32x4xbf16, #tpu.memory_space<vmem>>, vector<16x16x4xbf16>
    %29 = vector.shape_cast %28 : vector<16x16x4xbf16> to vector<256x4xbf16>
    %c1_34 = arith.constant 1 : index
    %c8_35 = arith.constant 8 : index
    %c0_36 = arith.constant 0 : index
    %30 = vector.load %arg9[%c1_34, %c8_35, %c0_36] : memref<18x32x4xbf16, #tpu.memory_space<vmem>>, vector<16x16x4xbf16>
    %31 = vector.shape_cast %30 : vector<16x16x4xbf16> to vector<256x4xbf16>
    %c2_37 = arith.constant 2 : index
    %c8_38 = arith.constant 8 : index
    %c0_39 = arith.constant 0 : index
    %32 = vector.load %arg9[%c2_37, %c8_38, %c0_39] : memref<18x32x4xbf16, #tpu.memory_space<vmem>>, vector<16x16x4xbf16>
    %33 = vector.shape_cast %32 : vector<16x16x4xbf16> to vector<256x4xbf16>
    %34 = tpu.concatenate %29, %31, %33 in 1 : vector<256x4xbf16>, vector<256x4xbf16>, vector<256x4xbf16> -> vector<256x12xbf16>
    %c1_40 = arith.constant 1 : index
    %c0_41 = arith.constant 0 : index
    %c0_42 = arith.constant 0 : index
    %35 = vector.load %arg4[%c1_40, %c0_41, %c0_42] : memref<3x12x4xbf16, #tpu.memory_space<vmem>>, vector<1x12x4xbf16>
    %36 = vector.shape_cast %35 : vector<1x12x4xbf16> to vector<12x4xbf16>
    %cst_43 = arith.constant dense<0.000000e+00> : vector<256x4xf32>
    %37 = tpu.matmul %34, %36, %cst_43 {dimension_numbers = #tpu.dot_dimension_numbers<[1], [0], [0], [1], [0, 0, 1, 1], [], []>} : vector<256x12xbf16>, vector<12x4xbf16>, vector<256x4xf32> -> vector<256x4xf32>
    %38 = arith.addf %27, %37 : vector<256x4xf32>
    %c0_44 = arith.constant 0 : index
    %c9 = arith.constant 9 : index
    %c0_45 = arith.constant 0 : index
    %39 = vector.load %arg9[%c0_44, %c9, %c0_45] : memref<18x32x4xbf16, #tpu.memory_space<vmem>>, vector<16x16x4xbf16>
    %40 = vector.shape_cast %39 : vector<16x16x4xbf16> to vector<256x4xbf16>
    %c1_46 = arith.constant 1 : index
    %c9_47 = arith.constant 9 : index
    %c0_48 = arith.constant 0 : index
    %41 = vector.load %arg9[%c1_46, %c9_47, %c0_48] : memref<18x32x4xbf16, #tpu.memory_space<vmem>>, vector<16x16x4xbf16>
    %42 = vector.shape_cast %41 : vector<16x16x4xbf16> to vector<256x4xbf16>
    %c2_49 = arith.constant 2 : index
    %c9_50 = arith.constant 9 : index
    %c0_51 = arith.constant 0 : index
    %43 = vector.load %arg9[%c2_49, %c9_50, %c0_51] : memref<18x32x4xbf16, #tpu.memory_space<vmem>>, vector<16x16x4xbf16>
    %44 = vector.shape_cast %43 : vector<16x16x4xbf16> to vector<256x4xbf16>
    %45 = tpu.concatenate %40, %42, %44 in 1 : vector<256x4xbf16>, vector<256x4xbf16>, vector<256x4xbf16> -> vector<256x12xbf16>
    %c2_52 = arith.constant 2 : index
    %c0_53 = arith.constant 0 : index
    %c0_54 = arith.constant 0 : index
    %46 = vector.load %arg4[%c2_52, %c0_53, %c0_54] : memref<3x12x4xbf16, #tpu.memory_space<vmem>>, vector<1x12x4xbf16>
    %47 = vector.shape_cast %46 : vector<1x12x4xbf16> to vector<12x4xbf16>
    %cst_55 = arith.constant dense<0.000000e+00> : vector<256x4xf32>
    %48 = tpu.matmul %45, %47, %cst_55 {dimension_numbers = #tpu.dot_dimension_numbers<[1], [0], [0], [1], [0, 0, 1, 1], [], []>} : vector<256x12xbf16>, vector<12x4xbf16>, vector<256x4xf32> -> vector<256x4xf32>
    %49 = arith.addf %38, %48 : vector<256x4xf32>
    %c0_56 = arith.constant 0 : index
    %c0_57 = arith.constant 0 : index
    %50 = vector.load %arg5[%c0_56, %c0_57] : memref<1x4xf32, #tpu.memory_space<vmem>>, vector<1x4xf32>
    %51 = vector.broadcast %50 : vector<1x4xf32> to vector<256x4xf32>
    %52 = arith.addf %49, %51 : vector<256x4xf32>
    %cst_58 = arith.constant 0.000000e+00 : f32
    %53 = vector.broadcast %cst_58 : f32 to vector<256x4xf32>
    %54 = arith.maximumf %52, %53 : vector<256x4xf32>
    %55 = arith.truncf %54 : vector<256x4xf32> to vector<256x4xbf16>
    %c0_59 = arith.constant 0 : index
    %c0_60 = arith.constant 0 : index
    %56 = vector.load %arg6[%c0_59, %c0_60] : memref<4x16xbf16, #tpu.memory_space<vmem>>, vector<4x16xbf16>
    %cst_61 = arith.constant dense<0.000000e+00> : vector<256x16xf32>
    %57 = tpu.matmul %55, %56, %cst_61 {dimension_numbers = #tpu.dot_dimension_numbers<[1], [0], [0], [1], [0, 0, 1, 1], [], []>} : vector<256x4xbf16>, vector<4x16xbf16>, vector<256x16xf32> -> vector<256x16xf32>
    %c0_62 = arith.constant 0 : index
    %c0_63 = arith.constant 0 : index
    %58 = vector.load %arg7[%c0_62, %c0_63] : memref<1x16xf32, #tpu.memory_space<vmem>>, vector<1x16xf32>
    %59 = vector.broadcast %58 : vector<1x16xf32> to vector<256x16xf32>
    %60 = arith.addf %57, %59 : vector<256x16xf32>
    %c0_64 = arith.constant 0 : index
    %c0_65 = arith.constant 0 : index
    %c0_66 = arith.constant 0 : index
    %61 = vector.load %arg1[%c0_64, %c0_65, %c0_66] : memref<1x256x16xbf16, #tpu.memory_space<vmem>>, vector<1x256x16xbf16>
    %62 = vector.shape_cast %61 : vector<1x256x16xbf16> to vector<256x16xbf16>
    %63 = arith.extf %62 : vector<256x16xbf16> to vector<256x16xf32>
    %64 = arith.addf %60, %63 : vector<256x16xf32>
    %cst_67 = arith.constant 0.000000e+00 : f32
    %65 = vector.broadcast %cst_67 : f32 to vector<256x16xf32>
    %66 = arith.maximumf %64, %65 : vector<256x16xf32>
    %67 = arith.truncf %66 : vector<256x16xf32> to vector<256x16xbf16>
    %c0_68 = arith.constant 0 : index
    %c0_69 = arith.constant 0 : index
    %c0_70 = arith.constant 0 : index
    %68 = vector.load %arg8[%c0_68, %c0_69, %c0_70] : memref<1x256x16xbf16, #tpu.memory_space<vmem>>, vector<1x256x16xbf16>
    %69 = vector.shape_cast %68 : vector<1x256x16xbf16> to vector<256x16xbf16>
    %70 = vector.shape_cast %67 : vector<256x16xbf16> to vector<1x256x16xbf16>
    tpu.vector_store %arg8[%c0_68, %c0_69, %c0_70], %70 {strides = array<i32>} : memref<1x256x16xbf16, #tpu.memory_space<vmem>>, vector<1x256x16xbf16>,
    return
  }
  func.func @transform_0(%arg0: i32) -> (i32, i32, i32) {
    %c0_i32 = arith.constant 0 : i32
    %c0_i32_0 = arith.constant 0 : i32
    %c0_i32_1 = arith.constant 0 : i32
    return %arg0, %c0_i32, %c0_i32_0 : i32, i32, i32
  }
  func.func @transform_1(%arg0: i32) -> (i32, i32) {
    %c0_i32 = arith.constant 0 : i32
    %c0_i32_0 = arith.constant 0 : i32
    %c0_i32_1 = arith.constant 0 : i32
    return %c0_i32, %c0_i32_0 : i32, i32
  }
  func.func @transform_2(%arg0: i32) -> (i32, i32) {
    %c0_i32 = arith.constant 0 : i32
    %c0_i32_0 = arith.constant 0 : i32
    %c0_i32_1 = arith.constant 0 : i32
    return %c0_i32, %c0_i32_0 : i32, i32
  }
  func.func @transform_3(%arg0: i32) -> (i32, i32, i32) {
    %c0_i32 = arith.constant 0 : i32
    %c0_i32_0 = arith.constant 0 : i32
    %c0_i32_1 = arith.constant 0 : i32
    %c0_i32_2 = arith.constant 0 : i32
    return %c0_i32, %c0_i32_0, %c0_i32_1 : i32, i32, i32
  }
  func.func @transform_4(%arg0: i32) -> (i32, i32) {
    %c0_i32 = arith.constant 0 : i32
    %c0_i32_0 = arith.constant 0 : i32
    %c0_i32_1 = arith.constant 0 : i32
    return %c0_i32, %c0_i32_0 : i32, i32
  }
  func.func @transform_5(%arg0: i32) -> (i32, i32) {
    %c0_i32 = arith.constant 0 : i32
    %c0_i32_0 = arith.constant 0 : i32
    %c0_i32_1 = arith.constant 0 : i32
    return %c0_i32, %c0_i32_0 : i32, i32
  }
  func.func @transform_6(%arg0: i32) -> (i32, i32) {
    %c0_i32 = arith.constant 0 : i32
    %c0_i32_0 = arith.constant 0 : i32
    %c0_i32_1 = arith.constant 0 : i32
    return %c0_i32, %c0_i32_0 : i32, i32
  }
  func.func @transform_7(%arg0: i32) -> (i32, i32, i32) {
    %c0_i32 = arith.constant 0 : i32
    %c0_i32_0 = arith.constant 0 : i32
    %c0_i32_1 = arith.constant 0 : i32
    return %arg0, %c0_i32, %c0_i32_0 : i32, i32, i32
  }
}

</mosaic_0001>

<bundles_post_ra>
// kernel: bottleneck_forward.1
= control target key start
LH: loop header
LB: loop body
LE: loop exit
PB: predicated region body
PF: predicated region fallthrough
CT: control target
= control target key end

     0   :  { %s5393_s24 = smov 0   ;;  %s6861_s0 = inlined_call_operand.vmem [shape: bf16[2,256,16], index: 0, kind: input, shape index: {}]   ;;  %s6862_s1 = inlined_call_operand.vmem [shape: bf16[16,4], index: 1, kind: input, shape index: {}]   ;;  %s6863_s2 = inlined_call_operand.vmem [shape: f32[1,4], index: 2, kind: input, shape index: {}]   ;;  %s6864_s3 = inlined_call_operand.vmem [shape: bf16[3,12,4], index: 3, kind: input, shape index: {}]   ;;  %s6865_s4 = inlined_call_operand.vmem [shape: f32[1,4], index: 4, kind: input, shape index: {}]   ;;  %s6866_s5 = inlined_call_operand.vmem [shape: bf16[4,16], index: 5, kind: input, shape index: {}]   ;;  %s6867_s6 = inlined_call_operand.vmem [shape: f32[1,16], index: 6, kind: input, shape index: {}]   ;;  %s6868_s7 = inlined_call_operand.vmem [shape: bf16[2,256,16], index: 7, kind: output, shape index: {}]  }
   0x1 LB: > { %s4677_s25 = sadd.s32 4294967295, %s5349_s24   ;;  %p4681_p0 = scmp.ge.s32.totalorder %s5349_s24, 1  ;;  %s5349_s24 = sphi %s5393_s24, %s17_s24  }
   0x2   : > { %p237_p1 = scmp.lt.s32.totalorder %s5349_s24, 3 }
   0x4   : > { %p238_p2 = pnand %p4681_p0, %p237_p1 }
   0x6   : > { %241 = sbr.rel (%p238_p2) target bundleno = 1092 (0x444), region = 48 }
   0xd   : > { %v5276_v0 = vld [vmem:[%s6862_s1] sm:$0xff]   ;;  %p269_p3 = scmp.lt.s32.totalorder %s4677_s25, 1  ;;  %vm407_vm0 = vcmask 130048   ;;  %vm649_vm1 = vcmask 31747   ;;  %vm650_vm2 = vsmask.f32 7950 }
   0xe   : > { %5025 = vmatprep.subr.bf16.mxu0 %v5276_v0  ;;  %vm655_vm3 = vcmask 28672   ;;  %vm656_vm4 = vsmask.f32 4352  ;;  %vm5446_vm5 = vmand %vm649_vm1, %vm650_vm2  ;;  %v662_v18 = vld [vmem:[#allocation2 + $0x110] sm:$0xf8]  ;;  %vm668_vm7 = vcmask 27651  }
   0xf   : > { %s6905_s25 = smov (!%p269_p3, %s4677_s25), 1  ;;  %5026 = vmatpush3.bf16.msra.mxu0 %v5276_v0  ;;  %v665_v19 = vld [vmem:[#allocation2 + $0x118] sm:$0x1f]  ;;  %vm5451_vm6 = vmand %vm655_vm3, %vm656_vm4  ;;  %v663_v21 = vsel %vm5446_vm5, 0, %v662_v18  ;;  %v676_v22 = vld [vmem:[#allocation2 + $0x20] sm:$0x8] }
  0x10   : > { %s4827_s28 = sshll.u32 %s6905_s25, 7  ;;  %664 = vst [vmem:[#allocation2 + $0x110] sm:$0xf8] %v663_v21  ;;  %v666_v23 = vsel %vm5451_vm6, 0, %v665_v19  ;;  %vm5459_vm8 = vmand %vm668_vm7, %vm650_vm2  ;;  %v673_v26 = vld [vmem:[#allocation2 + $0x10] sm:$0x8] }
  0x11   : > { %s5412_s8 = scalar_lea.vmem %s6861_s0, %s4827_s28  ;;  %667 = vst [vmem:[#allocation2 + $0x118] sm:$0x1f] %v666_v23  ;;  %v677_v25 = vsel %vm5459_vm8, 0, %v676_v22  ;;  %v674_v27 = vsel %vm5459_vm8, 0, %v673_v26  ;;  %vm1988_vm9 = vcmask 1043456   ;;  %s5351_s9 = smov 8  }
  0x12   : > { %v5277_v1 = vld [vmem:[%s5412_s8] sm:$0xff]   ;;  %v5278_v2 = vld [vmem:[%s5412_s8 + $0x8] sm:$0xff]   ;;  %v5279_v3 = vld [vmem:[%s5412_s8 + $0x10] sm:$0xff]   ;;  %678 = vst [vmem:[#allocation2 + $0x20] sm:$0x8] %v677_v25  ;;  %vm724_vm10 = vcmask 28676   ;;  %s6752_s30 = scalar_lea.vmem %s6868_s7, %s4827_s28 }
  0x13   : > { %5027 = vmatprep.mubr.msk.bf16.mxu0 %vm407_vm0, %v5277_v1  ;;  %v5280_v4 = vld [vmem:[%s5412_s8 + $0x18] sm:$0xff]   ;;  %v5281_v5 = vld [vmem:[%s5412_s8 + $0x20] sm:$0xff]   ;;  %v5282_v6 = vld [vmem:[%s5412_s8 + $0x28] sm:$0xff]   ;;  %675 = vst [vmem:[#allocation2 + $0x10] sm:$0x8] %v674_v27  ;;  %vm845_vm12 = vcmask 31748  }
  0x14   : > { %5028 = vmatmul.mubr.msk.bf16.vlgmr.msra.gmra.mrb[0].mxu0 %vm407_vm0, %v5278_v2  ;;  %v5283_v7 = vld [vmem:[%s5412_s8 + $0x30] sm:$0xff]   ;;  %v5284_v8 = vld [vmem:[%s5412_s8 + $0x38] sm:$0xff]   ;;  %v5285_v9 = vld [vmem:[%s5412_s8 + $0x40] sm:$0xff]   ;;  %vm847_vm13 = vcmask 27648   ;;  %s5352_s12 = smov 4   ;;  %vm1856_vm15 = vcmask 31744  }
  0x15   : > { %5031 = vmatprep.mubr.msk.bf16.mxu0 %vm407_vm0, %v5279_v3  ;;  %v5286_v10 = vld [vmem:[%s5412_s8 + $0x48] sm:$0xff]   ;;  %v5287_v11 = vld [vmem:[%s5412_s8 + $0x50] sm:$0xff]   ;;  %v5288_v12 = vld [vmem:[%s5412_s8 + $0x58] sm:$0xff]   ;;  %vm2796_vm14 = vsmask.f32 3328  ;;  %vm2381_vm1 = vcmask 97280  }
  0x16   : > { %v5289_v13 = vld [vmem:[%s5412_s8 + $0x60] sm:$0xff]   ;;  %v5290_v14 = vld [vmem:[%s5412_s8 + $0x68] sm:$0xff]   ;;  %v5291_v15 = vld [vmem:[%s5412_s8 + $0x70] sm:$0xff]   ;;  %vm2414_vm2 = vcmask 1045504   ;;  %vm4168_vm3 = vcmask 1041408  }
  0x17   : > { %v5292_v16 = vld [vmem:[%s5412_s8 + $0x78] sm:$0xff]   ;;  %v2148_v28 = vld [vmem:[#allocation2 + $0x110] sm:$0xf0]  ;;  %v682_v33 = vld [vmem:[#allocation2 + $0x40] sm:$0x8] }
  0x18   : > { %v5467_v29 = vld [vmem:[#allocation2 + $0x118] sm:$0xf]  ;;  %v2226_v30 = vrot.slane %v2148_v28, 4  ;;  %v683_v34 = vsel %vm5459_vm8, 0, %v682_v33  ;;  %v652_v35 = vld [vmem:[#allocation2] sm:$0xf8]  ;;  %vm5501_vm11 = vmand %vm724_vm10, %vm656_vm4 }
  0x19   : > { %v2227_v31 = vrot.slane %v5467_v29, 4  ;;  %v658_v36 = vld [vmem:[#allocation2 + $0x8] sm:$0x1f]  ;;  %684 = vst [vmem:[#allocation2 + $0x40] sm:$0x8] %v683_v34  ;;  %v653_v39 = vsel %vm5446_vm5, 0, %v652_v35 }
  0x1a   : > { %v679_v37 = vld [vmem:[#allocation2 + $0x30] sm:$0x8]  ;;  %v659_v38 = vsel %vm5451_vm6, 0, %v658_v36  ;;  %654 = vst [vmem:[#allocation2] sm:$0xf8] %v653_v39 }
  0x1b   : > { %v2228_v32 = vsel %vm1988_vm9, %v2226_v30, %v2227_v31  ;;  %v680_v40 = vsel %vm5459_vm8, 0, %v679_v37  ;;  %660 = vst [vmem:[#allocation2 + $0x8] sm:$0x1f] %v659_v38  ;;  %v688_v41 = vld [vmem:[#allocation2 + $0x60] sm:$0x8]  ;;  %v1784_v37 = vshrl.u32 %v5467_v29, 16 }
  0x1c   : > { %5032 = vmatmul.mubr.msk.bf16.gmra.mrb[4].mxu0 %vm407_vm0, %v5280_v4  ;;  %2291 = vrot.lane.b32.xlu1 %v2228_v32, %s5351_s9  ;;  %681 = vst [vmem:[#allocation2 + $0x30] sm:$0x8] %v680_v40  ;;  %v689_v42 = vsel %vm5459_vm8, 0, %v688_v41  ;;  %v685_v43 = vld [vmem:[#allocation2 + $0x50] sm:$0x8] }
  0x1d   : > { %5035 = vmatprep.mubr.msk.bf16.mxu0 %vm407_vm0, %v5281_v5  ;;  %690 = vst [vmem:[#allocation2 + $0x60] sm:$0x8] %v689_v42  ;;  %v686_v44 = vsel %vm5459_vm8, 0, %v685_v43  ;;  %v691_v45 = vld [vmem:[#allocation2 + $0x70] sm:$0x8] }
  0x1e   : > { %687 = vst [vmem:[#allocation2 + $0x50] sm:$0x8] %v686_v44  ;;  %v694_v46 = vld [vmem:[#allocation2 + $0x80] sm:$0x8]  ;;  %v692_v47 = vsel %vm5459_vm8, 0, %v691_v45 }
  0x1f   : > { %v695_v48 = vsel %vm5459_vm8, 0, %v694_v46  ;;  %693 = vst [vmem:[#allocation2 + $0x70] sm:$0x8] %v692_v47  ;;  %v700_v49 = vld [vmem:[#allocation2 + $0xa0] sm:$0x8]  ;;  %v5534_v46 = vrot.slane %v1784_v37, 3 }
  0x20   : > { %696 = vst [vmem:[#allocation2 + $0x80] sm:$0x8] %v695_v48  ;;  %v697_v50 = vld [vmem:[#allocation2 + $0x90] sm:$0x8]  ;;  %v701_v51 = vsel %vm5459_vm8, 0, %v700_v49  ;;  %v1787_v47 = vshll.u32 %v5467_v29, 16 }
  0x21   : > { %v698_v52 = vsel %vm5459_vm8, 0, %v697_v50  ;;  %702 = vst [vmem:[#allocation2 + $0xa0] sm:$0x8] %v701_v51  ;;  %v706_v53 = vld [vmem:[#allocation2 + $0xc0] sm:$0x8] }
  0x22   : > { %699 = vst [vmem:[#allocation2 + $0x90] sm:$0x8] %v698_v52  ;;  %v703_v54 = vld [vmem:[#allocation2 + $0xb0] sm:$0x8]  ;;  %v707_v55 = vsel %vm5459_vm8, 0, %v706_v53 }
  0x23   : > { %v704_v56 = vsel %vm5459_vm8, 0, %v703_v54  ;;  %708 = vst [vmem:[#allocation2 + $0xc0] sm:$0x8] %v707_v55  ;;  %v712_v57 = vld [vmem:[#allocation2 + $0xe0] sm:$0x8] }
  0x24   : > { %5036 = vmatmul.mubr.msk.bf16.gmra.mrb[8].mxu0 %vm407_vm0, %v5282_v6  ;;  %705 = vst [vmem:[#allocation2 + $0xb0] sm:$0x8] %v704_v56  ;;  %v709_v58 = vld [vmem:[#allocation2 + $0xd0] sm:$0x8]  ;;  %v713_v59 = vsel %vm5459_vm8, 0, %v712_v57 }
  0x25   : > { %5039 = vmatprep.mubr.msk.bf16.mxu0 %vm407_vm0, %v5283_v7  ;;  %v710_v60 = vsel %vm5459_vm8, 0, %v709_v58  ;;  %714 = vst [vmem:[#allocation2 + $0xe0] sm:$0x8] %v713_v59  ;;  %v729_v62 = vld [vmem:[#allocation2 + $0x18] sm:$0x10] }
  0x26   : > { %711 = vst [vmem:[#allocation2 + $0xd0] sm:$0x8] %v710_v60  ;;  %v730_v63 = vsel %vm5501_vm11, 0, %v729_v62  ;;  %v732_v0 = vld [vmem:[#allocation2 + $0x28] sm:$0x10] }
  0x27   : > { %731 = vst [vmem:[#allocation2 + $0x18] sm:$0x10] %v730_v63  ;;  %v733_v1 = vsel %vm5501_vm11, 0, %v732_v0  ;;  %v5512_v2 = vld [vmem:[%s6863_s2] ss:$0 sm:$0xff] }
  0x28   : > { %734 = vst [vmem:[#allocation2 + $0x28] sm:$0x10] %v733_v1  ;;  %v721_v19 = vld [vmem:[#allocation2 + $0x110] sm:$0x8] }
  0x29   : > { %v722_v21 = vsel %vm5459_vm8, 0, %v721_v19 }
  0x2a   : > { %723 = vst [vmem:[#allocation2 + $0x110] sm:$0x8] %v722_v21 }
  0x2c   : > { %5040 = vmatmul.mubr.msk.bf16.gmra.mrb[12].mxu0 %vm407_vm0, %v5284_v8 }
  0x2d   : > { %5043 = vmatprep.mubr.msk.bf16.mxu0 %vm407_vm0, %v5285_v9 }
  0x34   : > { %5044 = vmatmul.mubr.msk.bf16.gmra.mrb[16].mxu0 %vm407_vm0, %v5286_v10  ;;  %v735_v10 = vld [vmem:[#allocation2 + $0x38] sm:$0x10] }
  0x35   : > { %5047 = vmatprep.mubr.msk.bf16.mxu0 %vm407_vm0, %v5287_v11  ;;  %v738_v11 = vld [vmem:[#allocation2 + $0x48] sm:$0x10] }
  0x3c   : > { %5048 = vmatmul.mubr.msk.bf16.gmra.mrb[20].mxu0 %vm407_vm0, %v5288_v12 }
  0x3d   : > { %5051 = vmatprep.mubr.msk.bf16.mxu0 %vm407_vm0, %v5289_v13  ;;  %v736_v13 = vsel %vm5501_vm11, 0, %v735_v10 }
  0x3e   : > { %737 = vst [vmem:[#allocation2 + $0x38] sm:$0x10] %v736_v13 }
  0x44   : > { %5052 = vmatmul.mubr.msk.bf16.gmra.mrb[24].mxu0 %vm407_vm0, %v5290_v14  ;;  %v739_v14 = vsel %vm5501_vm11, 0, %v738_v11 }
  0x45   : > { %5055 = vmatprep.mubr.msk.bf16.mxu0 %vm407_vm0, %v5291_v15  ;;  %740 = vst [vmem:[#allocation2 + $0x48] sm:$0x10] %v739_v14 }
  0x4c   : > { %5056 = vmatmul.mubr.msk.bf16.gmra.mrb[28].mxu0 %vm407_vm0, %v5292_v16  ;;  %vm1905_vm0 = vcmask 64512  }
  0xe7   : > { %v5029_v3 = vpop.f32.mrb[0].mxu0 }
  0xe8   : > { %v499_v4 = vadd.f32 %v5029_v3, %v5512_v2  ;;  %v490_v5 = vpop.f32.mrb[1].mxu0 }
  0xe9   : > { %v491_v6 = vadd.f32 %v5512_v2, %v490_v5  ;;  %v5030_v7 = vpop.f32.mrb[2].mxu0 }
  0xea   : > { %v502_v8 = vadd.f32 %v5030_v7, %v5512_v2  ;;  %v493_v9 = vpop.f32.mrb[3].mxu0  ;;  %v619_v15 = vmax.f32 %v499_v4, 0.0 }
  0xeb   : > { %v494_v12 = vadd.f32 %v5512_v2, %v493_v9  ;;  %v617_v17 = vmax.f32 %v491_v6, 0.0 }
  0xec   : > { %v620_v16 = vmax.f32 %v502_v8, 0.0 }
  0xed   : > { %v618_v18 = vmax.f32 %v494_v12, 0.0 }
  0xee   : > { %v781_v20 = vpack.c.bf16 %v620_v16, %v619_v15 }
  0xef   : > { %v780_v22 = vpack.c.bf16 %v618_v18, %v617_v17  ;;  %v5033_v23 = vpop.f32.mrb[4].mxu0 }
  0xf0   : > { %v813_v25 = vrot.slane %v781_v20, 4  ;;  %v515_v26 = vadd.f32 %v5033_v23, %v5512_v2  ;;  %v506_v27 = vpop.f32.mrb[5].mxu0 }
  0xf1   : > { %v812_v28 = vrot.slane %v780_v22, 4  ;;  %v507_v30 = vadd.f32 %v5512_v2, %v506_v27  ;;  %v5034_v31 = vpop.f32.mrb[6].mxu0 }
  0xf2   : > { %849 = vst.msk [vmem:[#allocation2 + $0x20] sm:$0xf0] %vm845_vm12, %v813_v25  ;;  %v518_v32 = vadd.f32 %v5034_v31, %v5512_v2  ;;  %v509_v33 = vpop.f32.mrb[7].mxu0  ;;  %v623_v35 = vmax.f32 %v515_v26, 0.0 }
  0xf3   : > { %850 = vst.msk [vmem:[#allocation2 + $0x28] sm:$0xf] %vm847_vm13, %v813_v25  ;;  %848 = vst.msk [vmem:[#allocation2 + $0x18] sm:$0xf] %vm847_vm13, %v812_v28  ;;  %v510_v34 = vadd.f32 %v5512_v2, %v509_v33  ;;  %v621_v38 = vmax.f32 %v507_v30, 0.0 }
  0xf4   : > { %846 = vst.msk [vmem:[#allocation2 + $0x10] sm:$0xf0] %vm845_vm12, %v812_v28  ;;  %v624_v36 = vmax.f32 %v518_v32, 0.0 }
  0xf5   : > { %v622_v39 = vmax.f32 %v510_v34, 0.0 }
  0xf6   : > { %v783_v40 = vpack.c.bf16 %v624_v36, %v623_v35 }
  0xf7   : > { %v782_v41 = vpack.c.bf16 %v622_v39, %v621_v38  ;;  %v5037_v42 = vpop.f32.mrb[8].mxu0 }
  0xf8   : > { %v815_v43 = vrot.slane %v783_v40, 4  ;;  %v531_v44 = vadd.f32 %v5037_v42, %v5512_v2  ;;  %v522_v45 = vpop.f32.mrb[9].mxu0 }
  0xf9   : > { %v814_v48 = vrot.slane %v782_v41, 4  ;;  %v523_v49 = vadd.f32 %v5512_v2, %v522_v45  ;;  %v5038_v50 = vpop.f32.mrb[10].mxu0  ;;  %v1488_v51 = vld [vmem:[#allocation2 + $0x20] sm:$0xf8] }
  0xfa   : > { %v1489_v52 = vld [vmem:[#allocation2 + $0x28] sm:$0xf]  ;;  %853 = vst.msk [vmem:[#allocation2 + $0x40] sm:$0xf0] %vm845_vm12, %v815_v43  ;;  %v627_v53 = vmax.f32 %v531_v44, 0.0  ;;  %v534_v54 = vadd.f32 %v5038_v50, %v5512_v2  ;;  %v525_v55 = vpop.f32.mrb[11].mxu0 }
  0xfb   : > { %854 = vst.msk [vmem:[#allocation2 + $0x48] sm:$0xf] %vm847_vm13, %v815_v43  ;;  %v1521_v56 = vshrl.u32 %v1488_v51, 16  ;;  %v1524_v57 = vshll.u32 %v1488_v51, 16  ;;  %v1185_v58 = vld [vmem:[#allocation2 + $0x20] sm:$0xf8]  ;;  %v526_v60 = vadd.f32 %v5512_v2, %v525_v55 }
  0xfc   : > { %851 = vst.msk [vmem:[#allocation2 + $0x30] sm:$0xf0] %vm845_vm12, %v814_v48  ;;  %v625_v59 = vmax.f32 %v523_v49, 0.0  ;;  %v1529_v62 = vshrl.u32 %v1489_v52, 16  ;;  %v1532_v63 = vshll.u32 %v1489_v52, 16  ;;  %v628_v1 = vmax.f32 %v534_v54, 0.0 }
  0xfd   : > { %852 = vst.msk [vmem:[#allocation2 + $0x38] sm:$0xf] %vm847_vm13, %v814_v48  ;;  %v1186_v0 = vld [vmem:[#allocation2 + $0x28] sm:$0xf]  ;;  %v1523_v3 = vrot.slane %v1521_v56, 3  ;;  %v1526_v4 = vrot.slane %v1524_v57, 4 }
  0xfe   : > { %v1233_v5 = vshrl.u32 %v1185_v58, 16  ;;  %v626_v6 = vmax.f32 %v526_v60, 0.0  ;;  %v1531_v7 = vrot.slane %v1529_v62, 3  ;;  %v1534_v8 = vrot.slane %v1532_v63, 4  ;;  %v1183_v10 = vld [vmem:[#allocation2 + $0x10] sm:$0xf8] }
  0xff   : > { %v1236_v9 = vshll.u32 %v1185_v58, 16  ;;  %v785_v11 = vpack.c.bf16 %v628_v1, %v627_v53  ;;  %v1527_v12 = vor.u32 %v1526_v4, %v1523_v3  ;;  %v1241_v14 = vshrl.u32 %v1186_v0, 16  ;;  %v5041_v16 = vpop.f32.mrb[12].mxu0  ;;  %v1184_v25 = vld [vmem:[#allocation2 + $0x18] sm:$0xf] }
 0x100   : > { %v1235_v13 = vrot.slane %v1233_v5, 3  ;;  %v784_v15 = vpack.c.bf16 %v626_v6, %v625_v59  ;;  %v1535_v17 = vor.u32 %v1534_v8, %v1531_v7  ;;  %v1244_v19 = vshll.u32 %v1186_v0, 16  ;;  %v538_v22 = vpop.f32.mrb[13].mxu0 }
 0x101   : > { %v1238_v18 = vrot.slane %v1236_v9, 4  ;;  %v817_v20 = vrot.slane %v785_v11, 4  ;;  %v547_v21 = vadd.f32 %v5041_v16, %v5512_v2  ;;  %v1243_v23 = vrot.slane %v1241_v14, 3  ;;  %v5042_v32 = vpop.f32.mrb[14].mxu0  ;;  %v1189_v33 = vld [vmem:[#allocation2 + $0x40] sm:$0xf8] }
 0x102   : > { %v1216_v26 = vshrl.u32 %v1183_v10, 16  ;;  %v816_v27 = vrot.slane %v784_v15, 4  ;;  %v539_v28 = vadd.f32 %v5512_v2, %v538_v22  ;;  %v1536_v30 = vsel %vm656_vm4, %v1527_v12, %v1535_v17  ;;  %v541_v37 = vpop.f32.mrb[15].mxu0  ;;  %v1190_v48 = vld [vmem:[#allocation2 + $0x48] sm:$0xf] }
 0x103   : > { %v1239_v31 = vor.u32 %v1238_v18, %v1235_v13  ;;  %857 = vst.msk [vmem:[#allocation2 + $0x60] sm:$0xf0] %vm845_vm12, %v817_v20  ;;  %v631_v34 = vmax.f32 %v547_v21, 0.0  ;;  %1824 = vrot.lane.b32.xlu0 %v1536_v30, %s5351_s9  ;;  %v1246_v35 = vrot.slane %v1244_v19, 4  ;;  %v550_v36 = vadd.f32 %v5042_v32, %v5512_v2  ;;  %v1492_v0 = vld [vmem:[#allocation2 + $0x40] sm:$0xf8] }
 0x104   : > { %858 = vst.msk [vmem:[#allocation2 + $0x68] sm:$0xf] %vm847_vm13, %v817_v20  ;;  %v1218_v38 = vrot.slane %v1216_v26, 3  ;;  %856 = vst.msk [vmem:[#allocation2 + $0x58] sm:$0xf] %vm847_vm13, %v816_v27  ;;  %v629_v39 = vmax.f32 %v539_v28, 0.0  ;;  %v542_v40 = vadd.f32 %v5512_v2, %v541_v37 }
 0x105   : > { %855 = vst.msk [vmem:[#allocation2 + $0x50] sm:$0xf0] %vm845_vm12, %v816_v27  ;;  %v1219_v41 = vshll.u32 %v1183_v10, 16  ;;  %v1224_v42 = vshrl.u32 %v1184_v25, 16  ;;  %v1247_v43 = vor.u32 %v1246_v35, %v1243_v23  ;;  %v632_v44 = vmax.f32 %v550_v36, 0.0 }
 0x106   : > { %v1227_v45 = vshll.u32 %v1184_v25, 16  ;;  %v1267_v49 = vshrl.u32 %v1189_v33, 16  ;;  %v630_v50 = vmax.f32 %v542_v40, 0.0  ;;  %v1270_v53 = vshll.u32 %v1189_v33, 16  ;;  %v1493_v7 = vld [vmem:[#allocation2 + $0x48] sm:$0xf] }
 0x107   : > { %v1221_v51 = vrot.slane %v1219_v41, 4  ;;  %v1226_v52 = vrot.slane %v1224_v42, 3  ;;  %v1248_v54 = vsel %vm656_vm4, %v1239_v31, %v1247_v43  ;;  %v787_v55 = vpack.c.bf16 %v632_v44, %v631_v34  ;;  %v5045_v60 = vpop.f32.mrb[16].mxu0  ;;  %v1490_v18 = vld [vmem:[#allocation2 + $0x30] sm:$0xf8] }
 0x108   : > { %v1229_v56 = vrot.slane %v1227_v45, 4  ;;  %v1269_v57 = vrot.slane %v1267_v49, 3  ;;  %1794 = vrot.lane.b32.xlu1 %v1248_v54, %s5352_s12  ;;  %v786_v58 = vpack.c.bf16 %v630_v50, %v629_v39  ;;  %v1272_v62 = vrot.slane %v1270_v53, 4  ;;  %v554_v5 = vpop.f32.mrb[17].mxu0  ;;  %v1491_v28 = vld [vmem:[#allocation2 + $0x38] sm:$0xf] }
 0x109   : > { %v1222_v59 = vor.u32 %v1221_v51, %v1218_v38  ;;  %v1275_v63 = vshrl.u32 %v1190_v48, 16  ;;  %v819_v1 = vrot.slane %v787_v55, 4  ;;  %v563_v4 = vadd.f32 %v5045_v60, %v5512_v2  ;;  %v5046_v12 = vpop.f32.mrb[18].mxu0  ;;  %v1187_v38 = vld [vmem:[#allocation2 + $0x30] sm:$0xf8] }
 0x10a   : > { %v1230_v3 = vor.u32 %v1229_v56, %v1226_v52  ;;  %v1278_v6 = vshll.u32 %v1190_v48, 16  ;;  %v818_v8 = vrot.slane %v786_v58, 4  ;;  %v555_v9 = vadd.f32 %v5512_v2, %v554_v5  ;;  %v557_v17 = vpop.f32.mrb[19].mxu0  ;;  %v1188_v43 = vld [vmem:[#allocation2 + $0x38] sm:$0xf] }
 0x10b   : > { %v1273_v10 = vor.u32 %v1272_v62, %v1269_v57  ;;  %v1277_v11 = vrot.slane %v1275_v63, 3  ;;  %861 = vst.msk [vmem:[#allocation2 + $0x80] sm:$0xf0] %vm845_vm12, %v819_v1  ;;  %v635_v14 = vmax.f32 %v563_v4, 0.0  ;;  %v566_v16 = vadd.f32 %v5046_v12, %v5512_v2  ;;  %v1193_v62 = vld [vmem:[#allocation2 + $0x60] sm:$0xf8] }
 0x10c   : > { %862 = vst.msk [vmem:[#allocation2 + $0x88] sm:$0xf] %vm847_vm13, %v819_v1  ;;  %v1231_v13 = vsel %vm656_vm4, %v1222_v59, %v1230_v3  ;;  %v1280_v15 = vrot.slane %v1278_v6, 4  ;;  %860 = vst.msk [vmem:[#allocation2 + $0x78] sm:$0xf] %vm847_vm13, %v818_v8  ;;  %v633_v19 = vmax.f32 %v555_v9, 0.0  ;;  %v558_v27 = vadd.f32 %v5512_v2, %v557_v17 }
 0x10d   : > { %859 = vst.msk [vmem:[#allocation2 + $0x70] sm:$0xf0] %vm845_vm12, %v818_v8  ;;  %1792 = vrot.lane.b32.xlu0 %v1231_v13, %s5352_s12  ;;  %v1555_v20 = vshrl.u32 %v1492_v0, 16  ;;  %v1558_v21 = vshll.u32 %v1492_v0, 16  ;;  %v1563_v22 = vshrl.u32 %v1493_v7, 16  ;;  %v636_v25 = vmax.f32 %v566_v16, 0.0 }
 0x10e   : > { %v1281_v23 = vor.u32 %v1280_v15, %v1277_v11  ;;  %v1566_v26 = vshll.u32 %v1493_v7, 16  ;;  %v1538_v33 = vshrl.u32 %v1490_v18, 16  ;;  %v634_v37 = vmax.f32 %v558_v27, 0.0  ;;  %v1194_v9 = vld [vmem:[#allocation2 + $0x68] sm:$0xf] }
 0x10f   : > { %v1557_v30 = vrot.slane %v1555_v20, 3  ;;  %v1560_v31 = vrot.slane %v1558_v21, 4  ;;  %v1565_v32 = vrot.slane %v1563_v22, 3  ;;  %v789_v35 = vpack.c.bf16 %v636_v25, %v635_v14  ;;  %v5049_v44 = vpop.f32.mrb[20].mxu0  ;;  %v1496_v14 = vld [vmem:[#allocation2 + $0x60] sm:$0xf8] }
 0x110   : > { %v1282_v34 = vsel %vm656_vm4, %v1273_v10, %v1281_v23  ;;  %v1568_v36 = vrot.slane %v1566_v26, 4  ;;  %v1540_v40 = vrot.slane %v1538_v33, 3  ;;  %v1541_v41 = vshll.u32 %v1490_v18, 16  ;;  %v570_v51 = vpop.f32.mrb[21].mxu0 }
 0x111   : > { %1798 = vrot.lane.b32.xlu1 %v1282_v34, %s5352_s12  ;;  %v1561_v39 = vor.u32 %v1560_v31, %v1557_v30  ;;  %v1546_v42 = vshrl.u32 %v1491_v28, 16  ;;  %v821_v45 = vrot.slane %v789_v35, 4  ;;  %v788_v49 = vpack.c.bf16 %v634_v37, %v633_v19  ;;  %v5050_v56 = vpop.f32.mrb[22].mxu0  ;;  %v1497_v19 = vld [vmem:[#allocation2 + $0x68] sm:$0xf] }
 0x112   : > { %v1569_v48 = vor.u32 %v1568_v36, %v1565_v32  ;;  %v1549_v50 = vshll.u32 %v1491_v28, 16  ;;  %v1543_v52 = vrot.slane %v1541_v41, 4  ;;  %v1250_v54 = vshrl.u32 %v1187_v38, 16  ;;  %v573_v63 = vpop.f32.mrb[23].mxu0  ;;  %v1494_v36 = vld [vmem:[#allocation2 + $0x50] sm:$0xf8] }
 0x113   : > { %v1548_v53 = vrot.slane %v1546_v42, 3  ;;  %v1253_v55 = vshll.u32 %v1187_v38, 16  ;;  %865 = vst.msk [vmem:[#allocation2 + $0xa0] sm:$0xf0] %vm845_vm12, %v821_v45  ;;  %v820_v58 = vrot.slane %v788_v49, 4  ;;  %v1258_v60 = vshrl.u32 %v1188_v43, 16 }
 0x114   : > { %866 = vst.msk [vmem:[#allocation2 + $0xa8] sm:$0xf] %vm847_vm13, %v821_v45  ;;  %v1570_v57 = vsel %vm656_vm4, %v1561_v39, %v1569_v48  ;;  %v1551_v59 = vrot.slane %v1549_v50, 4  ;;  %v1544_v0 = vor.u32 %v1543_v52, %v1540_v40  ;;  %v1252_v1 = vrot.slane %v1250_v54, 3  ;;  %v1495_v42 = vld [vmem:[#allocation2 + $0x58] sm:$0xf] }
 0x115   : > { %1828 = vrot.lane.b32.xlu0 %v1570_v57, %s5351_s9  ;;  %v1255_v3 = vrot.slane %v1253_v55, 4  ;;  %v1261_v4 = vshll.u32 %v1188_v43, 16  ;;  %863 = vst.msk [vmem:[#allocation2 + $0x90] sm:$0xf0] %vm845_vm12, %v820_v58  ;;  %v1260_v6 = vrot.slane %v1258_v60, 3  ;;  %v579_v7 = vadd.f32 %v5049_v44, %v5512_v2 }
 0x116   : > { %864 = vst.msk [vmem:[#allocation2 + $0x98] sm:$0xf] %vm847_vm13, %v820_v58  ;;  %v1552_v5 = vor.u32 %v1551_v59, %v1548_v53  ;;  %v571_v8 = vadd.f32 %v5512_v2, %v570_v51  ;;  %v582_v12 = vadd.f32 %v5050_v56, %v5512_v2  ;;  %v1301_v13 = vshrl.u32 %v1193_v62, 16  ;;  %v1191_v50 = vld [vmem:[#allocation2 + $0x50] sm:$0xf8] }
 0x117   : > { %v1256_v10 = vor.u32 %v1255_v3, %v1252_v1  ;;  %v1263_v11 = vrot.slane %v1261_v4, 4  ;;  %v639_v16 = vmax.f32 %v579_v7, 0.0  ;;  %v1304_v18 = vshll.u32 %v1193_v62, 16  ;;  %v5053_v25 = vpop.f32.mrb[24].mxu0  ;;  %v1192_v59 = vld [vmem:[#allocation2 + $0x58] sm:$0xf] }
 0x118   : > { %v1553_v15 = vsel %vm656_vm4, %v1544_v0, %v1552_v5  ;;  %v637_v17 = vmax.f32 %v571_v8, 0.0  ;;  %v640_v21 = vmax.f32 %v582_v12, 0.0  ;;  %v1303_v22 = vrot.slane %v1301_v13, 3  ;;  %v586_v31 = vpop.f32.mrb[25].mxu0 }
 0x119   : > { %1826 = vrot.lane.b32.xlu1 %v1553_v15, %s5351_s9  ;;  %v1264_v20 = vor.u32 %v1263_v11, %v1260_v6  ;;  %v1309_v23 = vshrl.u32 %v1194_v9, 16  ;;  %v1306_v26 = vrot.slane %v1304_v18, 4  ;;  %v1312_v27 = vshll.u32 %v1194_v9, 16  ;;  %v5054_v37 = vpop.f32.mrb[26].mxu0 }
 0x11a   : > { %v1589_v28 = vshrl.u32 %v1496_v14, 16  ;;  %v1592_v30 = vshll.u32 %v1496_v14, 16  ;;  %v791_v33 = vpack.c.bf16 %v640_v21, %v639_v16  ;;  %v1597_v35 = vshrl.u32 %v1497_v19, 16  ;;  %v589_v43 = vpop.f32.mrb[27].mxu0  ;;  %v1498_v16 = vld [vmem:[#allocation2 + $0x70] sm:$0xf8] }
 0x11b   : > { %v1265_v32 = vsel %vm656_vm4, %v1256_v10, %v1264_v20  ;;  %v1311_v34 = vrot.slane %v1309_v23, 3  ;;  %v1307_v38 = vor.u32 %v1306_v26, %v1303_v22  ;;  %v1314_v39 = vrot.slane %v1312_v27, 4 }
 0x11c   : > { %1796 = vrot.lane.b32.xlu0 %v1265_v32, %s5352_s12  ;;  %v1591_v40 = vrot.slane %v1589_v28, 3  ;;  %v1594_v41 = vrot.slane %v1592_v30, 4  ;;  %v823_v44 = vrot.slane %v791_v33, 4  ;;  %v1599_v45 = vrot.slane %v1597_v35, 3  ;;  %v1499_v30 = vld [vmem:[#allocation2 + $0x78] sm:$0xf] }
 0x11d   : > { %v1600_v48 = vshll.u32 %v1497_v19, 16  ;;  %v574_v49 = vadd.f32 %v5512_v2, %v573_v63  ;;  %v1315_v51 = vor.u32 %v1314_v39, %v1311_v34  ;;  %v1572_v53 = vshrl.u32 %v1494_v36, 16  ;;  %v1195_v32 = vld [vmem:[#allocation2 + $0x70] sm:$0xf8] }
 0x11e   : > { %v1595_v52 = vor.u32 %v1594_v41, %v1591_v40  ;;  %v1575_v54 = vshll.u32 %v1494_v36, 16  ;;  %869 = vst.msk [vmem:[#allocation2 + $0xc0] sm:$0xf0] %vm845_vm12, %v823_v44  ;;  %v1580_v57 = vshrl.u32 %v1495_v42, 16  ;;  %v1583_v58 = vshll.u32 %v1495_v42, 16 }
 0x11f   : > { %870 = vst.msk [vmem:[#allocation2 + $0xc8] sm:$0xf] %vm847_vm13, %v823_v44  ;;  %v1602_v55 = vrot.slane %v1600_v48, 4  ;;  %v638_v56 = vmax.f32 %v574_v49, 0.0  ;;  %v1316_v60 = vsel %vm656_vm4, %v1307_v38, %v1315_v51  ;;  %v1574_v62 = vrot.slane %v1572_v53, 3  ;;  %v5586_v6 = vpop.f32.mrb[28].mxu0 }
 0x120   : > { %v1577_v0 = vrot.slane %v1575_v54, 4  ;;  %v1284_v1 = vshrl.u32 %v1191_v50, 16  ;;  %1802 = vrot.lane.b32.xlu1 %v1316_v60, %s5352_s12  ;;  %v1582_v4 = vrot.slane %v1580_v57, 3  ;;  %v1585_v5 = vrot.slane %v1583_v58, 4  ;;  %v5588_v11 = vpop.f32.mrb[29].mxu0 }
 0x121   : > { %v1603_v63 = vor.u32 %v1602_v55, %v1599_v45  ;;  %v790_v3 = vpack.c.bf16 %v638_v56, %v637_v17  ;;  %v1287_v9 = vshll.u32 %v1191_v50, 16  ;;  %v1292_v10 = vshrl.u32 %v1192_v59, 16  ;;  %v5591_v18 = vpop.f32.mrb[30].mxu0  ;;  %v1196_v40 = vld [vmem:[#allocation2 + $0x78] sm:$0xf] }
 0x122   : > { %v1578_v7 = vor.u32 %v1577_v0, %v1574_v62  ;;  %v1286_v8 = vrot.slane %v1284_v1, 3  ;;  %v1586_v14 = vor.u32 %v1585_v5, %v1582_v4  ;;  %v1295_v15 = vshll.u32 %v1192_v59, 16  ;;  %v5596_v22 = vpop.f32.mrb[31].mxu0  ;;  %v2141_v51 = vld [vmem:[#allocation2 + $0xa0] sm:$0xf0] }
 0x123   : > { %v1604_v12 = vsel %vm656_vm4, %v1595_v52, %v1603_v63  ;;  %v822_v13 = vrot.slane %v790_v3, 4  ;;  %v1289_v17 = vrot.slane %v1287_v9, 4  ;;  %v1294_v19 = vrot.slane %v1292_v10, 3  ;;  %v5607_v52 = vld [vmem:[#allocation2 + $0xa8] sm:$0xf] }
 0x124   : > { %1832 = vrot.lane.b32.xlu0 %v1604_v12, %s5351_s9  ;;  %v595_v20 = vadd.f32 %v5053_v25, %v5512_v2  ;;  %v587_v21 = vadd.f32 %v5512_v2, %v586_v31  ;;  %v1587_v23 = vsel %vm656_vm4, %v1578_v7, %v1586_v14  ;;  %v1297_v26 = vrot.slane %v1295_v15, 4  ;;  %v2046_v57 = vld [vmem:[#allocation2 + $0xa0] sm:$0xf0]  ;;  %v5610_v4 = vld [vmem:[#allocation2 + $0x110] sm:$0xf8] }
 0x125   : > { %867 = vst.msk [vmem:[#allocation2 + $0xb0] sm:$0xf0] %vm845_vm12, %v822_v13  ;;  %v598_v27 = vadd.f32 %v5054_v37, %v5512_v2  ;;  %v590_v28 = vadd.f32 %v5512_v2, %v589_v43  ;;  %1830 = vrot.lane.b32.xlu1 %v1587_v23, %s5351_s9  ;;  %v1290_v25 = vor.u32 %v1289_v17, %v1286_v8  ;;  %v1606_v34 = vshrl.u32 %v1498_v16, 16  ;;  %v5604_v37 = vld [vmem:[#allocation2 + $0xa8] sm:$0xf] }
 0x126   : > { %868 = vst.msk [vmem:[#allocation2 + $0xb8] sm:$0xf] %vm847_vm13, %v822_v13  ;;  %v643_v33 = vmax.f32 %v595_v20, 0.0  ;;  %v641_v31 = vmax.f32 %v587_v21, 0.0  ;;  %v1298_v35 = vor.u32 %v1297_v26, %v1294_v19  ;;  %v1609_v39 = vshll.u32 %v1498_v16, 16 }
 0x127   : > { %v644_v36 = vmax.f32 %v598_v27, 0.0  ;;  %v642_v38 = vmax.f32 %v590_v28, 0.0  ;;  %v1608_v41 = vrot.slane %v1606_v34, 3  ;;  %v1614_v42 = vshrl.u32 %v1499_v30, 16  ;;  %v2045_v15 = vld [vmem:[#allocation2 + $0x90] sm:$0xf0] }
 0x128   : > { %v1617_v44 = vshll.u32 %v1499_v30, 16  ;;  %v1318_v45 = vshrl.u32 %v1195_v32, 16  ;;  %v1299_v43 = vsel %vm656_vm4, %v1290_v25, %v1298_v35  ;;  %v1611_v50 = vrot.slane %v1609_v39, 4  ;;  %v2048_v16 = vld [vmem:[#allocation2 + $0xc0] sm:$0xf0] }
 0x129   : > { %v793_v48 = vpack.c.bf16 %v644_v36, %v643_v33  ;;  %v792_v49 = vpack.c.bf16 %v642_v38, %v641_v31  ;;  %1800 = vrot.lane.b32.xlu0 %v1299_v43, %s5352_s12  ;;  %v1616_v53 = vrot.slane %v1614_v42, 3  ;;  %v1321_v56 = vshll.u32 %v1195_v32, 16  ;;  %v5626_v20 = vld [vmem:[#allocation2 + $0x98] sm:$0xf]  ;;  %v5628_v21 = vld [vmem:[#allocation2 + $0xc8] sm:$0xf] }
 0x12a   : > { %v1619_v54 = vrot.slane %v1617_v44, 4  ;;  %v1320_v55 = vrot.slane %v1318_v45, 3  ;;  %v1612_v60 = vor.u32 %v1611_v50, %v1608_v41  ;;  %v1326_v62 = vshrl.u32 %v1196_v40, 16  ;;  %v5639_v30 = vld [vmem:[#allocation2 + $0xc8] sm:$0xf] }
 0x12b   : > { %v825_v58 = vrot.slane %v793_v48, 4  ;;  %v824_v59 = vrot.slane %v792_v49, 4  ;;  %v1323_v1 = vrot.slane %v1321_v56, 4  ;;  %v1329_v63 = vshll.u32 %v1196_v40, 16  ;;  %v1197_v41 = vld [vmem:[#allocation2 + $0x80] sm:$0xf8] }
 0x12c   : > { %v1620_v0 = vor.u32 %v1619_v54, %v1616_v53  ;;  %v2205_v3 = vrot.slane %v2141_v51, 4  ;;  %v1328_v5 = vrot.slane %v1326_v62, 3  ;;  %v2206_v7 = vrot.slane %v5604_v37, 4  ;;  %v2142_v29 = vld [vmem:[#allocation2 + $0xb0] sm:$0xf0] }
 0x12d   : > { %873 = vst.msk [vmem:[#allocation2 + $0xe0] sm:$0xf0] %vm845_vm12, %v825_v58  ;;  %871 = vst.msk [vmem:[#allocation2 + $0xd0] sm:$0xf0] %vm845_vm12, %v824_v59  ;;  %v2112_v8 = vrot.slane %v2046_v57, 4  ;;  %v2113_v9 = vrot.slane %v5607_v52, 4  ;;  %v1324_v12 = vor.u32 %v1323_v1, %v1320_v55  ;;  %v611_v14 = vadd.f32 %v5586_v6, %v5512_v2 }
 0x12e   : > { %874 = vst.msk [vmem:[#allocation2 + $0xe8] sm:$0xf] %vm847_vm13, %v825_v58  ;;  %872 = vst.msk [vmem:[#allocation2 + $0xd8] sm:$0xf] %vm847_vm13, %v824_v59  ;;  %v1621_v10 = vsel %vm656_vm4, %v1612_v60, %v1620_v0  ;;  %v1331_v13 = vrot.slane %v1329_v63, 4  ;;  %v603_v17 = vadd.f32 %v5512_v2, %v5588_v11  ;;  %v614_v19 = vadd.f32 %v5591_v18, %v5512_v2 }
 0x12f   : > { %1834 = vrot.lane.b32.xlu1 %v1621_v10, %s5351_s9  ;;  %v1776_v23 = vshrl.u32 %v5610_v4, 16  ;;  %v5633_v26 = vrot.slane %v1787_v47, 4  ;;  %v2207_v27 = vsel %vm1988_vm9, %v2205_v3, %v2206_v7  ;;  %v2114_v28 = vsel %vm1988_vm9, %v2112_v8, %v2113_v9  ;;  %v2143_v18 = vld [vmem:[#allocation2 + $0xc0] sm:$0xf0]  ;;  %v5641_v32 = vld [vmem:[#allocation2 + $0xb8] sm:$0xf] }
 0x130   : > { %v1332_v6 = vor.u32 %v1331_v13, %v1328_v5  ;;  %v606_v11 = vadd.f32 %v5512_v2, %v5596_v22  ;;  %v647_v25 = vmax.f32 %v611_v14, 0.0  ;;  %v648_v33 = vmax.f32 %v614_v19, 0.0  ;;  %v5653_v51 = vld [vmem:[#allocation2 + $0xb8] sm:$0xf]  ;;  %v2047_v53 = vld [vmem:[#allocation2 + $0xb0] sm:$0xf0] }
 0x131   : > { %v2109_v31 = vrot.slane %v2045_v15, 4  ;;  %v2118_v34 = vrot.slane %v2048_v16, 4  ;;  %v645_v35 = vmax.f32 %v603_v17, 0.0  ;;  %v2119_v38 = vrot.slane %v5628_v21, 4  ;;  %v1198_v55 = vld [vmem:[#allocation2 + $0x88] sm:$0xf] }
 0x132   : > { %v1333_v47 = vsel %vm656_vm4, %v1324_v12, %v1332_v6  ;;  %v646_v36 = vmax.f32 %v606_v11, 0.0  ;;  %v795_v2 = vpack.c.bf16 %v648_v33, %v647_v25  ;;  %v2110_v22 = vrot.slane %v5626_v20, 4  ;;  %v1500_v1 = vld [vmem:[#allocation2 + $0x80] sm:$0xf8]  ;;  %v1501_v10 = vld [vmem:[#allocation2 + $0x88] sm:$0xf] }
 0x133   : > { %1804 = vrot.lane.b32.xlu0 %v1333_v47, %s5352_s12  ;;  %2277 = vrot.lane.b32.xlu1 %v2207_v27, %s5351_s9  ;;  %v2211_v39 = vrot.slane %v2143_v18, 4  ;;  %v2212_v40 = vrot.slane %v5639_v30, 4  ;;  %v2120_v44 = vsel %vm1988_vm9, %v2118_v34, %v2119_v38  ;;  %v2208_v45 = vrot.slane %v2142_v29, 4 }
 0x134   : > { %v794_v42 = vpack.c.bf16 %v646_v36, %v645_v35  ;;  %v2209_v43 = vrot.slane %v5641_v32, 4  ;;  %v2050_v49 = vld [vmem:[#allocation2 + $0xe0] sm:$0xf0]  ;;  %v827_v50 = vrot.slane %v795_v2, 4  ;;  %v2111_v60 = vsel %vm1988_vm9, %v2109_v31, %v2110_v22  ;;  %v2144_v62 = vld [vmem:[#allocation2 + $0xd0] sm:$0xf0] }
 0x135   : > { %v5651_v48 = vld [vmem:[#allocation2 + $0xe8] sm:$0xf]  ;;  %v2124_v54 = vrot.slane %v2050_v49, 4  ;;  %v2145_v59 = vld [vmem:[#allocation2 + $0xe0] sm:$0xf0]  ;;  %v1335_v0 = vshrl.u32 %v1197_v41, 16  ;;  %v2213_v3 = vsel %vm1988_vm9, %v2211_v39, %v2212_v40 }
 0x136   : > { %v826_v56 = vrot.slane %v794_v42, 4  ;;  %v2125_v57 = vrot.slane %v5651_v48, 4  ;;  %v5656_v58 = vld [vmem:[#allocation2 + $0xe8] sm:$0xf]  ;;  %877 = vst.msk [vmem:[#allocation2 + $0x100] sm:$0xf0] %vm845_vm12, %v827_v50  ;;  %v2210_v5 = vsel %vm1988_vm9, %v2208_v45, %v2209_v43 }
 0x137   : > { %2247 = vrot.lane.b32.xlu0 %v2114_v28, %s5352_s12  ;;  %878 = vst.msk [vmem:[#allocation2 + $0x108] sm:$0xf] %vm847_vm13, %v827_v50  ;;  %2251 = vrot.lane.b32.xlu1 %v2120_v44, %s5352_s12  ;;  %v1779_v63 = vshll.u32 %v5610_v4, 16  ;;  %v2115_v7 = vrot.slane %v2047_v53, 4  ;;  %v2116_v8 = vrot.slane %v5653_v51, 4  ;;  %v2217_v13 = vrot.slane %v2145_v59, 4 }
 0x138   : > { %875 = vst.msk [vmem:[#allocation2 + $0xf0] sm:$0xf0] %vm845_vm12, %v826_v56  ;;  %v5669_v9 = vld [vmem:[#allocation2 + $0xd8] sm:$0xf]  ;;  %v2126_v12 = vsel %vm1988_vm9, %v2124_v54, %v2125_v57  ;;  %v2218_v14 = vrot.slane %v5656_v58, 4  ;;  %v2214_v15 = vrot.slane %v2144_v62, 4 }
 0x139   : > { %876 = vst.msk [vmem:[#allocation2 + $0xf8] sm:$0xf] %vm847_vm13, %v826_v56  ;;  %v5673_v16 = vld [vmem:[#allocation2 + $0xd8] sm:$0xf]  ;;  %v2049_v17 = vld [vmem:[#allocation2 + $0xd0] sm:$0xf0]  ;;  %v2117_v43 = vsel %vm1988_vm9, %v2115_v7, %v2116_v8 }
 0x13a   : > { %v1337_v19 = vrot.slane %v1335_v0, 3  ;;  %v1338_v6 = vshll.u32 %v1197_v41, 16  ;;  %v1343_v27 = vshrl.u32 %v1198_v55, 16  ;;  %v1346_v28 = vshll.u32 %v1198_v55, 16  ;;  %v1502_v22 = vld [vmem:[#allocation2 + $0x90] sm:$0xf8] }
 0x13b   : > { %2245 = vrot.lane.b32.xlu0 %v2111_v60, %s5352_s12  ;;  %2279 = vrot.lane.b32.xlu1 %v2210_v5, %s5351_s9  ;;  %v2215_v11 = vrot.slane %v5669_v9, 4  ;;  %v1623_v18 = vshrl.u32 %v1500_v1, 16  ;;  %v1626_v25 = vshll.u32 %v1500_v1, 16  ;;  %v1631_v33 = vshrl.u32 %v1501_v10, 16  ;;  %v1503_v45 = vld [vmem:[#allocation2 + $0x98] sm:$0xf] }
 0x13c   : > { %v1340_v31 = vrot.slane %v1338_v6, 4  ;;  %v1345_v34 = vrot.slane %v1343_v27, 3  ;;  %v1348_v29 = vrot.slane %v1346_v28, 4  ;;  %v1634_v47 = vshll.u32 %v1501_v10, 16  ;;  %v1199_v55 = vld [vmem:[#allocation2 + $0x90] sm:$0xf8] }
 0x13d   : > { %v2121_v35 = vrot.slane %v2049_v17, 4  ;;  %v2122_v36 = vrot.slane %v5673_v16, 4  ;;  %v5679_v38 = vrot.slane %v1623_v18, 3  ;;  %v5681_v2 = vrot.slane %v1626_v25, 4  ;;  %v2052_v40 = vld [vmem:[#allocation2 + $0x100] sm:$0xf0] }
 0x13e   : > { %v5683_v39 = vld [vmem:[#allocation2 + $0x108] sm:$0xf]  ;;  %v1341_v42 = vor.u32 %v1340_v31, %v1337_v19  ;;  %v1349_v44 = vor.u32 %v1348_v29, %v1345_v34  ;;  %v2130_v49 = vrot.slane %v2052_v40, 4  ;;  %v2147_v53 = vld [vmem:[#allocation2 + $0x100] sm:$0xf0]  ;;  %v5691_v54 = vrot.slane %v1631_v33, 3 }
 0x13f   : > { %v5685_v41 = vld [vmem:[#allocation2 + $0x108] sm:$0xf]  ;;  %2281 = vrot.lane.b32.xlu0 %v2213_v3, %s5351_s9  ;;  %2255 = vrot.lane.b32.xlu1 %v2126_v12, %s5352_s12  ;;  %v2131_v50 = vrot.slane %v5683_v39, 4  ;;  %v2219_v56 = vsel %vm1988_vm9, %v2217_v13, %v2218_v14  ;;  %v2216_v57 = vsel %vm1988_vm9, %v2214_v15, %v2215_v11  ;;  %v2146_v60 = vld [vmem:[#allocation2 + $0xf0] sm:$0xf0]  ;;  %v5697_v62 = vrot.slane %v1634_v47, 4 }
 0x140   : > { %v5695_v59 = vld [vmem:[#allocation2 + $0xf8] sm:$0xf]  ;;  %v1640_v0 = vshrl.u32 %v1502_v22, 16  ;;  %v2123_v1 = vsel %vm1988_vm9, %v2121_v35, %v2122_v36  ;;  %v2223_v3 = vrot.slane %v2147_v53, 4  ;;  %v2224_v5 = vrot.slane %v5685_v41, 4 }
 0x141   : > { %v5701_v7 = vld [vmem:[#allocation2 + $0xf8] sm:$0xf]  ;;  %v2051_v8 = vld [vmem:[#allocation2 + $0xf0] sm:$0xf0]  ;;  %v1629_v10 = vor.u32 %v5681_v2, %v5679_v38  ;;  %v2132_v12 = vsel %vm1988_vm9, %v2130_v49, %v2131_v50  ;;  %v2220_v13 = vrot.slane %v2146_v60, 4  ;;  %v2221_v14 = vrot.slane %v5695_v59, 4 }
 0x142   : > { %v1350_v15 = vsel %vm656_vm4, %v1341_v42, %v1349_v44  ;;  %v2127_v17 = vrot.slane %v2051_v8, 4  ;;  %v2128_v19 = vrot.slane %v5701_v7, 4  ;;  %v1643_v6 = vshll.u32 %v1502_v22, 16  ;;  %v1201_v28 = vld [vmem:[#allocation2 + $0xa0] sm:$0xf8] }
 0x143   : > { %2249 = vrot.lane.b32.xlu0 %v2117_v43, %s5352_s12  ;;  %2283 = vrot.lane.b32.xlu1 %v2216_v57, %s5351_s9  ;;  %v1648_v27 = vshrl.u32 %v1503_v45, 16  ;;  %v1637_v11 = vor.u32 %v5697_v62, %v5691_v54  ;;  %v1642_v18 = vrot.slane %v1640_v0, 3  ;;  %v1651_v25 = vshll.u32 %v1503_v45, 16  ;;  %v1504_v40 = vld [vmem:[#allocation2 + $0xa0] sm:$0xf8] }
 0x144   : > { %v1352_v33 = vshrl.u32 %v1199_v55, 16  ;;  %v1645_v31 = vrot.slane %v1643_v6, 4  ;;  %v1355_v29 = vshll.u32 %v1199_v55, 16  ;;  %v1360_v47 = vshrl.u32 %v5626_v20, 16  ;;  %v1506_v60 = vld [vmem:[#allocation2 + $0xb0] sm:$0xf8] }
 0x145   : > { %v1650_v34 = vrot.slane %v1648_v27, 3  ;;  %v1653_v35 = vrot.slane %v1651_v25, 4  ;;  %v1363_v38 = vshll.u32 %v5626_v20, 16  ;;  %v1369_v2 = vshrl.u32 %v1201_v28, 16  ;;  %v1203_v25 = vld [vmem:[#allocation2 + $0xb0] sm:$0xf8] }
 0x146   : > { %v1354_v36 = vrot.slane %v1352_v33, 3  ;;  %v2222_v22 = vsel %vm1988_vm9, %v2220_v13, %v2221_v14  ;;  %v1357_v42 = vrot.slane %v1355_v29, 4  ;;  %v1362_v44 = vrot.slane %v1360_v47, 3 }
 0x147   : > { %2285 = vrot.lane.b32.xlu0 %v2219_v56, %s5351_s9  ;;  %2259 = vrot.lane.b32.xlu1 %v2132_v12, %s5352_s12  ;;  %v1372_v45 = vshll.u32 %v1201_v28, 16  ;;  %v1646_v43 = vor.u32 %v1645_v31, %v1642_v18  ;;  %v1654_v49 = vor.u32 %v1653_v35, %v1650_v34  ;;  %v1365_v50 = vrot.slane %v1363_v38, 4 }
 0x148   : > { %v1377_v53 = vshrl.u32 %v5607_v52, 16  ;;  %v1358_v54 = vor.u32 %v1357_v42, %v1354_v36  ;;  %v1371_v55 = vrot.slane %v1369_v2, 3  ;;  %v1380_v20 = vshll.u32 %v5607_v52, 16 }
 0x149   : > { %v1657_v57 = vshrl.u32 %v1504_v40, 16  ;;  %v1366_v62 = vor.u32 %v1365_v50, %v1362_v44  ;;  %v1374_v56 = vrot.slane %v1372_v45, 4  ;;  %v1660_v8 = vshll.u32 %v1504_v40, 16  ;;  %v1508_v44 = vld [vmem:[#allocation2 + $0xc0] sm:$0xf8] }
 0x14a   : > { %v1379_v0 = vrot.slane %v1377_v53, 3  ;;  %v2225_v12 = vsel %vm1988_vm9, %v2223_v3, %v2224_v5  ;;  %v1382_v13 = vrot.slane %v1380_v20, 4  ;;  %v1665_v6 = vshrl.u32 %v5604_v37, 16 }
 0x14b   : > { %2253 = vrot.lane.b32.xlu0 %v2123_v1, %s5352_s12  ;;  %2287 = vrot.lane.b32.xlu1 %v2222_v22, %s5351_s9  ;;  %v5723_v14 = vrot.slane %v1657_v57, 3  ;;  %v2129_v27 = vsel %vm1988_vm9, %v2127_v17, %v2128_v19  ;;  %v5727_v52 = vrot.slane %v1660_v8, 4  ;;  %v1668_v28 = vshll.u32 %v5604_v37, 16  ;;  %v1205_v17 = vld [vmem:[#allocation2 + $0xc0] sm:$0xf8] }
 0x14c   : > { %v1674_v18 = vshrl.u32 %v1506_v60, 16  ;;  %v1638_v33 = vsel %vm656_vm4, %v1629_v10, %v1637_v11  ;;  %v1655_v1 = vsel %vm656_vm4, %v1646_v43, %v1654_v49  ;;  %v1677_v3 = vshll.u32 %v1506_v60, 16 }
 0x14d   : > { %v1682_v5 = vshrl.u32 %v5641_v32, 16  ;;  %v1367_v31 = vsel %vm656_vm4, %v1358_v54, %v1366_v62  ;;  %v1375_v34 = vor.u32 %v1374_v56, %v1371_v55  ;;  %v1383_v29 = vor.u32 %v1382_v13, %v1379_v0  ;;  %v1510_v62 = vld [vmem:[#allocation2 + $0xd0] sm:$0xf8] }
 0x14e   : > { %v1685_v47 = vshll.u32 %v5641_v32, 16  ;;  %v1663_v37 = vor.u32 %v5727_v52, %v5723_v14  ;;  %v1667_v10 = vrot.slane %v1665_v6, 3  ;;  %v1670_v19 = vrot.slane %v1668_v28, 4 }
 0x14f   : > { %2289 = vrot.lane.b32.xlu0 %v2225_v12, %s5351_s9  ;;  %1806 = vrot.lane.b32.xlu1 %v1350_v15, %s5352_s12  ;;  %v1386_v11 = vshrl.u32 %v1203_v25, 16  ;;  %v1676_v35 = vrot.slane %v1674_v18, 3  ;;  %v1679_v36 = vrot.slane %v1677_v3, 4  ;;  %v1389_v38 = vshll.u32 %v1203_v25, 16  ;;  %v1207_v25 = vld [vmem:[#allocation2 + $0xd0] sm:$0xf8] }
 0x150   : > { %v1394_v2 = vshrl.u32 %v5653_v51, 16  ;;  %v1684_v40 = vrot.slane %v1682_v5, 3  ;;  %v1687_v22 = vrot.slane %v1685_v47, 4  ;;  %v1397_v32 = vshll.u32 %v5653_v51, 16 }
 0x151   : > { %v1403_v42 = vshrl.u32 %v1205_v17, 16  ;;  %v1384_v45 = vsel %vm656_vm4, %v1375_v34, %v1383_v29  ;;  %v1388_v15 = vrot.slane %v1386_v11, 3  ;;  %v1391_v43 = vrot.slane %v1389_v38, 4 }
 0x152   : > { %v1396_v49 = vrot.slane %v1394_v2, 3  ;;  %v1399_v50 = vrot.slane %v1397_v32, 4  ;;  %v1406_v54 = vshll.u32 %v1205_v17, 16  ;;  %v1411_v55 = vshrl.u32 %v5628_v21, 16 }
 0x153   : > { %2257 = vrot.lane.b32.xlu0 %v2129_v27, %s5352_s12  ;;  %1838 = vrot.lane.b32.xlu1 %v1655_v1, %s5351_s9  ;;  %v1405_v53 = vrot.slane %v1403_v42, 3  ;;  %v1671_v20 = vor.u32 %v1670_v19, %v1667_v10  ;;  %v1680_v57 = vor.u32 %v1679_v36, %v1676_v35  ;;  %v1414_v51 = vshll.u32 %v5628_v21, 16  ;;  %v1209_v35 = vld [vmem:[#allocation2 + $0xe0] sm:$0xf8] }
 0x154   : > { %v1691_v60 = vshrl.u32 %v1508_v44, 16  ;;  %v1688_v56 = vor.u32 %v1687_v22, %v1684_v40  ;;  %v1408_v0 = vrot.slane %v1406_v54, 4  ;;  %v1413_v8 = vrot.slane %v1411_v55, 3  ;;  %v1512_v42 = vld [vmem:[#allocation2 + $0xe0] sm:$0xf8] }
 0x155   : > { %v1694_v12 = vshll.u32 %v1508_v44, 16  ;;  %v1392_v13 = vor.u32 %v1391_v43, %v1388_v15  ;;  %v1416_v14 = vrot.slane %v1414_v51, 4  ;;  %v1699_v6 = vshrl.u32 %v5639_v30, 16 }
 0x156   : > { %v1702_v27 = vshll.u32 %v5639_v30, 16  ;;  %v1400_v52 = vor.u32 %v1399_v50, %v1396_v49  ;;  %v1409_v28 = vor.u32 %v1408_v0, %v1405_v53  ;;  %v5750_v18 = vrot.slane %v1691_v60, 3 }
 0x157   : > { %1836 = vrot.lane.b32.xlu0 %v1638_v33, %s5351_s9  ;;  %1810 = vrot.lane.b32.xlu1 %v1384_v45, %s5352_s12  ;;  %v1708_v21 = vshrl.u32 %v1510_v62, 16  ;;  %v1417_v1 = vor.u32 %v1416_v14, %v1413_v8  ;;  %v5752_v3 = vrot.slane %v1694_v12, 4  ;;  %v5754_v5 = vrot.slane %v1699_v6, 3 }
 0x158   : > { %v1711_v34 = vshll.u32 %v1510_v62, 16  ;;  %v1704_v29 = vrot.slane %v1702_v27, 4  ;;  %v1716_v30 = vshrl.u32 %v5669_v9, 16  ;;  %v1719_v33 = vshll.u32 %v5669_v9, 16 }
 0x159   : > { %v1710_v47 = vrot.slane %v1708_v21, 3  ;;  %v1672_v17 = vsel %vm656_vm4, %v1663_v37, %v1671_v20  ;;  %v1689_v10 = vsel %vm656_vm4, %v1680_v57, %v1688_v56  ;;  %v1420_v11 = vshrl.u32 %v1207_v25, 16 }
 0x15a   : > { %v1713_v19 = vrot.slane %v1711_v34, 4  ;;  %v1718_v36 = vrot.slane %v1716_v30, 3  ;;  %v1721_v38 = vrot.slane %v1719_v33, 4  ;;  %v1423_v2 = vshll.u32 %v1207_v25, 16  ;;  %v3069_v25 = vld [vmem:[#allocation2 + $0x18] sm:$0x1f] }
 0x15b   : > { %1808 = vrot.lane.b32.xlu0 %v1367_v31, %s5352_s12  ;;  %1842 = vrot.lane.b32.xlu1 %v1689_v10, %s5351_s9  ;;  %v1428_v40 = vshrl.u32 %v5673_v16, 16  ;;  %v1401_v22 = vsel %vm656_vm4, %v1392_v13, %v1400_v52  ;;  %v1418_v9 = vsel %vm656_vm4, %v1409_v28, %v1417_v1  ;;  %v1697_v37 = vor.u32 %v5752_v3, %v5750_v18  ;;  %v5786_v30 = vld [vmem:[#allocation2 + $0x20] sm:$0xf0] }
 0x15c   : > { %v1431_v32 = vshll.u32 %v5673_v16, 16  ;;  %v1705_v44 = vor.u32 %v1704_v29, %v5754_v5  ;;  %v1714_v31 = vor.u32 %v1713_v19, %v1710_v47  ;;  %v1722_v45 = vor.u32 %v1721_v38, %v1718_v36  ;;  %v2133_v10 = vld [vmem:[#allocation2 + $0x20] sm:$0xf0]  ;;  %v3070_v36 = vld [vmem:[#allocation2 + $0x28] sm:$0x1f] }
 0x15d   : > { %v1437_v15 = vshrl.u32 %v1209_v35, 16  ;;  %v1422_v43 = vrot.slane %v1420_v11, 3  ;;  %v1440_v49 = vshll.u32 %v1209_v35, 16  ;;  %v1445_v50 = vshrl.u32 %v5651_v48, 16 }
 0x15e   : > { %v1448_v53 = vshll.u32 %v5651_v48, 16  ;;  %v1425_v54 = vrot.slane %v1423_v2, 4  ;;  %v1430_v55 = vrot.slane %v1428_v40, 3  ;;  %v1725_v16 = vshrl.u32 %v1512_v42, 16  ;;  %v2037_v48 = vld [vmem:[#allocation2 + $0x10] sm:$0xf0] }
 0x15f   : > { %1840 = vrot.lane.b32.xlu0 %v1672_v17, %s5351_s9  ;;  %1814 = vrot.lane.b32.xlu1 %v1418_v9, %s5352_s12  ;;  %v1439_v20 = vrot.slane %v1437_v15, 3  ;;  %v1433_v57 = vrot.slane %v1431_v32, 4  ;;  %v1442_v51 = vrot.slane %v1440_v49, 4  ;;  %v1447_v60 = vrot.slane %v1445_v50, 3  ;;  %v3357_v49 = vld [vmem:[#allocation2 + $0x28] sm:$0x1f] }
 0x160   : > { %v1450_v62 = vrot.slane %v1448_v53, 4  ;;  %v1723_v56 = vsel %vm656_vm4, %v1714_v31, %v1722_v45  ;;  %v1728_v0 = vshll.u32 %v1512_v42, 16  ;;  %v1733_v8 = vshrl.u32 %v5656_v58, 16  ;;  %v5297_v31 = vld [vmem:[#allocation2 + $0x28] sm:$0xf] }
 0x161   : > { %v1736_v12 = vshll.u32 %v5656_v58, 16  ;;  %v1443_v13 = vor.u32 %v1442_v51, %v1439_v20  ;;  %v1727_v6 = vrot.slane %v1725_v16, 3  ;;  %v1778_v27 = vrot.slane %v1776_v23, 3 }
 0x162   : > { %v1451_v14 = vor.u32 %v1450_v62, %v1447_v60  ;;  %v1730_v52 = vrot.slane %v1728_v0, 4  ;;  %v1735_v28 = vrot.slane %v1733_v8, 3  ;;  %v1781_v21 = vrot.slane %v1779_v63, 4  ;;  %v2134_v60 = vld [vmem:[#allocation2 + $0x30] sm:$0xf0] }
 0x163   : > { %1812 = vrot.lane.b32.xlu0 %v1401_v22, %s5352_s12  ;;  %1846 = vrot.lane.b32.xlu1 %v1723_v56, %s5351_s9  ;;  %v1738_v18 = vrot.slane %v1736_v12, 4  ;;  %v1426_v58 = vor.u32 %v1425_v54, %v1422_v43  ;;  %v1434_v1 = vor.u32 %v1433_v57, %v1430_v55  ;;  %v1790_v3 = vor.u32 %v5633_v26, %v5534_v46  ;;  %v5296_v26 = vld [vmem:[#allocation2 + $0x18] sm:$0xf]  ;;  %v5298_v56 = vld [vmem:[#allocation2 + $0x28] sm:$0xf] }
 0x164   : > { %v3086_v5 = vshrl.u32 %v2037_v48, 16  ;;  %v1706_v23 = vsel %vm656_vm4, %v1697_v37, %v1705_v44  ;;  %v1452_v34 = vsel %vm656_vm4, %v1443_v13, %v1451_v14  ;;  %v1782_v29 = vor.u32 %v1781_v21, %v1778_v27 }
 0x165   : > { %v3089_v47 = vshll.u32 %v2037_v48, 16  ;;  %v2085_v33 = vrot.slane %v2037_v48, 4  ;;  %v3094_v4 = vshrl.u32 %v3069_v25, 16  ;;  %v3097_v63 = vshll.u32 %v3069_v25, 16  ;;  %v3358_v48 = vld [vmem:[#allocation2 + $0x38] sm:$0x1f] }
 0x166   : > { %v3088_v17 = vrot.slane %v3086_v5, 4  ;;  %v1731_v19 = vor.u32 %v1730_v52, %v1727_v6  ;;  %v1739_v46 = vor.u32 %v1738_v18, %v1735_v28  ;;  %v2086_v11 = vrot.slane %v5296_v26, 4  ;;  %v2039_v25 = vld [vmem:[#allocation2 + $0x30] sm:$0xf0]  ;;  %v5300_v26 = vld [vmem:[#allocation2 + $0x38] sm:$0xf] }
 0x167   : > { %1844 = vrot.lane.b32.xlu0 %v1706_v23, %s5351_s9  ;;  %1818 = vrot.lane.b32.xlu1 %v1452_v34, %s5352_s12  ;;  %v3091_v35 = vrot.slane %v3089_v47, 5  ;;  %v1435_v38 = vsel %vm656_vm4, %v1426_v58, %v1434_v1  ;;  %v1791_v2 = vsel %vm656_vm4, %v1782_v29, %v1790_v3  ;;  %v3096_v40 = vrot.slane %v3094_v4, 4  ;;  %v5299_v23 = vld [vmem:[#allocation2 + $0x38] sm:$0xf] }
 0x168   : > { %v3099_v22 = vrot.slane %v3097_v63, 5  ;;  %v2181_v37 = vrot.slane %v2133_v10, 4  ;;  %v3103_v32 = vshrl.u32 %v5786_v30, 16  ;;  %v3106_v42 = vshll.u32 %v5786_v30, 16 }
 0x169   : > { %v3092_v9 = vor.u32 %v3091_v35, %v3088_v17  ;;  %v2182_v45 = vrot.slane %v5297_v31, 4  ;;  %v3111_v15 = vshrl.u32 %v3070_v36, 16  ;;  %v3114_v43 = vshll.u32 %v3070_v36, 16  ;;  %v3072_v31 = vld [vmem:[#allocation2 + $0x48] sm:$0x1f] }
 0x16a   : > { %v3100_v44 = vor.u32 %v3099_v22, %v3096_v40  ;;  %v1740_v50 = vsel %vm656_vm4, %v1731_v19, %v1739_v46  ;;  %v2087_v53 = vsel %vm1988_vm9, %v2085_v33, %v2086_v11  ;;  %v3105_v54 = vrot.slane %v3103_v32, 4  ;;  %v3071_v33 = vld [vmem:[#allocation2 + $0x38] sm:$0x1f]  ;;  %v2040_v22 = vld [vmem:[#allocation2 + $0x40] sm:$0xf0] }
 0x16b   : > { %1816 = vrot.lane.b32.xlu0 %v1435_v38, %s5352_s12  ;;  %1854 = vrot.lane.b32.xlu1 %v1791_v2, %s5351_s9  ;;  %v3374_v55 = vshrl.u32 %v2133_v10, 16  ;;  %v3108_v20 = vrot.slane %v3106_v42, 5  ;;  %v3113_v16 = vrot.slane %v3111_v15, 4  ;;  %v3116_v57 = vrot.slane %v3114_v43, 5 }
 0x16c   : > { %v3377_v51 = vshll.u32 %v2133_v10, 16  ;;  %v2088_v62 = vrot.slane %v5786_v30, 4  ;;  %v2089_v0 = vrot.slane %v5298_v56, 4  ;;  %v3382_v8 = vshrl.u32 %v3357_v49, 16  ;;  %v882_v56 = vld [vmem:[#allocation2 + $0x18] sm:$0xf] }
 0x16d   : > { %v3385_v12 = vshll.u32 %v3357_v49, 16  ;;  %v3101_v13 = vsel %vm2796_vm14, %v3092_v9, %v3100_v44  ;;  %v2183_v14 = vsel %vm1988_vm9, %v2181_v37, %v2182_v45  ;;  %v3376_v6 = vrot.slane %v3374_v55, 4  ;;  %v5807_v44 = vld [vmem:[#allocation2 + $0x40] sm:$0xf0]  ;;  %v5301_v55 = vld [vmem:[#allocation2 + $0x48] sm:$0xf] }
 0x16e   : > { %v3379_v27 = vrot.slane %v3377_v51, 5  ;;  %v3384_v52 = vrot.slane %v3382_v8, 4  ;;  %v3391_v18 = vshrl.u32 %v2134_v60, 16  ;;  %v3394_v21 = vshll.u32 %v2134_v60, 16 }
 0x16f   : > { %1848 = vrot.lane.b32.xlu0 %v1740_v50, %s5351_s9  ;;  %3645 = vrot.lane.b32.xlu1 %v3101_v13, %s5352_s12  ;;  %v3387_v28 = vrot.slane %v3385_v12, 5  ;;  %v3109_v58 = vor.u32 %v3108_v20, %v3105_v54  ;;  %v3117_v1 = vor.u32 %v3116_v57, %v3113_v16  ;;  %v2184_v3 = vrot.slane %v2134_v60, 4  ;;  %v881_v50 = vld [vmem:[#allocation2 + $0x10] sm:$0xf8]  ;;  %v718_v13 = vld [vmem:[#allocation2 + $0x100] sm:$0x8] }
 0x170   : > { %v3399_v5 = vshrl.u32 %v3358_v48, 16  ;;  %v2185_v34 = vrot.slane %v5299_v23, 4  ;;  %v3393_v29 = vrot.slane %v3391_v18, 4  ;;  %v3396_v47 = vrot.slane %v3394_v21, 5 }
 0x171   : > { %v3402_v30 = vshll.u32 %v3358_v48, 16  ;;  %v3380_v17 = vor.u32 %v3379_v27, %v3376_v6  ;;  %v3388_v4 = vor.u32 %v3387_v28, %v3384_v52  ;;  %v3120_v10 = vshrl.u32 %v2039_v25, 16 }
 0x172   : > { %v3401_v63 = vrot.slane %v3399_v5, 4  ;;  %v2091_v46 = vrot.slane %v2039_v25, 4  ;;  %v2092_v11 = vrot.slane %v5300_v26, 4  ;;  %v3123_v35 = vshll.u32 %v2039_v25, 16  ;;  %v715_v26 = vld [vmem:[#allocation2 + $0xf0] sm:$0x8] }
 0x173   : > { %2229 = vrot.lane.b32.xlu0 %v2087_v53, %s5352_s12  ;;  %2261 = vrot.lane.b32.xlu1 %v2183_v14, %s5351_s9  ;;  %v3404_v19 = vrot.slane %v3402_v30, 5  ;;  %v2090_v36 = vsel %vm1988_vm9, %v2088_v62, %v2089_v0  ;;  %v3397_v38 = vor.u32 %v3396_v47, %v3393_v29  ;;  %v3128_v2 = vshrl.u32 %v3071_v33, 16  ;;  %v5824_v47 = vpop.permute.xlu1 %2291 }
 0x174   : > { %v3131_v40 = vshll.u32 %v3071_v33, 16  ;;  %v3118_v9 = vsel %vm2796_vm14, %v3109_v58, %v3117_v1  ;;  %v3122_v32 = vrot.slane %v3120_v10, 4  ;;  %v3125_v42 = vrot.slane %v3123_v35, 5  ;;  %v5302_v58 = vld [vmem:[#allocation2 + $0x48] sm:$0xf] }
 0x175   : > { %v3405_v37 = vor.u32 %v3404_v19, %v3401_v63  ;;  %v3389_v45 = vsel %vm2796_vm14, %v3380_v17, %v3388_v4  ;;  %v2186_v15 = vsel %vm1988_vm9, %v2184_v3, %v2185_v34  ;;  %v3130_v43 = vrot.slane %v3128_v2, 4  ;;  %v670_v34 = vld [vmem:[#allocation2] sm:$0x8]  ;;  %v880_v4 = vld [vmem:[#allocation2 + $0x8] sm:$0xf] }
 0x176   : > { %v3133_v49 = vrot.slane %v3131_v40, 5  ;;  %v5814_v53 = vsel %vm1988_vm9, %v2091_v46, %v2092_v11  ;;  %v2094_v54 = vrot.slane %v2040_v22, 4  ;;  %v2095_v20 = vrot.slane %v5301_v55, 4 }
 0x177   : > { %2231 = vrot.lane.b32.xlu0 %v2090_v36, %s5352_s12  ;;  %3677 = vrot.lane.b32.xlu1 %v3389_v45, %s5351_s9  ;;  %v3137_v16 = vshrl.u32 %v2040_v22, 16  ;;  %v3406_v57 = vsel %vm2796_vm14, %v3397_v38, %v3405_v37  ;;  %v2187_v51 = vrot.slane %v5807_v44, 4  ;;  %v3140_v60 = vshll.u32 %v2040_v22, 16 }
 0x178   : > { %v3145_v62 = vshrl.u32 %v3072_v31, 16  ;;  %v3126_v0 = vor.u32 %v3125_v42, %v3122_v32  ;;  %v3134_v8 = vor.u32 %v3133_v49, %v3130_v43  ;;  %v3148_v12 = vshll.u32 %v3072_v31, 16  ;;  %v885_v42 = vld [vmem:[#allocation2 + $0x30] sm:$0xf8] }
 0x179   : > { %v929_v48 = vshrl.u32 %v881_v50, 16  ;;  %v3139_v14 = vrot.slane %v3137_v16, 4  ;;  %v3142_v6 = vrot.slane %v3140_v60, 5  ;;  %v932_v52 = vshll.u32 %v881_v50, 16 }
 0x17a   : > { %v3147_v27 = vrot.slane %v3145_v62, 4  ;;  %v3150_v28 = vrot.slane %v3148_v12, 5  ;;  %v937_v21 = vshrl.u32 %v882_v56, 16  ;;  %v940_v25 = vshll.u32 %v882_v56, 16  ;;  %v1795_v49 = vpop.permute.xlu1 %1794 }
 0x17b   : > { %3647 = vrot.lane.b32.xlu0 %v3118_v9, %s5352_s12  ;;  %3679 = vrot.lane.b32.xlu1 %v3406_v57, %s5351_s9  ;;  %v931_v18 = vrot.slane %v929_v48, 3  ;;  %v2188_v1 = vrot.slane %v5302_v58, 4  ;;  %v934_v3 = vrot.slane %v932_v52, 4  ;;  %v719_v5 = vsel %vm5459_vm8, 0, %v718_v13  ;;  %v5837_v9 = vpop.permute.xlu0 %1824 }
 0x17c   : > { %v1479_v23 = vshrl.u32 %v5683_v39, 16  ;;  %v3135_v29 = vsel %vm2796_vm14, %v3126_v0, %v3134_v8  ;;  %v939_v30 = vrot.slane %v937_v21, 3  ;;  %v942_v33 = vrot.slane %v940_v25, 4  ;;  %720 = vst [vmem:[#allocation2 + $0x100] sm:$0x8] %v719_v5 }
 0x17d   : > { %v1482_v17 = vshll.u32 %v5683_v39, 16  ;;  %v3143_v63 = vor.u32 %v3142_v6, %v3139_v14  ;;  %v3151_v10 = vor.u32 %v3150_v28, %v3147_v27  ;;  %v1767_v19 = vshrl.u32 %v5685_v41, 16 }
 0x17e   : > { %v1770_v46 = vshll.u32 %v5685_v41, 16  ;;  %v2096_v11 = vsel %vm1988_vm9, %v2094_v54, %v2095_v20  ;;  %v935_v35 = vor.u32 %v934_v3, %v931_v18  ;;  %v5832_v36 = vrot.slane %v1479_v23, 3 }
 0x17f   : > { %2263 = vrot.lane.b32.xlu0 %v2186_v15, %s5351_s9  ;;  %3649 = vrot.lane.b32.xlu1 %v3135_v29, %s5352_s12  ;;  %v671_v39 = vsel %vm5459_vm8, 0, %v670_v34  ;;  %v943_v38 = vor.u32 %v942_v33, %v939_v30  ;;  %v1484_v2 = vrot.slane %v1482_v17, 4  ;;  %v920_v40 = vshrl.u32 %v880_v4, 16  ;;  %v5863_v28 = vpop.permute.xlu0 %1792 }
 0x180   : > { %672 = vst [vmem:[#allocation2] sm:$0x8] %v671_v39  ;;  %v923_v22 = vshll.u32 %v880_v4, 16  ;;  %v2189_v41 = vsel %vm1988_vm9, %v2187_v51, %v2188_v1  ;;  %v716_v37 = vsel %vm5459_vm8, 0, %v715_v26  ;;  %v1750_v32 = vshrl.u32 %v5695_v59, 16 }
 0x181   : > { %v3152_v31 = vsel %vm2796_vm14, %v3143_v63, %v3151_v10  ;;  %v5843_v45 = vrot.slane %v1767_v19, 3  ;;  %v5845_v15 = vrot.slane %v1770_v46, 4  ;;  %v5847_v43 = vrot.slane %v920_v40, 3  ;;  %717 = vst [vmem:[#allocation2 + $0xf0] sm:$0x8] %v716_v37 }
 0x182   : > { %v5852_v24 = vrot.slane %v923_v22, 4  ;;  %v1753_v50 = vshll.u32 %v5695_v59, 16  ;;  %v1462_v54 = vshrl.u32 %v5701_v7, 16  ;;  %v1465_v55 = vshll.u32 %v5701_v7, 16  ;;  %v886_v1 = vld [vmem:[#allocation2 + $0x38] sm:$0xf] }
 0x183   : > { %2233 = vrot.lane.b32.xlu0 %v5814_v53, %s5352_s12  ;;  %2265 = vrot.lane.b32.xlu1 %v2189_v41, %s5351_s9  ;;  %v944_v20 = vsel %vm656_vm4, %v935_v35, %v943_v38  ;;  %v1213_v16 = vld [vmem:[#allocation2 + $0x100] sm:$0xf8]  ;;  %v1485_v57 = vor.u32 %v1484_v2, %v5832_v36  ;;  %v1752_v60 = vrot.slane %v1750_v32, 3  ;;  %v963_v62 = vshrl.u32 %v885_v42, 16  ;;  %v5869_v58 = vpop.permute.xlu1 %1798  ;;  %v3359_v2 = vld [vmem:[#allocation2 + $0x48] sm:$0x1f] }
 0x184   : > { %v1516_v51 = vld [vmem:[#allocation2 + $0x100] sm:$0xf8]  ;;  %v1471_v53 = vshrl.u32 %v1213_v16, 16  ;;  %v1474_v56 = vshll.u32 %v1213_v16, 16  ;;  %v5860_v12 = vsel %vm1856_vm15, %v944_v20, %v1795_v49  ;;  %v1755_v59 = vrot.slane %v1753_v50, 4 }
 0x185   : > { %v1759_v0 = vshrl.u32 %v1516_v51, 16  ;;  %v1762_v8 = vshll.u32 %v1516_v51, 16  ;;  %v1464_v48 = vrot.slane %v1462_v54, 3  ;;  %v1467_v13 = vrot.slane %v1465_v55, 4  ;;  %v5881_v49 = vld [vmem:[#allocation2 + $0x50] sm:$0xf0] }
 0x186   : > { %v1473_v7 = vrot.slane %v1471_v53, 3  ;;  %v1476_v14 = vrot.slane %v1474_v56, 4  ;;  %v1773_v18 = vor.u32 %v5845_v15, %v5843_v45  ;;  %v926_v25 = vor.u32 %v5852_v24, %v5847_v43  ;;  %v5304_v43 = vld [vmem:[#allocation2 + $0x58] sm:$0xf] }
 0x187   : > { %2235 = vrot.lane.b32.xlu0 %v2096_v11, %s5352_s12  ;;  %v1761_v6 = vrot.slane %v1759_v0, 3  ;;  %v1764_v27 = vrot.slane %v1762_v8, 4  ;;  %v879_v52 = vld [vmem:[#allocation2] sm:$0xf8]  ;;  %v966_v3 = vshll.u32 %v885_v42, 16  ;;  %v1756_v29 = vor.u32 %v1755_v59, %v1752_v60  ;;  %v5876_v32 = vpop.permute.xlu0 %1828 }
 0x188   : > { %v912_v21 = vshrl.u32 %v879_v52, 16  ;;  %v1477_v5 = vor.u32 %v1476_v14, %v1473_v7  ;;  %v915_v23 = vshll.u32 %v879_v52, 16  ;;  %v1514_v34 = vld [vmem:[#allocation2 + $0xf0] sm:$0xf8]  ;;  %v5871_v33 = vrot.slane %v963_v62, 3 }
 0x189   : > { %v1211_v30 = vld [vmem:[#allocation2 + $0xf0] sm:$0xf8]  ;;  %v1765_v17 = vor.u32 %v1764_v27, %v1761_v6  ;;  %v1742_v4 = vshrl.u32 %v1514_v34, 16  ;;  %v1745_v63 = vshll.u32 %v1514_v34, 16  ;;  %v1468_v10 = vor.u32 %v1467_v13, %v1464_v48  ;;  %v5303_v48 = vld [vmem:[#allocation2 + $0x58] sm:$0xf] }
 0x18a   : > { %v1486_v19 = vsel %vm656_vm4, %v1477_v5, %v1485_v57  ;;  %v1454_v46 = vshrl.u32 %v1211_v30, 16  ;;  %v1457_v26 = vshll.u32 %v1211_v30, 16  ;;  %v971_v11 = vshrl.u32 %v886_v1, 16  ;;  %v741_v7 = vld [vmem:[#allocation2 + $0x58] sm:$0x10] }
 0x18b   : > { %3651 = vrot.lane.b32.xlu0 %v3152_v31, %s5352_s12  ;;  %1822 = vrot.lane.b32.xlu1 %v1486_v19, %s5352_s12  ;;  %v914_v35 = vrot.slane %v912_v21, 3  ;;  %v1744_v36 = vrot.slane %v1742_v4, 3  ;;  %v1747_v39 = vrot.slane %v1745_v63, 4  ;;  %v968_v38 = vrot.slane %v966_v3, 4  ;;  %v1827_v50 = vpop.permute.xlu1 %1826  ;;  %v5896_v21 = vld [vmem:[#allocation2 + $0x20] sm:$0xf8] }
 0x18c   : > { %v917_v40 = vrot.slane %v915_v23, 4  ;;  %v1456_v22 = vrot.slane %v1454_v46, 3  ;;  %v1459_v41 = vrot.slane %v1457_v26, 4  ;;  %v974_v37 = vshll.u32 %v886_v1, 16  ;;  %v2041_v1 = vld [vmem:[#allocation2 + $0x50] sm:$0xf0] }
 0x18d   : > { %v1774_v42 = vsel %vm656_vm4, %v1765_v17, %v1773_v18  ;;  %v1748_v31 = vor.u32 %v1747_v39, %v1744_v36  ;;  %v3408_v45 = vshrl.u32 %v5807_v44, 16  ;;  %v3411_v15 = vshll.u32 %v5807_v44, 16  ;;  %v889_v23 = vld [vmem:[#allocation2 + $0x50] sm:$0xf8]  ;;  %v890_v30 = vld [vmem:[#allocation2 + $0x58] sm:$0xf] }
 0x18e   : > { %v1460_v54 = vor.u32 %v1459_v41, %v1456_v22  ;;  %v973_v55 = vrot.slane %v971_v11, 3  ;;  %v976_v20 = vrot.slane %v974_v37, 4  ;;  %v3416_v16 = vshrl.u32 %v3359_v2, 16  ;;  %v5894_v52 = vpop.permute.xlu0 %1796  ;;  %v884_v17 = vld [vmem:[#allocation2 + $0x28] sm:$0xf] }
 0x18f   : > { %1852 = vrot.lane.b32.xlu0 %v1774_v42, %s5351_s9  ;;  %v1757_v57 = vsel %vm656_vm4, %v1748_v31, %v1756_v29  ;;  %v3410_v51 = vrot.slane %v3408_v45, 4  ;;  %v3413_v60 = vrot.slane %v3411_v15, 5  ;;  %v3419_v62 = vshll.u32 %v3359_v2, 16 }
 0x190   : > { %v918_v53 = vor.u32 %v917_v40, %v914_v35  ;;  %1850 = vrot.lane.b32.xlu1 %v1757_v57, %s5351_s9  ;;  %v1469_v56 = vsel %vm656_vm4, %v1460_v54, %v1468_v10  ;;  %v3418_v44 = vrot.slane %v3416_v16, 4  ;;  %v2190_v0 = vrot.slane %v5881_v49, 4 }
 0x191   : > { %v3414_v8 = vor.u32 %v3413_v60, %v3410_v51  ;;  %v3421_v59 = vrot.slane %v3419_v62, 5  ;;  %v2191_v13 = vrot.slane %v5303_v48, 4  ;;  %v969_v14 = vor.u32 %v968_v38, %v5871_v33  ;;  %v5921_v38 = vld [vmem:[#allocation2 + $0x60] sm:$0xf0]  ;;  %v5305_v51 = vld [vmem:[#allocation2 + $0x68] sm:$0xf] }
 0x192   : > { %v977_v6 = vor.u32 %v976_v20, %v973_v55  ;;  %v5892_v27 = vsel %vm1905_vm0, %v5860_v12, %v1827_v50  ;;  %v5898_v3 = vpop.permute.xlu1 %1802  ;;  %v742_v5 = vsel %vm5501_vm11, 0, %v741_v7  ;;  %v5906_v34 = vsel %vm656_vm4, %v918_v53, %v926_v25 }
 0x193   : > { %1820 = vrot.lane.b32.xlu0 %v1469_v56, %s5352_s12  ;;  %v3422_v18 = vor.u32 %v3421_v59, %v3418_v44  ;;  %v2192_v29 = vsel %vm1988_vm9, %v2190_v0, %v2191_v13  ;;  %743 = vst [vmem:[#allocation2 + $0x58] sm:$0x10] %v742_v5  ;;  %v946_v4 = vshrl.u32 %v5896_v21, 16  ;;  %v2097_v63 = vrot.slane %v2041_v1, 4 }
 0x194   : > { %v978_v33 = vsel %vm656_vm4, %v969_v14, %v977_v6  ;;  %v2098_v24 = vrot.slane %v5304_v43, 4  ;;  %v3425_v25 = vshrl.u32 %v5881_v49, 16  ;;  %v3428_v10 = vshll.u32 %v5881_v49, 16  ;;  %v888_v14 = vld [vmem:[#allocation2 + $0x48] sm:$0xf] }
 0x195   : > { %v3423_v12 = vsel %vm2796_vm14, %v3414_v8, %v3422_v18  ;;  %v997_v19 = vshrl.u32 %v889_v23, 16  ;;  %v1000_v46 = vshll.u32 %v889_v23, 16  ;;  %v1868_v26 = vsel %vm1856_vm15, %v978_v33, %v5869_v58  ;;  %v887_v8 = vld [vmem:[#allocation2 + $0x40] sm:$0xf8]  ;;  %v744_v23 = vld [vmem:[#allocation2 + $0x68] sm:$0x10] }
 0x196   : > { %3681 = vrot.lane.b32.xlu1 %v3423_v12, %s5351_s9  ;;  %v949_v11 = vshll.u32 %v5896_v21, 16  ;;  %v1005_v35 = vshrl.u32 %v890_v30, 16  ;;  %v1008_v36 = vshll.u32 %v890_v30, 16  ;;  %v5919_v39 = vpop.permute.xlu0 %1832  ;;  %v954_v2 = vshrl.u32 %v884_v17, 16 }
 0x197   : > { %2267 = vrot.lane.b32.xlu0 %v2192_v29, %s5351_s9  ;;  %v2099_v40 = vsel %vm1988_vm9, %v2097_v63, %v2098_v24  ;;  %v999_v22 = vrot.slane %v997_v19, 3  ;;  %v1002_v41 = vrot.slane %v1000_v46, 4  ;;  %v1831_v37 = vpop.permute.xlu1 %1830  ;;  %v3154_v45 = vshrl.u32 %v2041_v1, 16  ;;  %v2137_v46 = vld [vmem:[#allocation2 + $0x60] sm:$0xf0] }
 0x198   : > { %v1007_v42 = vrot.slane %v1005_v35, 3  ;;  %v1010_v31 = vrot.slane %v1008_v36, 4  ;;  %v3157_v58 = vshll.u32 %v2041_v1, 16  ;;  %v957_v15 = vshll.u32 %v884_v17, 16 }
 0x199   : > { %v3427_v49 = vrot.slane %v3425_v25, 4  ;;  %v3430_v50 = vrot.slane %v3428_v10, 5  ;;  %v2100_v54 = vrot.slane %v5921_v38, 4  ;;  %v1003_v20 = vor.u32 %v1002_v41, %v999_v22 }
 0x19a   : > { %v3360_v55 = vld [vmem:[#allocation2 + $0x58] sm:$0x1f]  ;;  %v1011_v16 = vor.u32 %v1010_v31, %v1007_v42  ;;  %v2101_v60 = vrot.slane %v5305_v51, 4  ;;  %v5927_v62 = vsel %vm1905_vm0, %v1868_v26, %v1831_v37  ;;  %v948_v59 = vrot.slane %v946_v4, 3 }
 0x19b   : > { %2237 = vrot.lane.b32.xlu0 %v2099_v40, %s5352_s12  ;;  %v3073_v57 = vld [vmem:[#allocation2 + $0x58] sm:$0x1f]  ;;  %v3433_v53 = vshrl.u32 %v3360_v55, 16  ;;  %v3436_v56 = vshll.u32 %v3360_v55, 16  ;;  %v3156_v48 = vrot.slane %v3154_v45, 4  ;;  %v3159_v13 = vrot.slane %v3157_v58, 5  ;;  %v5930_v6 = vpop.permute.xlu0 %1800 }
 0x19c   : > { %v3162_v44 = vshrl.u32 %v3073_v57, 16  ;;  %v3165_v0 = vshll.u32 %v3073_v57, 16  ;;  %v2102_v7 = vsel %vm1988_vm9, %v2100_v54, %v2101_v60  ;;  %v3431_v18 = vor.u32 %v3430_v50, %v3427_v49  ;;  %v5960_v55 = vld [vmem:[#allocation2 + $0x60] sm:$0xf8] }
 0x19d   : > { %v3435_v21 = vrot.slane %v3433_v53, 4  ;;  %v3438_v1 = vrot.slane %v3436_v56, 5  ;;  %v951_v12 = vrot.slane %v949_v11, 4  ;;  %v956_v29 = vrot.slane %v954_v2, 3  ;;  %v2138_v56 = vld [vmem:[#allocation2 + $0x70] sm:$0xf0] }
 0x19e   : > { %v3164_v5 = vrot.slane %v3162_v44, 4  ;;  %v959_v30 = vrot.slane %v957_v15, 4  ;;  %v3167_v33 = vrot.slane %v3165_v0, 5  ;;  %v1012_v63 = vsel %vm656_vm4, %v1003_v20, %v1011_v16  ;;  %v5306_v15 = vld [vmem:[#allocation2 + $0x68] sm:$0xf] }
 0x19f   : > { %2239 = vrot.lane.b32.xlu0 %v2102_v7, %s5352_s12  ;;  %v3439_v4 = vor.u32 %v3438_v1, %v3435_v21  ;;  %v980_v43 = vshrl.u32 %v887_v8, 16  ;;  %v983_v24 = vshll.u32 %v887_v8, 16  ;;  %v3160_v25 = vor.u32 %v3159_v13, %v3156_v48  ;;  %v5976_v48 = vld [vmem:[#allocation2 + $0x98] sm:$0xf]  ;;  %v1949_v13 = vld [vmem:[#allocation2 + $0x90] sm:$0xf0] }
 0x1a0   : > { %v988_v10 = vshrl.u32 %v888_v14, 16  ;;  %v991_v19 = vshll.u32 %v888_v14, 16  ;;  %v745_v26 = vsel %vm5501_vm11, 0, %v744_v23  ;;  %v1874_v11 = vsel %vm1856_vm15, %v1012_v63, %v5898_v3 }
 0x1a1   : > { %v1835_v17 = vpop.permute.xlu1 %1834  ;;  %v3440_v35 = vsel %vm2796_vm14, %v3431_v18, %v3439_v4  ;;  %v3168_v36 = vor.u32 %v3167_v33, %v3164_v5  ;;  %746 = vst [vmem:[#allocation2 + $0x68] sm:$0x10] %v745_v26  ;;  %v3171_v2 = vshrl.u32 %v5921_v38, 16  ;;  %v952_v40 = vor.u32 %v951_v12, %v948_v59  ;;  %v5980_v18 = vld [vmem:[#allocation2 + $0x68] sm:$0xf] }
 0x1a2   : > { %v960_v22 = vor.u32 %v959_v30, %v956_v29  ;;  %3683 = vrot.lane.b32.xlu1 %v3440_v35, %s5351_s9  ;;  %v3174_v41 = vshll.u32 %v5921_v38, 16  ;;  %v5943_v37 = vsel %vm1905_vm0, %v1874_v11, %v1835_v17  ;;  %v5949_v45 = vrot.slane %v980_v43, 3  ;;  %v747_v17 = vld [vmem:[#allocation2 + $0x78] sm:$0x10]  ;;  %v5307_v43 = vld [vmem:[#allocation2 + $0x78] sm:$0xf] }
 0x1a3   : > { %v5951_v3 = vrot.slane %v983_v24, 4  ;;  %v2193_v58 = vrot.slane %v2137_v46, 4  ;;  %v2194_v49 = vrot.slane %v5306_v15, 4  ;;  %v1859_v50 = vsel %vm1856_vm15, %v5906_v34, %v5863_v28 }
 0x1a4   : > { %v5956_v54 = vrot.slane %v988_v10, 3  ;;  %v5958_v38 = vrot.slane %v991_v19, 4  ;;  %v3442_v20 = vshrl.u32 %v2137_v46, 16  ;;  %v3169_v16 = vsel %vm2796_vm14, %v3160_v25, %v3168_v36  ;;  %v2043_v10 = vld [vmem:[#allocation2 + $0x70] sm:$0xf0] }
 0x1a5   : > { %v5945_v42 = vpop.permute.xlu0 %1804  ;;  %v5947_v31 = vpop.permute.xlu1 %2277  ;;  %v3173_v57 = vrot.slane %v3171_v2, 4  ;;  %v3176_v51 = vrot.slane %v3174_v41, 5  ;;  %v3445_v60 = vshll.u32 %v2137_v46, 16  ;;  %v5964_v53 = vsel %vm656_vm4, %v952_v40, %v960_v22  ;;  %v1948_v36 = vld [vmem:[#allocation2 + $0x80] sm:$0xf0] }
 0x1a6   : > { %3653 = vrot.lane.b32.xlu1 %v3169_v16, %s5352_s12  ;;  %v2195_v0 = vsel %vm1988_vm9, %v2193_v58, %v2194_v49  ;;  %v1014_v8 = vshrl.u32 %v5960_v55, 16  ;;  %v3444_v1 = vrot.slane %v3442_v20, 4  ;;  %v5984_v23 = vsel %vm1905_vm0, %v1859_v50, %v5837_v9  ;;  %v5992_v58 = vld [vmem:[#allocation2 + $0x88] sm:$0xf] }
 0x1a7   : > { %v3447_v5 = vrot.slane %v3445_v60, 5  ;;  %v3177_v12 = vor.u32 %v3176_v51, %v3173_v57  ;;  %v2196_v63 = vrot.slane %v2138_v56, 4  ;;  %v2197_v24 = vrot.slane %v5307_v43, 4  ;;  %v5308_v51 = vld [vmem:[#allocation2 + $0x78] sm:$0xf] }
 0x1a8   : > { %v3074_v14 = vld [vmem:[#allocation2 + $0x68] sm:$0x1f]  ;;  %v2016_v25 = vrot.slane %v1949_v13, 4  ;;  %v2017_v11 = vrot.slane %v5976_v48, 4  ;;  %v748_v22 = vsel %vm5501_vm11, 0, %v747_v17  ;;  %v3459_v41 = vshrl.u32 %v2138_v56, 16 }
 0x1a9   : > { %v5967_v44 = vpop.permute.xlu0 %2247  ;;  %v5969_v28 = vpop.permute.xlu1 %2251  ;;  %v3361_v21 = vld [vmem:[#allocation2 + $0x68] sm:$0x1f]  ;;  %v3179_v29 = vshrl.u32 %v3074_v14, 16  ;;  %v3182_v30 = vshll.u32 %v3074_v14, 16  ;;  %v3448_v2 = vor.u32 %v3447_v5, %v3444_v1  ;;  %749 = vst [vmem:[#allocation2 + $0x78] sm:$0x10] %v748_v22  ;;  %v2198_v57 = vsel %vm1988_vm9, %v2196_v63, %v2197_v24 }
 0x1aa   : > { %v3450_v33 = vshrl.u32 %v3361_v21, 16  ;;  %2269 = vrot.lane.b32.xlu1 %v2195_v0, %s5351_s9  ;;  %v3453_v4 = vshll.u32 %v3361_v21, 16  ;;  %v3462_v50 = vshll.u32 %v2138_v56, 16  ;;  %v2103_v20 = vrot.slane %v2043_v10, 4  ;;  %v5996_v13 = vld [vmem:[#allocation2 + $0x80] sm:$0xf0] }
 0x1ab   : > { %v3181_v26 = vrot.slane %v3179_v29, 4  ;;  %v3184_v35 = vrot.slane %v3182_v30, 5  ;;  %v2104_v60 = vrot.slane %v5308_v51, 4  ;;  %v2013_v0 = vrot.slane %v1948_v36, 4  ;;  %v6005_v30 = vld [vmem:[#allocation2 + $0xb8] sm:$0xf] }
 0x1ac   : > { %v3452_v9 = vrot.slane %v3450_v33, 4  ;;  %v3455_v40 = vrot.slane %v3453_v4, 5  ;;  %v2018_v5 = vsel %vm1988_vm9, %v2016_v25, %v2017_v11  ;;  %v2014_v29 = vrot.slane %v5992_v58, 4  ;;  %v1951_v33 = vld [vmem:[#allocation2 + $0xb0] sm:$0xf0] }
 0x1ad   : > { %v2246_v19 = vpop.permute.xlu0 %2245  ;;  %v5987_v46 = vpop.permute.xlu1 %2279  ;;  %v3185_v15 = vor.u32 %v3184_v35, %v3181_v26  ;;  %v3188_v56 = vshrl.u32 %v2043_v10, 16  ;;  %v6009_v4 = vrot.slane %v3459_v41, 4  ;;  %v6011_v63 = vrot.slane %v3462_v50, 5 }
 0x1ae   : > { %v3456_v16 = vor.u32 %v3455_v40, %v3452_v9  ;;  %v3191_v43 = vshll.u32 %v2043_v10, 16  ;;  %v2322_v24 = vsel %vm1856_vm15, %v2018_v5, %v5967_v44  ;;  %v2105_v25 = vsel %vm1988_vm9, %v2103_v20, %v2104_v60  ;;  %v6023_v9 = vld [vmem:[#allocation2 + $0x80] sm:$0xf0]  ;;  %v750_v40 = vld [vmem:[#allocation2 + $0x88] sm:$0x10] }
 0x1af   : > { %v3186_v1 = vsel %vm2796_vm14, %v3177_v12, %v3185_v15  ;;  %v5293_v12 = vld [vmem:[%s6864_s3 + $0x8] sm:$0x3f]   ;;  %v2015_v26 = vsel %vm1988_vm9, %v2013_v0, %v2014_v29  ;;  %v6021_v35 = vrot.slane %v3188_v56, 4  ;;  %v2022_v36 = vrot.slane %v1951_v33, 4 }
 0x1b0   : > { %3655 = vrot.lane.b32.xlu0 %v3186_v1, %s5352_s12  ;;  %v3457_v17 = vsel %vm2796_vm14, %v3448_v2, %v3456_v16  ;;  %v2319_v11 = vsel %vm1856_vm15, %v2015_v26, %v2246_v19  ;;  %v6026_v10 = vrot.slane %v3191_v43, 5  ;;  %v2023_v2 = vrot.slane %v6005_v30, 4  ;;  %v5294_v19 = vld [vmem:[%s6864_s3] sm:$0x3f]   ;;  %v3362_v50 = vld [vmem:[#allocation2 + $0x78] sm:$0x1f]  ;;  %5262 = vmatprep.subr.msk.bf16.mxu1 %vm2414_vm2, %v5293_v12 }
 0x1b1   : > { %v5998_v14 = vpop.permute.xlu0 %2281  ;;  %v6000_v21 = vpop.permute.xlu1 %2255  ;;  %3685 = vrot.lane.b32.xlu1 %v3457_v17, %s5351_s9  ;;  %v2106_v44 = vrot.slane %v5996_v13, 4  ;;  %v2358_v15 = vsel %vm1905_vm0, %v2319_v11, %v5947_v31  ;;  %v3465_v20 = vor.u32 %v6011_v63, %v6009_v4  ;;  %v3075_v16 = vld [vmem:[#allocation2 + $0x78] sm:$0x1f]  ;;  %v5309_v60 = vld [vmem:[#allocation2 + $0x88] sm:$0xf]  ;;  %v2416_v31 = vsel %vm2414_vm2, %v5293_v12, 0  ;;  %5261 = vmatprep.subr.msk.bf16.mxu0 %vm2414_vm2, %v5293_v12 }
 0x1b2   : > { %v3194_v51 = vor.u32 %v6026_v10, %v6021_v35  ;;  %v2107_v0 = vrot.slane %v5309_v60, 4  ;;  %5077 = vmatprep.mubr.msk.bf16.mxu1 %vm2381_vm1, %v2358_v15  ;;  %v3467_v1 = vshrl.u32 %v3362_v50, 16  ;;  %v3470_v5 = vshll.u32 %v3362_v50, 16  ;;  %5196 = vmatpush3.bf16.msra.mxu1 %v2416_v31  ;;  %v1950_v43 = vld [vmem:[#allocation2 + $0xa0] sm:$0xf0] }
 0x1b3   : > { %v3196_v29 = vshrl.u32 %v3075_v16, 16  ;;  %v3199_v56 = vshll.u32 %v3075_v16, 16  ;;  %v2024_v33 = vsel %vm1988_vm9, %v2022_v36, %v2023_v2  ;;  %v2199_v17 = vrot.slane %v6023_v9, 4  ;;  %5060 = vmatpush3.bf16.msra.mxu0 %v2416_v31  ;;  %5263 = vmatprep.subr.msk.bf16.mxu1 %vm2414_vm2, %v5294_v19  ;;  %v5310_v36 = vld [vmem:[#allocation2 + $0x88] sm:$0xf] }
 0x1b4   : > { %2271 = vrot.lane.b32.xlu0 %v2198_v57, %s5351_s9  ;;  %v6047_v57 = vld [vmem:[#allocation2 + $0xa8] sm:$0xf]  ;;  %v751_v4 = vsel %vm5501_vm11, 0, %v750_v40  ;;  %v3205_v63 = vshrl.u32 %v5996_v13, 16  ;;  %v3469_v11 = vrot.slane %v3467_v1, 4  ;;  %v3472_v10 = vrot.slane %v3470_v5, 5 }
 0x1b5   : > { %v6029_v22 = vpop.permute.xlu0 %2249  ;;  %v6031_v41 = vpop.permute.xlu1 %2283  ;;  %v3198_v15 = vrot.slane %v3196_v29, 4  ;;  %v3201_v12 = vrot.slane %v3199_v56, 5  ;;  %752 = vst [vmem:[#allocation2 + $0x88] sm:$0x10] %v751_v4  ;;  %v2200_v2 = vrot.slane %v5310_v36, 4  ;;  %v3208_v50 = vshll.u32 %v5996_v13, 16 }
 0x1b6   : > { %v6061_v40 = vrot.slane %v3205_v63, 4  ;;  %v2360_v16 = vsel %vm1905_vm0, %v2322_v24, %v5987_v46  ;;  %v3473_v60 = vor.u32 %v3472_v10, %v3469_v11  ;;  %v2019_v1 = vrot.slane %v1950_v43, 4  ;;  %v6078_v24 = vld [vmem:[#allocation2 + $0x90] sm:$0xf0] }
 0x1b7   : > { %v3202_v31 = vor.u32 %v3201_v12, %v3198_v15  ;;  %v2020_v5 = vrot.slane %v6047_v57, 4  ;;  %5078 = vmatmul.mubr.msk.bf16.vlgmr.msra.gmra.mrb[0].mxu1 %vm2381_vm1, %v2360_v16  ;;  %v6073_v29 = vrot.slane %v3208_v50, 5  ;;  %v3476_v56 = vshrl.u32 %v6023_v9, 16  ;;  %v753_v12 = vld [vmem:[#allocation2 + $0x98] sm:$0x10] }
 0x1b8   : > { %2241 = vrot.lane.b32.xlu0 %v2105_v25, %s5352_s12  ;;  %v6071_v25 = vld [vmem:[%s6864_s3 + $0x10] sm:$0x3f]   ;;  %v3479_v13 = vshll.u32 %v6023_v9, 16  ;;  %v2617_v46 = vsel %vm2414_vm2, %v5294_v19, 0  ;;  %v3474_v43 = vsel %vm2796_vm14, %v3465_v20, %v3473_v60  ;;  %v2108_v11 = vsel %vm1988_vm9, %v2106_v44, %v2107_v0  ;;  %v6096_v50 = vld [vmem:[#allocation2 + $0xd8] sm:$0xf] }
 0x1b9   : > { %v6055_v26 = vpop.permute.xlu0 %2285  ;;  %v6057_v35 = vpop.permute.xlu1 %2259  ;;  %v2328_v10 = vsel %vm1856_vm15, %v2024_v33, %v5969_v28  ;;  %v2021_v15 = vsel %vm1988_vm9, %v2019_v1, %v2020_v5  ;;  %5094 = vmatpush3.bf16.msra.mxu1 %v2617_v46  ;;  %3687 = vrot.lane.b32.xlu1 %v3474_v43, %s5351_s9  ;;  %v2201_v9 = vsel %vm1988_vm9, %v2199_v17, %v2200_v2  ;;  %v3478_v36 = vrot.slane %v3476_v56, 4  ;;  %v5311_v28 = vld [vmem:[#allocation2 + $0x98] sm:$0xf]  ;;  %v6098_v16 = vld [vmem:[#allocation2 + $0xd0] sm:$0xf0] }
 0x1ba   : > { %v2325_v19 = vsel %vm1856_vm15, %v2021_v15, %v6029_v22  ;;  %v3481_v20 = vrot.slane %v3479_v13, 5  ;;  %v3203_v44 = vsel %vm2796_vm14, %v3194_v51, %v3202_v31  ;;  %v2202_v0 = vrot.slane %v6078_v24, 4  ;;  %5264 = vmatprep.subr.msk.bf16.mxu1 %vm2414_vm2, %v6071_v25 }
 0x1bb   : > { %v2203_v33 = vrot.slane %v5311_v28, 4  ;;  %v2362_v60 = vsel %vm1905_vm0, %v2325_v19, %v5998_v14  ;;  %v3211_v22 = vor.u32 %v6073_v29, %v6061_v40  ;;  %v754_v51 = vsel %vm5501_vm11, 0, %v753_v12  ;;  %v6116_v40 = vld [vmem:[#allocation2 + $0xc8] sm:$0xf] }
 0x1bc   : > { %2243 = vrot.lane.b32.xlu0 %v2108_v11, %s5352_s12  ;;  %v3076_v17 = vld [vmem:[#allocation2 + $0x88] sm:$0x1f]  ;;  %5081 = vmatprep.mubr.msk.bf16.mxu1 %vm2381_vm1, %v2362_v60  ;;  %v3493_v31 = vshrl.u32 %v6078_v24, 16  ;;  %v2364_v1 = vsel %vm1905_vm0, %v2328_v10, %v6031_v41  ;;  %755 = vst [vmem:[#allocation2 + $0x98] sm:$0x10] %v754_v51  ;;  %v3482_v29 = vor.u32 %v3481_v20, %v3478_v36  ;;  %v2028_v11 = vrot.slane %v6098_v16, 4 }
 0x1bd   : > { %v6080_v4 = vpop.permute.xlu0 %2253  ;;  %v6082_v63 = vpop.permute.xlu1 %2287  ;;  %v3363_v2 = vld [vmem:[#allocation2 + $0x88] sm:$0x1f]  ;;  %v3213_v56 = vshrl.u32 %v3076_v17, 16  ;;  %v3216_v13 = vshll.u32 %v3076_v17, 16  ;;  %3657 = vrot.lane.b32.xlu1 %v3203_v44, %s5352_s12  ;;  %v3496_v41 = vshll.u32 %v6078_v24, 16 }
 0x1be   : > { %v3484_v46 = vshrl.u32 %v3363_v2, 16  ;;  %v3487_v43 = vshll.u32 %v3363_v2, 16  ;;  %v6120_v15 = vrot.slane %v3493_v31, 4  ;;  %v1952_v10 = vld [vmem:[#allocation2 + $0xc0] sm:$0xf0]  ;;  %v2029_v2 = vrot.slane %v6096_v50, 4 }
 0x1bf   : > { %v3215_v12 = vrot.slane %v3213_v56, 4  ;;  %v3218_v19 = vrot.slane %v3216_v13, 5  ;;  %v756_v17 = vld [vmem:[#allocation2 + $0xa8] sm:$0x10]  ;;  %5082 = vmatmul.mubr.msk.bf16.gmra.mrb[4].mxu1 %vm2381_vm1, %v2364_v1  ;;  %v6125_v51 = vrot.slane %v3496_v41, 5  ;;  %v2025_v56 = vrot.slane %v1952_v10, 4 }
 0x1c0   : > { %v3486_v28 = vrot.slane %v3484_v46, 4  ;;  %v3489_v60 = vrot.slane %v3487_v43, 5  ;;  %v5312_v44 = vld [vmem:[#allocation2 + $0x90] sm:$0xf0]  ;;  %v2026_v13 = vrot.slane %v6116_v40, 4  ;;  %v2204_v1 = vsel %vm1988_vm9, %v2202_v0, %v2203_v33 }
 0x1c1   : > { %v6112_v5 = vpop.permute.xlu0 %2289  ;;  %v6114_v14 = vpop.permute.xlu1 %1806  ;;  %v3222_v36 = vshrl.u32 %v5312_v44, 16  ;;  %v3225_v20 = vshll.u32 %v5312_v44, 16  ;;  %v3219_v24 = vor.u32 %v3218_v19, %v3215_v12  ;;  %2273 = vrot.lane.b32.xlu1 %v2201_v9, %s5351_s9  ;;  %v757_v41 = vsel %vm5501_vm11, 0, %v756_v17  ;;  %v5313_v10 = vld [vmem:[#allocation2 + $0xa0] sm:$0xf0] }
 0x1c2   : > { %v3490_v34 = vor.u32 %v3489_v60, %v3486_v28  ;;  %v3499_v12 = vor.u32 %v6125_v51, %v6120_v15  ;;  %758 = vst [vmem:[#allocation2 + $0xa8] sm:$0x10] %v757_v41  ;;  %v3239_v19 = vshrl.u32 %v5313_v10, 16  ;;  %v2027_v33 = vsel %vm1988_vm9, %v2025_v56, %v2026_v13  ;;  %v759_v13 = vld [vmem:[#allocation2 + $0xb8] sm:$0x10] }
 0x1c3   : > { %v3224_v46 = vrot.slane %v3222_v36, 4  ;;  %v3227_v43 = vrot.slane %v3225_v20, 5  ;;  %v3220_v44 = vsel %vm2796_vm14, %v3211_v22, %v3219_v24  ;;  %v3364_v9 = vld [vmem:[#allocation2 + $0x98] sm:$0x1f]  ;;  %v3242_v60 = vshll.u32 %v5313_v10, 16 }
 0x1c4   : > { %v3491_v7 = vsel %vm2796_vm14, %v3482_v29, %v3490_v34  ;;  %3659 = vrot.lane.b32.xlu0 %v3220_v44, %s5352_s12  ;;  %v3077_v28 = vld [vmem:[#allocation2 + $0x98] sm:$0x1f]  ;;  %v5314_v36 = vld [vmem:[#allocation2 + $0xa0] sm:$0xf0]  ;;  %v3501_v34 = vshrl.u32 %v3364_v9, 16  ;;  %v3504_v29 = vshll.u32 %v3364_v9, 16  ;;  %v2331_v24 = vsel %vm1856_vm15, %v2027_v33, %v6080_v4 }
 0x1c5   : > { %v6127_v16 = vpop.permute.xlu0 %2257  ;;  %v6129_v31 = vpop.permute.xlu1 %1838  ;;  %v3228_v0 = vor.u32 %v3227_v43, %v3224_v46  ;;  %v3510_v17 = vshrl.u32 %v5314_v36, 16  ;;  %v3230_v15 = vshrl.u32 %v3077_v28, 16  ;;  %v3233_v51 = vshll.u32 %v3077_v28, 16  ;;  %3689 = vrot.lane.b32.xlu1 %v3491_v7, %s5351_s9 }
 0x1c6   : > { %v6149_v41 = vrot.slane %v3239_v19, 4  ;;  %v6151_v46 = vrot.slane %v3242_v60, 5  ;;  %v3513_v56 = vshll.u32 %v5314_v36, 16  ;;  %v3503_v43 = vrot.slane %v3501_v34, 4 }
 0x1c7   : > { %v3506_v44 = vrot.slane %v3504_v29, 5  ;;  %v3232_v10 = vrot.slane %v3230_v15, 4  ;;  %v3235_v49 = vrot.slane %v3233_v51, 5  ;;  %v2030_v9 = vsel %vm1988_vm9, %v2028_v11, %v2029_v2 }
 0x1c8   : > { %2275 = vrot.lane.b32.xlu0 %v2204_v1, %s5351_s9  ;;  %v6156_v7 = vrot.slane %v3510_v17, 4  ;;  %v3515_v28 = vrot.slane %v3513_v56, 5  ;;  %v2366_v36 = vsel %vm1905_vm0, %v2331_v24, %v6055_v26  ;;  %v760_v34 = vsel %vm5501_vm11, 0, %v759_v13  ;;  %v5315_v17 = vld [vmem:[#allocation2 + $0xb0] sm:$0xf0] }
 0x1c9   : > { %v6142_v20 = vpop.permute.xlu0 %1836  ;;  %v6144_v22 = vpop.permute.xlu1 %1810  ;;  %v3507_v33 = vor.u32 %v3506_v44, %v3503_v43  ;;  %v3236_v60 = vor.u32 %v3235_v49, %v3232_v10  ;;  %v2334_v1 = vsel %vm1856_vm15, %v2030_v9, %v6000_v21  ;;  %v3078_v29 = vld [vmem:[#allocation2 + $0xa8] sm:$0x1f]  ;;  %v3245_v11 = vor.u32 %v6151_v46, %v6149_v41  ;;  %5085 = vmatprep.mubr.msk.bf16.mxu1 %vm2381_vm1, %v2366_v36  ;;  %v1954_v44 = vld [vmem:[#allocation2 + $0xe0] sm:$0xf0] }
 0x1ca   : > { %v3365_v2 = vld [vmem:[#allocation2 + $0xa8] sm:$0x1f]  ;;  %761 = vst [vmem:[#allocation2 + $0xb8] sm:$0x10] %v760_v34  ;;  %v3527_v15 = vshrl.u32 %v5315_v17, 16  ;;  %v3530_v49 = vshll.u32 %v5315_v17, 16  ;;  %v3516_v21 = vor.u32 %v3515_v28, %v6156_v7  ;;  %v2368_v7 = vsel %vm1905_vm0, %v2334_v1, %v6082_v63 }
 0x1cb   : > { %v3508_v51 = vsel %vm2796_vm14, %v3499_v12, %v3507_v33  ;;  %v3237_v26 = vsel %vm2796_vm14, %v3228_v0, %v3236_v60  ;;  %v3247_v24 = vshrl.u32 %v3078_v29, 16  ;;  %v3250_v56 = vshll.u32 %v3078_v29, 16  ;;  %v6173_v13 = vld [vmem:[#allocation2 + $0xe8] sm:$0xf]  ;;  %v5316_v60 = vld [vmem:[#allocation2 + $0xb0] sm:$0xf0]  ;;  %5086 = vmatmul.mubr.msk.bf16.gmra.mrb[8].mxu1 %vm2381_vm1, %v2368_v7 }
 0x1cc   : > { %6882 = vst [vmem:[#allocation4_spill] sm:$0xff] %v6173_v13  ;;  %3691 = vrot.lane.b32.xlu1 %v3508_v51, %s5351_s9  ;;  %3661 = vrot.lane.b32.xlu0 %v3237_v26, %s5352_s12  ;;  %v3518_v41 = vshrl.u32 %v3365_v2, 16  ;;  %v3521_v46 = vshll.u32 %v3365_v2, 16  ;;  %v6178_v43 = vrot.slane %v3527_v15, 4  ;;  %v6184_v33 = vrot.slane %v3530_v49, 5 }
 0x1cd   : > { %v6158_v4 = vpop.permute.xlu0 %1808  ;;  %v6160_v19 = vpop.permute.xlu1 %1842  ;;  %v3249_v0 = vrot.slane %v3247_v24, 4  ;;  %v3252_v9 = vrot.slane %v3250_v56, 5  ;;  %v3256_v36 = vshrl.u32 %v5316_v60, 16  ;;  %v762_v34 = vld [vmem:[#allocation2 + $0xc8] sm:$0x10]  ;;  %v3259_v51 = vshll.u32 %v5316_v60, 16 }
 0x1ce   : > { %6881 = vst [vmem:[#allocation3_spill] sm:$0xff] %v6160_v19  ;;  %v3520_v29 = vrot.slane %v3518_v41, 4  ;;  %v3523_v17 = vrot.slane %v3521_v46, 5  ;;  %v6190_v28 = vrot.slane %v1014_v8, 3  ;;  %v2031_v26 = vrot.slane %v1954_v44, 4 }
 0x1cf   : > { %v3253_v2 = vor.u32 %v3252_v9, %v3249_v0  ;;  %v3258_v15 = vrot.slane %v3256_v36, 4  ;;  %v3261_v24 = vrot.slane %v3259_v51, 5  ;;  %v2032_v56 = vrot.slane %v6173_v13, 4  ;;  %v5317_v0 = vld [vmem:[#allocation2 + $0xc0] sm:$0xf0] }
 0x1d0   : > { %v3524_v49 = vor.u32 %v3523_v17, %v3520_v29  ;;  %v763_v41 = vsel %vm5501_vm11, 0, %v762_v34  ;;  %v3533_v1 = vor.u32 %v6184_v33, %v6178_v43  ;;  %v3273_v9 = vshrl.u32 %v5317_v0, 16  ;;  %v6206_v7 = vld [vmem:[#allocation2 + $0xf8] sm:$0xf] }
 0x1d1   : > { %v6180_v10 = vpop.permute.xlu0 %1840  ;;  %v6182_v12 = vpop.permute.xlu1 %1814  ;;  %v3254_v63 = vsel %vm2796_vm14, %v3245_v11, %v3253_v2  ;;  %v3366_v8 = vld [vmem:[#allocation2 + $0xb8] sm:$0x1f]  ;;  %764 = vst [vmem:[#allocation2 + $0xc8] sm:$0x10] %v763_v41  ;;  %v3276_v36 = vshll.u32 %v5317_v0, 16  ;;  %v3262_v51 = vor.u32 %v3261_v24, %v3258_v15  ;;  %6885 = vst [vmem:[#allocation7_spill] sm:$0xff] %v6206_v7  ;;  %v2033_v43 = vsel %vm1988_vm9, %v2031_v26, %v2032_v56 }
 0x1d2   : > { %6883 = vst [vmem:[#allocation5_spill] sm:$0xff] %v6182_v12  ;;  %v3079_v44 = vld [vmem:[#allocation2 + $0xb8] sm:$0x1f]  ;;  %3663 = vrot.lane.b32.xlu1 %v3254_v63, %s5352_s12  ;;  %v3525_v29 = vsel %vm2796_vm14, %v3516_v21, %v3524_v49  ;;  %v3535_v34 = vshrl.u32 %v3366_v8, 16  ;;  %v3538_v17 = vshll.u32 %v3366_v8, 16  ;;  %v6209_v33 = vrot.slane %v3273_v9, 4 }
 0x1d3   : > { %3693 = vrot.lane.b32.xlu0 %v3525_v29, %s5351_s9  ;;  %v3264_v11 = vshrl.u32 %v3079_v44, 16  ;;  %v3267_v2 = vshll.u32 %v3079_v44, 16  ;;  %v6211_v41 = vld [vmem:[#allocation2 + $0xf0] sm:$0xf0]  ;;  %v2337_v21 = vsel %vm1856_vm15, %v2033_v43, %v6127_v16  ;;  %v3278_v49 = vrot.slane %v3276_v36, 5 }
 0x1d4   : > { %v3537_v0 = vrot.slane %v3535_v34, 4  ;;  %v3540_v59 = vrot.slane %v3538_v17, 5  ;;  %v5318_v29 = vld [vmem:[#allocation2 + $0xc0] sm:$0xf0]  ;;  %v893_v26 = vld [vmem:[#allocation2 + $0x70] sm:$0xf8] }
 0x1d5   : > { %v6196_v46 = vpop.permute.xlu0 %1812  ;;  %v6198_v60 = vpop.permute.xlu1 %1846  ;;  %v3266_v24 = vrot.slane %v3264_v11, 4  ;;  %v3269_v8 = vrot.slane %v3267_v2, 5  ;;  %v3544_v44 = vshrl.u32 %v5318_v29, 16  ;;  %v3547_v13 = vshll.u32 %v5318_v29, 16  ;;  %v765_v12 = vld [vmem:[#allocation2 + $0xd8] sm:$0x10] }
 0x1d6   : > { %6884 = vst [vmem:[#allocation6_spill] sm:$0xff] %v6198_v60  ;;  %v6888_v56 = vshll.u32 %v5960_v55, 16  ;;  %v6889_v34 = vshrl.u32 %v5980_v18, 16  ;;  %v6890_v16 = vshll.u32 %v5980_v18, 16  ;;  %v3541_v43 = vor.u32 %v3540_v59, %v3537_v0 }
 0x1d7   : > { %v2034_v11 = vrot.slane %v6211_v41, 4  ;;  %v3270_v2 = vor.u32 %v3269_v8, %v3266_v24  ;;  %v3546_v29 = vrot.slane %v3544_v44, 4  ;;  %v3549_v60 = vrot.slane %v3547_v13, 5 }
 0x1d8   : > { %v6221_v9 = vrot.slane %v6888_v56, 4  ;;  %v6225_v17 = vrot.slane %v6889_v34, 3  ;;  %v6229_v36 = vrot.slane %v6890_v16, 4  ;;  %v2035_v55 = vrot.slane %v6206_v7, 4  ;;  %v3367_v19 = vld [vmem:[#allocation2 + $0xc8] sm:$0x1f] }
 0x1d9   : > { %v6215_v63 = vpop.permute.xlu0 %1844  ;;  %v6217_v15 = vpop.permute.xlu1 %1818  ;;  %v3542_v56 = vsel %vm2796_vm14, %v3533_v1, %v3541_v43  ;;  %v3279_v34 = vor.u32 %v3278_v49, %v6209_v33  ;;  %v2370_v18 = vsel %vm1905_vm0, %v2337_v21, %v6112_v5  ;;  %v3271_v13 = vsel %vm2796_vm14, %v3262_v51, %v3270_v2  ;;  %v5319_v2 = vld [vmem:[#allocation2 + $0xd0] sm:$0xf0] }
 0x1da   : > { %6886 = vst [vmem:[#allocation8_spill] sm:$0xff] %v6215_v63  ;;  %6887 = vst [vmem:[#allocation9_spill] sm:$0xff] %v6217_v15  ;;  %v6231_v15 = vld [vmem:[#allocation2 + $0x78] sm:$0xf]  ;;  %v3080_v63 = vld [vmem:[#allocation2 + $0xc8] sm:$0x1f]  ;;  %3695 = vrot.lane.b32.xlu1 %v3542_v56, %s5351_s9  ;;  %5089 = vmatprep.mubr.msk.bf16.mxu1 %vm2381_vm1, %v2370_v18  ;;  %v3550_v16 = vor.u32 %v3549_v60, %v3546_v29  ;;  %v6893_v60 = vor.u32 %v5958_v38, %v5956_v54 }
 0x1db   : > { %v3281_v41 = vshrl.u32 %v3080_v63, 16  ;;  %v3284_v24 = vshll.u32 %v3080_v63, 16  ;;  %v1031_v8 = vshrl.u32 %v893_v26, 16  ;;  %3665 = vrot.lane.b32.xlu0 %v3271_v13, %s5352_s12  ;;  %v3552_v1 = vshrl.u32 %v3367_v19, 16  ;;  %v768_v38 = vld [vmem:[#allocation2 + $0xe8] sm:$0x10] }
 0x1dc   : > { %v3555_v33 = vshll.u32 %v3367_v19, 16  ;;  %v1034_v49 = vshll.u32 %v893_v26, 16  ;;  %v1039_v5 = vshrl.u32 %v6231_v15, 16  ;;  %v766_v43 = vsel %vm5501_vm11, 0, %v765_v12  ;;  %v5320_v26 = vld [vmem:[#allocation2 + $0xd0] sm:$0xf0] }
 0x1dd   : > { %v6239_v59 = vpop.permute.xlu0 %1816  ;;  %v6241_v0 = vpop.permute.xlu1 %1854  ;;  %v3283_v21 = vrot.slane %v3281_v41, 4  ;;  %v3286_v44 = vrot.slane %v3284_v24, 5  ;;  %v3554_v56 = vrot.slane %v3552_v1, 4  ;;  %v1042_v63 = vshll.u32 %v6231_v15, 16  ;;  %767 = vst [vmem:[#allocation2 + $0xd8] sm:$0x10] %v766_v43 }
 0x1de   : > { %6891 = vst [vmem:[#allocation10_spill] sm:$0xff] %v6239_v59  ;;  %6892 = vst [vmem:[#allocation11_spill] sm:$0xff] %v6241_v0  ;;  %v3557_v51 = vrot.slane %v3555_v33, 5  ;;  %v3561_v18 = vshrl.u32 %v5319_v2, 16  ;;  %v3564_v19 = vshll.u32 %v5319_v2, 16  ;;  %v3290_v7 = vshrl.u32 %v5320_v26, 16 }
 0x1df   : > { %v3287_v13 = vor.u32 %v3286_v44, %v3283_v21  ;;  %v3293_v59 = vshll.u32 %v5320_v26, 16  ;;  %v6894_v12 = vor.u32 %v5951_v3, %v5949_v45  ;;  %v1020_v41 = vor.u32 %v6221_v9, %v6190_v28 }
 0x1e0   : > { %v1028_v24 = vor.u32 %v6229_v36, %v6225_v17  ;;  %v3558_v1 = vor.u32 %v3557_v51, %v3554_v56  ;;  %v2036_v21 = vsel %vm1988_vm9, %v2034_v11, %v2035_v55  ;;  %v1033_v43 = vrot.slane %v1031_v8, 3  ;;  %v6272_v17 = vld [vmem:[#allocation2 + $0x80] sm:$0xf8] }
 0x1e1   : > { %v6251_v0 = vpop.permute.xlu0 %1848  ;;  %v995_v29 = vsel %vm656_vm4, %v6894_v12, %v6893_v60  ;;  %v6264_v33 = vpop.permute.xlu1 %3645  ;;  %v3288_v44 = vsel %vm2796_vm14, %v3279_v34, %v3287_v13  ;;  %v1036_v54 = vrot.slane %v1034_v49, 4  ;;  %v2340_v45 = vsel %vm1856_vm15, %v2036_v21, %v6057_v35 }
 0x1e2   : > { %3667 = vrot.lane.b32.xlu1 %v3288_v44, %s5352_s12  ;;  %v3559_v3 = vsel %vm2796_vm14, %v3550_v16, %v3558_v1  ;;  %v1041_v28 = vrot.slane %v1039_v5, 3  ;;  %v1044_v9 = vrot.slane %v1042_v63, 4  ;;  %v3563_v11 = vrot.slane %v3561_v18, 4 }
 0x1e3   : > { %3697 = vrot.lane.b32.xlu0 %v3559_v3, %s5351_s9  ;;  %v3566_v55 = vrot.slane %v3564_v19, 5  ;;  %v3292_v34 = vrot.slane %v3290_v7, 4  ;;  %v3295_v8 = vrot.slane %v3293_v59, 5  ;;  %v6280_v35 = vsel %vm1856_vm15, %v5964_v53, %v5894_v52  ;;  %v5321_v59 = vld [vmem:[#allocation2 + $0xe0] sm:$0xf0] }
 0x1e4   : > { %v6284_v49 = vsel %vm1856_vm15, %v995_v29, %v5930_v6  ;;  %v1029_v5 = vsel %vm656_vm4, %v1020_v41, %v1028_v24  ;;  %v769_v16 = vsel %vm5501_vm11, 0, %v768_v38  ;;  %v1037_v56 = vor.u32 %v1036_v54, %v1033_v43  ;;  %v3368_v51 = vld [vmem:[#allocation2 + $0xd8] sm:$0x1f]  ;;  %v5322_v54 = vld [vmem:[#allocation2 + $0xe0] sm:$0xf0] }
 0x1e5   : > { %v6274_v36 = vpop.permute.xlu0 %2229  ;;  %v3081_v63 = vld [vmem:[#allocation2 + $0xd8] sm:$0x1f]  ;;  %v1048_v7 = vshrl.u32 %v6272_v17, 16  ;;  %770 = vst [vmem:[#allocation2 + $0xe8] sm:$0x10] %v769_v16  ;;  %v3307_v2 = vshrl.u32 %v5321_v59, 16  ;;  %v2372_v52 = vsel %vm1905_vm0, %v2340_v45, %v5824_v47  ;;  %v6295_v26 = vpop.permute.xlu1 %2261  ;;  %v1045_v60 = vor.u32 %v1044_v9, %v1041_v28 }
 0x1e6   : > { %v3569_v53 = vshrl.u32 %v3368_v51, 16  ;;  %v3572_v18 = vshll.u32 %v3368_v51, 16  ;;  %v3298_v6 = vshrl.u32 %v3081_v63, 16  ;;  %v3301_v13 = vshll.u32 %v3081_v63, 16  ;;  %5090 = vmatmul.mubr.msk.bf16.gmra.mrb[12].mxu1 %vm2381_vm1, %v2372_v52 }
 0x1e7   : > { %v3567_v12 = vor.u32 %v3566_v55, %v3563_v11  ;;  %v3296_v29 = vor.u32 %v3295_v8, %v3292_v34  ;;  %v3310_v41 = vshll.u32 %v5321_v59, 16  ;;  %5095 = vmatprep.mubr.msk.bf16.mxu1 %vm2381_vm1, %v5984_v23  ;;  %v1877_v44 = vsel %vm1856_vm15, %v1029_v5, %v5945_v42 }
 0x1e8   : > { %v3571_v24 = vrot.slane %v3569_v53, 4  ;;  %v3574_v1 = vrot.slane %v3572_v18, 5  ;;  %v3300_v47 = vrot.slane %v3298_v6, 4  ;;  %v3303_v21 = vrot.slane %v3301_v13, 5  ;;  %v771_v18 = vld [vmem:[#allocation2 + $0xf8] sm:$0x10] }
 0x1e9   : > { %v6293_v19 = vpop.permute.xlu0 %2231  ;;  %v1051_v43 = vshll.u32 %v6272_v17, 16  ;;  %v3578_v38 = vshrl.u32 %v5322_v54, 16  ;;  %v3581_v45 = vshll.u32 %v5322_v54, 16  ;;  %v3309_v9 = vrot.slane %v3307_v2, 4  ;;  %v897_v17 = vld [vmem:[#allocation2 + $0x90] sm:$0xf8]  ;;  %v6314_v52 = vpop.permute.xlu1 %3677 }
 0x1ea   : > { %v3575_v3 = vor.u32 %v3574_v1, %v3571_v24  ;;  %v3304_v28 = vor.u32 %v3303_v21, %v3300_v47  ;;  %v3312_v11 = vrot.slane %v3310_v41, 5  ;;  %v1046_v23 = vsel %vm656_vm4, %v1037_v56, %v1045_v60  ;;  %v899_v54 = vld [vmem:[#allocation2 + $0xa0] sm:$0xf8] }
 0x1eb   : > { %v6307_v34 = vsel %vm1905_vm0, %v1877_v44, %v6142_v20  ;;  %v6309_v8 = vrot.slane %v1048_v7, 3  ;;  %v1056_v42 = vshrl.u32 %v5992_v58, 16  ;;  %v3580_v59 = vrot.slane %v3578_v38, 4 }
 0x1ec   : > { %v3576_v5 = vsel %vm2796_vm14, %v3567_v12, %v3575_v3  ;;  %v3305_v16 = vsel %vm2796_vm14, %v3296_v29, %v3304_v28  ;;  %v3082_v51 = vld [vmem:[#allocation2 + $0xe8] sm:$0x1f]  ;;  %v3583_v2 = vrot.slane %v3581_v45, 5  ;;  %v1059_v20 = vshll.u32 %v5992_v58, 16  ;;  %v5323_v3 = vld [vmem:[#allocation2 + $0xf0] sm:$0xf0] }
 0x1ed   : > { %v6302_v55 = vpop.permute.xlu0 %3647  ;;  %v3369_v63 = vld [vmem:[#allocation2 + $0xe8] sm:$0x1f]  ;;  %3699 = vrot.lane.b32.xlu1 %v3576_v5, %s5351_s9  ;;  %3669 = vrot.lane.b32.xlu0 %v3305_v16, %s5352_s12  ;;  %v3315_v56 = vshrl.u32 %v3082_v51, 16  ;;  %v3318_v7 = vshll.u32 %v3082_v51, 16  ;;  %v6319_v6 = vrot.slane %v1051_v43, 4  ;;  %v3313_v13 = vor.u32 %v3312_v11, %v3309_v9  ;;  %v6333_v51 = vpop.permute.xlu1 %3679 }
 0x1ee   : > { %v3586_v53 = vshrl.u32 %v3369_v63, 16  ;;  %v3589_v60 = vshll.u32 %v3369_v63, 16  ;;  %v1065_v12 = vshrl.u32 %v897_v17, 16  ;;  %5096 = vmatmul.mubr.msk.bf16.vlgmr.msra.gmra.mrb[16].mxu1 %vm2381_vm1, %v5892_v27  ;;  %v1068_v47 = vshll.u32 %v897_v17, 16  ;;  %v5324_v17 = vld [vmem:[#allocation2 + $0xf0] sm:$0xf0] }
 0x1ef   : > { %v3317_v41 = vrot.slane %v3315_v56, 4  ;;  %v3320_v24 = vrot.slane %v3318_v7, 5  ;;  %v3584_v21 = vor.u32 %v3583_v2, %v3580_v59  ;;  %v1073_v44 = vshrl.u32 %v5976_v48, 16  ;;  %v774_v7 = vld [vmem:[#allocation2 + $0x108] sm:$0x10] }
 0x1f0   : > { %v3588_v1 = vrot.slane %v3586_v53, 4  ;;  %v3591_v58 = vrot.slane %v3589_v60, 5  ;;  %v772_v43 = vsel %vm5501_vm11, 0, %v771_v18  ;;  %v1076_v45 = vshll.u32 %v5976_v48, 16 }
 0x1f1   : > { %v6323_v29 = vpop.permute.xlu0 %2263  ;;  %v3321_v38 = vor.u32 %v3320_v24, %v3317_v41  ;;  %773 = vst [vmem:[#allocation2 + $0xf8] sm:$0x10] %v772_v43  ;;  %v3595_v27 = vshrl.u32 %v5323_v3, 16  ;;  %v3598_v28 = vshll.u32 %v5323_v3, 16  ;;  %v6331_v9 = vsel %vm1856_vm15, %v1046_v23, %v6114_v14 }
 0x1f2   : > { %v3592_v11 = vor.u32 %v3591_v58, %v3588_v1  ;;  %v3324_v5 = vshrl.u32 %v5324_v17, 16  ;;  %v3327_v16 = vshll.u32 %v5324_v17, 16  ;;  %v1058_v59 = vrot.slane %v1056_v42, 3 }
 0x1f3   : > { %v1061_v2 = vrot.slane %v1059_v20, 4  ;;  %v3322_v48 = vsel %vm2796_vm14, %v3313_v13, %v3321_v38  ;;  %v1082_v56 = vshrl.u32 %v899_v54, 16  ;;  %v1054_v53 = vor.u32 %v6319_v6, %v6309_v8 }
 0x1f4   : > { %3671 = vrot.lane.b32.xlu1 %v3322_v48, %s5352_s12  ;;  %v3593_v14 = vsel %vm2796_vm14, %v3584_v21, %v3592_v11  ;;  %v6342_v23 = vrot.slane %v1065_v12, 3  ;;  %v6344_v18 = vrot.slane %v1068_v47, 4  ;;  %v6347_v60 = vrot.slane %v1073_v44, 3  ;;  %v5325_v21 = vld [vmem:[#allocation2 + $0x100] sm:$0xf0] }
 0x1f5   : > { %v6335_v63 = vpop.permute.xlu0 %2233  ;;  %3701 = vrot.lane.b32.xlu0 %v3593_v14, %s5351_s9  ;;  %v6349_v42 = vrot.slane %v1076_v45, 4  ;;  %v3597_v20 = vrot.slane %v3595_v27, 4  ;;  %v3600_v13 = vrot.slane %v3598_v28, 5  ;;  %v3326_v41 = vrot.slane %v3324_v5, 4  ;;  %v6362_v27 = vpop.permute.xlu1 %3649 }
 0x1f6   : > { %v3329_v24 = vrot.slane %v3327_v16, 5  ;;  %v1085_v1 = vshll.u32 %v899_v54, 16  ;;  %v775_v8 = vsel %vm5501_vm11, 0, %v774_v7  ;;  %v6353_v6 = vrot.slane %v1082_v56, 3 }
 0x1f7   : > { %v1090_v12 = vshrl.u32 %v6047_v57, 16  ;;  %v1093_v47 = vshll.u32 %v6047_v57, 16  ;;  %776 = vst [vmem:[#allocation2 + $0x108] sm:$0x10] %v775_v8  ;;  %v3341_v58 = vshrl.u32 %v5325_v21, 16  ;;  %v1062_v44 = vor.u32 %v1061_v2, %v1058_v59 }
 0x1f8   : > { %v3370_v43 = vld [vmem:[#allocation2 + $0xf8] sm:$0x1f]  ;;  %v3344_v45 = vshll.u32 %v5325_v21, 16  ;;  %v3830_v3 = vsel %vm2414_vm2, %v6071_v25, 0  ;;  %v1911_v54 = vsel %vm1905_vm0, %v6280_v35, %v5876_v32  ;;  %v3601_v16 = vor.u32 %v3600_v13, %v3597_v20  ;;  %v5326_v20 = vld [vmem:[#allocation2 + $0x100] sm:$0xf0] }
 0x1f9   : > { %v3083_v38 = vld [vmem:[#allocation2 + $0xf8] sm:$0x1f]  ;;  %v6364_v28 = vpop.permute.xlu0 %2235  ;;  %v3603_v11 = vshrl.u32 %v3370_v43, 16  ;;  %v3606_v57 = vshll.u32 %v3370_v43, 16  ;;  %5128 = vmatpush3.bf16.msra.mxu1 %v3830_v3  ;;  %5099 = vmatprep.mubr.msk.bf16.mxu1 %vm2381_vm1, %v1911_v54  ;;  %v3330_v59 = vor.u32 %v3329_v24, %v3326_v41  ;;  %v6367_v2 = vrot.slane %v1085_v1, 4 }
 0x1fa   : > { %v3332_v17 = vshrl.u32 %v3083_v38, 16  ;;  %v3335_v5 = vshll.u32 %v3083_v38, 16  ;;  %5100 = vmatmul.mubr.msk.bf16.gmra.mrb[20].mxu1 %vm2381_vm1, %v5927_v62  ;;  %v1915_v32 = vsel %vm1905_vm0, %v6284_v49, %v5919_v39  ;;  %v6375_v7 = vrot.slane %v1090_v12, 3 }
 0x1fb   : > { %v3605_v25 = vrot.slane %v3603_v11, 4  ;;  %v3608_v35 = vrot.slane %v3606_v57, 5  ;;  %5103 = vmatprep.mubr.msk.bf16.mxu1 %vm2381_vm1, %v1915_v32  ;;  %v6377_v14 = vrot.slane %v1093_v47, 4  ;;  %v3612_v13 = vshrl.u32 %v5326_v20, 16  ;;  %v6385_v47 = vpop.permute.xlu1 %2265  ;;  %v777_v57 = vld [vmem:[#allocation2 + $0x118] sm:$0x10] }
 0x1fc   : > { %v3334_v48 = vrot.slane %v3332_v17, 4  ;;  %v3337_v56 = vrot.slane %v3335_v5, 5  ;;  %v3615_v41 = vshll.u32 %v5326_v20, 16  ;;  %v3343_v62 = vrot.slane %v3341_v58, 4  ;;  %v901_v17 = vld [vmem:[#allocation2 + $0xb0] sm:$0xf8] }
 0x1fd   : > { %v3609_v24 = vor.u32 %v3608_v35, %v3605_v25  ;;  %v3346_v8 = vrot.slane %v3344_v45, 5  ;;  %v6382_v39 = vsel %vm1905_vm0, %v6331_v9, %v6129_v31  ;;  %v1063_v49 = vsel %vm656_vm4, %v1054_v53, %v1062_v44  ;;  %v6387_v3 = vpop.permute.xlu0 %3651 }
 0x1fe   : > { %v3338_v1 = vor.u32 %v3337_v56, %v3334_v48  ;;  %v3084_v21 = vld [vmem:[#allocation2 + $0x108] sm:$0x1f]  ;;  %v3614_v12 = vrot.slane %v3612_v13, 4  ;;  %v3617_v38 = vrot.slane %v3615_v41, 5  ;;  %v1883_v31 = vsel %vm1856_vm15, %v1063_v49, %v6158_v4 }
 0x1ff   : > { %v3371_v43 = vld [vmem:[#allocation2 + $0x108] sm:$0x1f]  ;;  %v3610_v54 = vsel %vm2796_vm14, %v3601_v16, %v3609_v24  ;;  %v3349_v45 = vshrl.u32 %v3084_v21, 16  ;;  %v3352_v11 = vshll.u32 %v3084_v21, 16  ;;  %v1071_v9 = vor.u32 %v6344_v18, %v6342_v23  ;;  %v903_v23 = vld [vmem:[#allocation2 + $0xc0] sm:$0xf8] }
 0x200   : > { %v3339_v58 = vsel %vm2796_vm14, %v3330_v59, %v3338_v1  ;;  %3703 = vrot.lane.b32.xlu1 %v3610_v54, %s5351_s9  ;;  %v3620_v53 = vshrl.u32 %v3371_v43, 16  ;;  %v3623_v44 = vshll.u32 %v3371_v43, 16  ;;  %v1079_v5 = vor.u32 %v6349_v42, %v6347_v60  ;;  %v6411_v1 = vpop.permute.xlu1 %1822  ;;  %v905_v54 = vld [vmem:[#allocation2 + $0xd0] sm:$0xf8] }
 0x201   : > { %3673 = vrot.lane.b32.xlu0 %v3339_v58, %s5352_s12  ;;  %v3347_v16 = vor.u32 %v3346_v8, %v3343_v62  ;;  %v3351_v59 = vrot.slane %v3349_v45, 4  ;;  %v3354_v32 = vrot.slane %v3352_v11, 5  ;;  %v3618_v25 = vor.u32 %v3617_v38, %v3614_v12 }
 0x202   : > { %v3622_v35 = vrot.slane %v3620_v53, 4  ;;  %v3625_v48 = vrot.slane %v3623_v44, 5  ;;  %v778_v4 = vsel %vm5501_vm11, 0, %v777_v57  ;;  %5104 = vmatmul.mubr.msk.bf16.gmra.mrb[24].mxu1 %vm2381_vm1, %v5943_v37  ;;  %v1088_v18 = vor.u32 %v6367_v2, %v6353_v6  ;;  %v6413_v37 = vpop.permute.xlu0 %1852  ;;  %v5327_v2 = vld [vmem:[#allocation2 + $0x110] sm:$0xf0] }
 0x203   : > { %v1096_v56 = vor.u32 %v6377_v14, %v6375_v7  ;;  %v3355_v60 = vor.u32 %v3354_v32, %v3351_v59  ;;  %v1099_v42 = vshrl.u32 %v901_v17, 16  ;;  %779 = vst [vmem:[#allocation2 + $0x118] sm:$0x10] %v778_v4  ;;  %5107 = vmatprep.mubr.msk.bf16.mxu1 %vm2381_vm1, %v6307_v34  ;;  %v1102_v13 = vshll.u32 %v901_v17, 16  ;;  %v6429_v57 = vld [vmem:[#allocation2] sm:$0xf0] }
 0x204   : > { %v3626_v20 = vor.u32 %v3625_v48, %v3622_v35  ;;  %v1107_v41 = vshrl.u32 %v6005_v30, 16  ;;  %v1110_v24 = vshll.u32 %v6005_v30, 16  ;;  %v3629_v7 = vshrl.u32 %v5327_v2, 16  ;;  %v726_v44 = vld [vmem:[#allocation2 + $0x8] sm:$0x10] }
 0x205   : > { %v3356_v6 = vsel %vm2796_vm14, %v3347_v16, %v3355_v60  ;;  %v3632_v14 = vshll.u32 %v5327_v2, 16  ;;  %v1116_v62 = vshrl.u32 %v903_v23, 16  ;;  %v1080_v8 = vsel %vm656_vm4, %v1071_v9, %v1079_v5 }
 0x206   : > { %v1923_v34 = vsel %vm1905_vm0, %v1883_v31, %v6180_v10  ;;  %3675 = vrot.lane.b32.xlu1 %v3356_v6, %s5352_s12  ;;  %v3627_v49 = vsel %vm2796_vm14, %v3618_v25, %v3626_v20  ;;  %v1119_v30 = vshll.u32 %v903_v23, 16  ;;  %v1886_v21 = vsel %vm1856_vm15, %v1080_v8, %v6144_v22  ;;  %v6436_v32 = vpop.permute.xlu0 %1820 }
 0x207   : > { %v1097_v43 = vsel %vm656_vm4, %v1088_v18, %v1096_v56  ;;  %3705 = vrot.lane.b32.xlu0 %v3627_v49, %s5351_s9  ;;  %v1124_v12 = vshrl.u32 %v6116_v40, 16  ;;  %v1127_v38 = vshll.u32 %v6116_v40, 16  ;;  %v1101_v58 = vrot.slane %v1099_v42, 3  ;;  %v5328_v56 = vld [vmem:[#allocation2 + $0x8] sm:$0xf] }
 0x208   : > { %v1889_v10 = vsel %vm1856_vm15, %v1097_v43, %v6196_v46  ;;  %v1104_v45 = vrot.slane %v1102_v13, 4  ;;  %v1109_v11 = vrot.slane %v1107_v41, 3  ;;  %v1112_v31 = vrot.slane %v1110_v24, 4  ;;  %v6434_v46 = vpop.permute.xlu1 %1850  ;;  %v1941_v24 = vld [vmem:[#allocation2 + $0x10] sm:$0xf0] }
 0x209   : > { %v3631_v9 = vrot.slane %v3629_v7, 4  ;;  %v3634_v22 = vrot.slane %v3632_v14, 5  ;;  %v1118_v53 = vrot.slane %v1116_v62, 3  ;;  %v1121_v5 = vrot.slane %v1119_v30, 4  ;;  %v5329_v43 = vld [vmem:[#allocation2 + $0x18] sm:$0xf] }
 0x20a   : > { %v3372_v17 = vld [vmem:[#allocation2 + $0x118] sm:$0x1f]  ;;  %v1133_v16 = vshrl.u32 %v905_v54, 16  ;;  %v1136_v59 = vshll.u32 %v905_v54, 16  ;;  %v1141_v40 = vshrl.u32 %v6096_v50, 16  ;;  %5108 = vmatmul.mubr.msk.bf16.gmra.mrb[28].mxu1 %vm2381_vm1, %v6382_v39  ;;  %v1126_v48 = vrot.slane %v1124_v12, 3  ;;  %v6448_v54 = vpop.permute.xlu0 %2267 }
 0x20b   : > { %v3637_v25 = vshrl.u32 %v3372_v17, 16  ;;  %v3640_v35 = vshll.u32 %v3372_v17, 16  ;;  %v1129_v4 = vrot.slane %v1127_v38, 4  ;;  %5111 = vmatprep.mubr.msk.bf16.mxu1 %vm2381_vm1, %v1923_v34  ;;  %v1144_v23 = vshll.u32 %v6096_v50, 16  ;;  %v6461_v17 = vld [vmem:[#allocation2 + $0x20] sm:$0xf0] }
 0x20c   : > { %v1989_v18 = vrot.slane %v6429_v57, 4  ;;  %v1990_v60 = vrot.slane %v5328_v56, 4  ;;  %v727_v42 = vsel %vm5501_vm11, 0, %v726_v44  ;;  %v1105_v39 = vor.u32 %v1104_v45, %v1101_v58  ;;  %v6446_v38 = vpop.permute.xlu1 %3681  ;;  %v6895_v58 = vld [vmem:[#allocation3_spill] sm:$0xff]  ;;  %v6897_v56 = vld [vmem:[#allocation5_spill] sm:$0xff] }
 0x20d   : > { %v3635_v20 = vor.u32 %v3634_v22, %v3631_v9  ;;  %v3639_v13 = vrot.slane %v3637_v25, 4  ;;  %v3642_v41 = vrot.slane %v3640_v35, 5  ;;  %728 = vst [vmem:[#allocation2 + $0x8] sm:$0x10] %v727_v42  ;;  %v1113_v6 = vor.u32 %v1112_v31, %v1109_v11  ;;  %v6896_v11 = vld [vmem:[#allocation8_spill] sm:$0xff]  ;;  %v6898_v42 = vld [vmem:[#allocation10_spill] sm:$0xff] }
 0x20e   : > { %v1135_v2 = vrot.slane %v1133_v16, 3  ;;  %v1138_v7 = vrot.slane %v1136_v59, 4  ;;  %v1991_v14 = vsel %vm1988_vm9, %v1989_v18, %v1990_v60  ;;  %v1122_v50 = vor.u32 %v1121_v5, %v1118_v53  ;;  %v2781_v16 = vld [vmem:[#allocation2 + $0x18] sm:$0x1f]  ;;  %v5330_v18 = vld [vmem:[#allocation2 + $0x28] sm:$0xf] }
 0x20f   : > { %v3643_v62 = vor.u32 %v3642_v41, %v3639_v13  ;;  %v1130_v8 = vor.u32 %v1129_v4, %v1126_v48  ;;  %v1143_v34 = vrot.slane %v1141_v40, 3  ;;  %v1146_v49 = vrot.slane %v1144_v23, 4 }
 0x210   : > { %v2295_v61 = vsel %vm1856_vm15, %v1991_v14, %v6274_v36  ;;  %v1992_v30 = vrot.slane %v1941_v24, 4  ;;  %v1993_v12 = vrot.slane %v5329_v43, 4  ;;  %v1925_v45 = vsel %vm1905_vm0, %v1886_v21, %v6895_v58 }
 0x211   : > { %v1927_v31 = vsel %vm1905_vm0, %v1889_v10, %v6896_v11  ;;  %v3644_v9 = vsel %vm2796_vm14, %v3635_v20, %v3643_v62  ;;  %v2342_v22 = vsel %vm1905_vm0, %v2295_v61, %v6295_v26  ;;  %v1114_v36 = vsel %vm656_vm4, %v1105_v39, %v1113_v6 }
 0x212   : > { %3707 = vrot.lane.b32.xlu1 %v3644_v9, %s5351_s9  ;;  %v1139_v53 = vor.u32 %v1138_v7, %v1135_v2  ;;  %v1994_v44 = vsel %vm1988_vm9, %v1992_v30, %v1993_v12  ;;  %5061 = vmatprep.mubr.msk.bf16.mxu0 %vm2381_vm1, %v2342_v22  ;;  %v1131_v21 = vsel %vm656_vm4, %v1122_v50, %v1130_v8  ;;  %v2798_v10 = vshrl.u32 %v6429_v57, 16  ;;  %v2782_v8 = vld [vmem:[#allocation2 + $0x28] sm:$0x1f] }
 0x213   : > { %v2801_v5 = vshll.u32 %v6429_v57, 16  ;;  %v2298_v26 = vsel %vm1856_vm15, %v1994_v44, %v6293_v19  ;;  %5112 = vmatmul.mubr.msk.bf16.gmra.mrb[0].mxu1 %vm2381_vm1, %v1925_v45  ;;  %v1147_v59 = vor.u32 %v1146_v49, %v1143_v34  ;;  %v2815_v25 = vshrl.u32 %v1941_v24, 16  ;;  %v6499_v45 = vld [vmem:[#allocation2 + $0x30] sm:$0xf0] }
 0x214   : > { %v2780_v40 = vld [vmem:[#allocation2 + $0x8] sm:$0x1f]  ;;  %v2818_v35 = vshll.u32 %v1941_v24, 16  ;;  %v2344_v48 = vsel %vm1905_vm0, %v2298_v26, %v6323_v29  ;;  %5115 = vmatprep.mubr.msk.bf16.mxu1 %vm2381_vm1, %v1927_v31  ;;  %v1995_v57 = vrot.slane %v6461_v17, 4  ;;  %v1996_v19 = vrot.slane %v5330_v18, 4  ;;  %v6478_v41 = vpop.permute.xlu1 %3683  ;;  %v6480_v29 = vpop.permute.xlu0 %2237  ;;  %v6899_v24 = vld [vmem:[#allocation6_spill] sm:$0xff] }
 0x215   : > { %v2806_v4 = vshrl.u32 %v2780_v40, 16  ;;  %v2809_v23 = vshll.u32 %v2780_v40, 16  ;;  %5062 = vmatmul.mubr.msk.bf16.vlgmr.msra.gmra.mrb[32].mxu0 %vm2381_vm1, %v2344_v48  ;;  %v1892_v60 = vsel %vm1856_vm15, %v1114_v36, %v6897_v56  ;;  %v1895_v39 = vsel %vm1856_vm15, %v1131_v21, %v6898_v42  ;;  %v909_v36 = vld [vmem:[#allocation2 + $0xf0] sm:$0xf8]  ;;  %v5331_v26 = vld [vmem:[#allocation2 + $0x38] sm:$0xf] }
 0x216   : > { %v2823_v20 = vshrl.u32 %v2781_v16, 16  ;;  %v2826_v13 = vshll.u32 %v2781_v16, 16  ;;  %v1929_v6 = vsel %vm1905_vm0, %v1892_v60, %v6899_v24  ;;  %v1931_v2 = vsel %vm1905_vm0, %v1895_v39, %v6251_v0  ;;  %v6901_v56 = vld [vmem:[#allocation7_spill] sm:$0xff] }
 0x217   : > { %v1148_v7 = vsel %vm656_vm4, %v1139_v53, %v1147_v59  ;;  %v2800_v14 = vrot.slane %v2798_v10, 4  ;;  %v2803_v62 = vrot.slane %v2801_v5, 5  ;;  %v6487_v50 = vrot.slane %v2815_v25, 4  ;;  %v6900_v53 = vld [vmem:[#allocation9_spill] sm:$0xff] }
 0x218   : > { %v2808_v34 = vrot.slane %v2806_v4, 4  ;;  %v2811_v49 = vrot.slane %v2809_v23, 5  ;;  %v6489_v61 = vrot.slane %v2818_v35, 5  ;;  %v1997_v30 = vsel %vm1988_vm9, %v1995_v57, %v1996_v19  ;;  %v6511_v21 = vpop.permute.xlu0 %2239  ;;  %v907_v35 = vld [vmem:[#allocation2 + $0xe0] sm:$0xf8] }
 0x219   : > { %v6492_v43 = vrot.slane %v2823_v20, 4  ;;  %v6494_v12 = vrot.slane %v2826_v13, 5  ;;  %v2301_v0 = vsel %vm1856_vm15, %v1997_v30, %v6335_v63  ;;  %v2832_v58 = vshrl.u32 %v6461_v17, 16  ;;  %v6509_v63 = vpop.permute.xlu1 %3653 }
 0x21a   : > { %v2835_v11 = vshll.u32 %v6461_v17, 16  ;;  %v2840_v31 = vshrl.u32 %v2782_v8, 16  ;;  %v2843_v9 = vshll.u32 %v2782_v8, 16  ;;  %v2346_v22 = vsel %vm1905_vm0, %v2301_v0, %v6385_v47  ;;  %v6902_v0 = vld [vmem:[#allocation4_spill] sm:$0xff] }
 0x21b   : > { %5116 = vmatmul.mubr.msk.bf16.gmra.mrb[4].mxu1 %vm2381_vm1, %v1929_v6  ;;  %v1898_v44 = vsel %vm1856_vm15, %v1148_v7, %v6900_v53  ;;  %5065 = vmatprep.mubr.msk.bf16.mxu0 %vm2381_vm1, %v2346_v22  ;;  %v2804_v17 = vor.u32 %v2803_v62, %v2800_v14  ;;  %v2812_v10 = vor.u32 %v2811_v49, %v2808_v34  ;;  %v1998_v5 = vrot.slane %v6499_v45, 4  ;;  %v2783_v6 = vld [vmem:[#allocation2 + $0x38] sm:$0x1f] }
 0x21c   : > { %5119 = vmatprep.mubr.msk.bf16.mxu1 %vm2381_vm1, %v1931_v2  ;;  %v1999_v47 = vrot.slane %v5331_v26, 4  ;;  %v2821_v16 = vor.u32 %v6489_v61, %v6487_v50  ;;  %v2829_v59 = vor.u32 %v6494_v12, %v6492_v43  ;;  %v1167_v40 = vshrl.u32 %v909_v36, 16  ;;  %v5334_v43 = vld [vmem:[#allocation2 + $0x68] sm:$0xf] }
 0x21d   : > { %v1170_v25 = vshll.u32 %v909_v36, 16  ;;  %v6518_v48 = vrot.slane %v2832_v58, 4  ;;  %v6520_v4 = vrot.slane %v2835_v11, 5  ;;  %v6522_v23 = vrot.slane %v2840_v31, 4  ;;  %v2270_v8 = vpop.permute.xlu1 %2269  ;;  %v1944_v31 = vld [vmem:[#allocation2 + $0x40] sm:$0xf0] }
 0x21e   : > { %v6524_v57 = vrot.slane %v2843_v9, 5  ;;  %v1169_v18 = vrot.slane %v1167_v40, 3  ;;  %v1175_v60 = vshrl.u32 %v6901_v56, 16  ;;  %v1178_v42 = vshll.u32 %v6901_v56, 16  ;;  %v5332_v40 = vld [vmem:[#allocation2 + $0x48] sm:$0xf] }
 0x21f   : > { %v1172_v19 = vrot.slane %v1170_v25, 4  ;;  %v2813_v39 = vsel %vm2796_vm14, %v2804_v17, %v2812_v10  ;;  %v2000_v20 = vsel %vm1988_vm9, %v1998_v5, %v1999_v47  ;;  %v1933_v13 = vsel %vm1905_vm0, %v1898_v44, %v6434_v46  ;;  %v6549_v56 = vld [vmem:[#allocation2 + $0x50] sm:$0xf0] }
 0x220   : > { %v1150_v24 = vshrl.u32 %v907_v35, 16  ;;  %v2849_v2 = vshrl.u32 %v6499_v45, 16  ;;  %v1177_v7 = vrot.slane %v1175_v60, 3  ;;  %v1180_v14 = vrot.slane %v1178_v42, 4 }
 0x221   : > { %v1153_v62 = vshll.u32 %v907_v35, 16  ;;  %v1173_v49 = vor.u32 %v1172_v19, %v1169_v18  ;;  %v1158_v58 = vshrl.u32 %v6902_v0, 16  ;;  %v1161_v11 = vshll.u32 %v6902_v0, 16  ;;  %v5333_v0 = vld [vmem:[#allocation2 + $0x58] sm:$0xf] }
 0x222   : > { %v6533_v34 = vpop.permute.xlu0 %3655  ;;  %v1152_v30 = vrot.slane %v1150_v24, 3  ;;  %v2304_v46 = vsel %vm1856_vm15, %v2000_v20, %v6364_v28  ;;  %v2852_v9 = vshll.u32 %v6499_v45, 16  ;;  %v1181_v22 = vor.u32 %v1180_v14, %v1177_v7  ;;  %v2784_v28 = vld [vmem:[#allocation2 + $0x48] sm:$0x1f] }
 0x223   : > { %5120 = vmatmul.mubr.msk.bf16.gmra.mrb[8].mxu1 %vm2381_vm1, %v1933_v13  ;;  %v1155_v36 = vrot.slane %v1153_v62, 4  ;;  %v3711_v53 = vsel %vm1856_vm15, %v2813_v39, %v6264_v33  ;;  %v1160_v44 = vrot.slane %v1158_v58, 3  ;;  %v1163_v17 = vrot.slane %v1161_v11, 4  ;;  %v6553_v20 = vpop.permute.xlu1 %3685 }
 0x224   : > { %v2348_v10 = vsel %vm1905_vm0, %v2304_v46, %v6448_v54  ;;  %v2857_v5 = vshrl.u32 %v2783_v6, 16  ;;  %v2001_v47 = vrot.slane %v1944_v31, 4  ;;  %v2002_v25 = vrot.slane %v5332_v40, 4  ;;  %v6903_v46 = vld [vmem:[#allocation11_spill] sm:$0xff] }
 0x225   : > { %v1156_v26 = vor.u32 %v1155_v36, %v1152_v30  ;;  %5066 = vmatmul.mubr.msk.bf16.gmra.mrb[36].mxu0 %vm2381_vm1, %v2348_v10  ;;  %v6546_v45 = vrot.slane %v2849_v2, 4  ;;  %v2860_v18 = vshll.u32 %v2783_v6, 16  ;;  %v1182_v19 = vsel %vm656_vm4, %v1173_v49, %v1181_v22  ;;  %v1946_v10 = vld [vmem:[#allocation2 + $0x60] sm:$0xf0] }
 0x226   : > { %v2272_v35 = vpop.permute.xlu0 %2271  ;;  %v1164_v33 = vor.u32 %v1163_v17, %v1160_v44  ;;  %v2854_v60 = vrot.slane %v2852_v9, 5  ;;  %v1904_v54 = vsel %vm1856_vm15, %v1182_v19, %v6411_v1  ;;  %v2866_v42 = vshrl.u32 %v1944_v31, 16 }
 0x227   : > { %v2869_v39 = vshll.u32 %v1944_v31, 16  ;;  %v2003_v24 = vsel %vm1988_vm9, %v2001_v47, %v2002_v25  ;;  %v2874_v2 = vshrl.u32 %v2784_v28, 16  ;;  %v2877_v7 = vshll.u32 %v2784_v28, 16  ;;  %v2786_v25 = vld [vmem:[#allocation2 + $0x68] sm:$0x1f] }
 0x228   : > { %v1165_v13 = vsel %vm656_vm4, %v1156_v26, %v1164_v33  ;;  %v2859_v6 = vrot.slane %v2857_v5, 4  ;;  %v2307_v62 = vsel %vm1856_vm15, %v2003_v24, %v6480_v29  ;;  %v2004_v49 = vrot.slane %v6549_v56, 4 }
 0x229   : > { %v1901_v14 = vsel %vm1856_vm15, %v1165_v13, %v6436_v32  ;;  %v2862_v1 = vrot.slane %v2860_v18, 5  ;;  %v2005_v58 = vrot.slane %v5333_v0, 4  ;;  %v2350_v11 = vsel %vm1905_vm0, %v2307_v62, %v2270_v8 }
 0x22a   : > { %v1935_v30 = vsel %vm1905_vm0, %v1901_v14, %v6413_v37  ;;  %v3758_v31 = vsel %vm1905_vm0, %v3711_v53, %v6314_v52  ;;  %v1937_v32 = vsel %vm1905_vm0, %v1904_v54, %v6903_v46  ;;  %v2868_v9 = vrot.slane %v2866_v42, 4  ;;  %5069 = vmatprep.mubr.msk.bf16.mxu0 %vm2381_vm1, %v2350_v11  ;;  %v2242_v29 = vpop.permute.xlu0 %2241 }
 0x22b   : > { %5123 = vmatprep.mubr.msk.bf16.mxu1 %vm2381_vm1, %v1935_v30  ;;  %v2871_v22 = vrot.slane %v2869_v39, 5  ;;  %v2876_v37 = vrot.slane %v2874_v2, 4  ;;  %v2879_v36 = vrot.slane %v2877_v7, 5  ;;  %v2006_v44 = vsel %vm1988_vm9, %v2004_v49, %v2005_v58  ;;  %v6580_v17 = vpop.permute.xlu1 %3687  ;;  %v1947_v39 = vld [vmem:[#allocation2 + $0x70] sm:$0xf0] }
 0x22c   : > { %5124 = vmatmul.mubr.msk.bf16.gmra.mrb[12].mxu1 %vm2381_vm1, %v1937_v32  ;;  %v2838_v8 = vor.u32 %v6520_v4, %v6518_v48  ;;  %v2846_v52 = vor.u32 %v6524_v57, %v6522_v23  ;;  %v2310_v53 = vsel %vm1856_vm15, %v2006_v44, %v6511_v21  ;;  %v2830_v5 = vsel %vm2796_vm14, %v2821_v16, %v2829_v59  ;;  %v2785_v23 = vld [vmem:[#allocation2 + $0x58] sm:$0x1f] }
 0x22d   : > { %5129 = vmatprep.mubr.msk.bf16.mxu1 %vm2381_vm1, %v3758_v31  ;;  %v2855_v48 = vor.u32 %v2854_v60, %v6546_v45  ;;  %v2863_v4 = vor.u32 %v2862_v1, %v2859_v6  ;;  %v2352_v57 = vsel %vm1905_vm0, %v2310_v53, %v2272_v35  ;;  %v3714_v21 = vsel %vm1856_vm15, %v2830_v5, %v6302_v55  ;;  %v2787_v1 = vld [vmem:[#allocation2 + $0x78] sm:$0x1f] }
 0x22e   : > { %5070 = vmatmul.mubr.msk.bf16.gmra.mrb[40].mxu0 %vm2381_vm1, %v2352_v57  ;;  %v2872_v26 = vor.u32 %v2871_v22, %v2868_v9  ;;  %v2880_v47 = vor.u32 %v2879_v36, %v2876_v37  ;;  %v2007_v40 = vrot.slane %v1946_v10, 4  ;;  %v2008_v12 = vrot.slane %v5334_v43, 4  ;;  %v2244_v35 = vpop.permute.xlu0 %2243  ;;  %v2788_v37 = vld [vmem:[#allocation2 + $0x88] sm:$0x1f] }
 0x22f   : > { %v2847_v50 = vsel %vm2796_vm14, %v2838_v8, %v2846_v52  ;;  %v2883_v61 = vshrl.u32 %v6549_v56, 16  ;;  %v2886_v16 = vshll.u32 %v6549_v56, 16  ;;  %v2891_v59 = vshrl.u32 %v2785_v23, 16  ;;  %v6597_v28 = vpop.permute.xlu1 %3657 }
 0x230   : > { %v3760_v55 = vsel %vm1905_vm0, %v3714_v21, %v6333_v51  ;;  %v3717_v45 = vsel %vm1856_vm15, %v2847_v50, %v6362_v27  ;;  %v2864_v18 = vsel %vm2796_vm14, %v2855_v48, %v2863_v4  ;;  %v2894_v19 = vshll.u32 %v2785_v23, 16  ;;  %v5335_v48 = vld [vmem:[#allocation2 + $0x80] sm:$0xf0] }
 0x231   : > { %v2900_v33 = vshrl.u32 %v1946_v10, 16  ;;  %v2903_v60 = vshll.u32 %v1946_v10, 16  ;;  %v2908_v54 = vshrl.u32 %v2786_v25, 16  ;;  %v2911_v42 = vshll.u32 %v2786_v25, 16 }
 0x232   : > { %v3720_v56 = vsel %vm1856_vm15, %v2864_v18, %v6387_v3  ;;  %v3762_v13 = vsel %vm1905_vm0, %v3717_v45, %v6446_v38  ;;  %v2881_v24 = vsel %vm2796_vm14, %v2872_v26, %v2880_v47  ;;  %v2009_v51 = vsel %vm1988_vm9, %v2007_v40, %v2008_v12 }
 0x233   : > { %v2885_v27 = vrot.slane %v2883_v61, 4  ;;  %v2888_v2 = vrot.slane %v2886_v16, 5  ;;  %v2893_v7 = vrot.slane %v2891_v59, 4  ;;  %v2313_v6 = vsel %vm1856_vm15, %v2009_v51, %v2242_v29  ;;  %v2274_v14 = vpop.permute.xlu1 %2273  ;;  %v2789_v61 = vld [vmem:[#allocation2 + $0x98] sm:$0x1f] }
 0x234   : > { %5130 = vmatmul.mubr.msk.bf16.vlgmr.msra.gmra.mrb[16].mxu1 %vm2381_vm1, %v3760_v55  ;;  %v2896_v62 = vrot.slane %v2894_v19, 5  ;;  %v2010_v49 = vrot.slane %v1947_v39, 4  ;;  %v2011_v3 = vrot.slane %v6231_v15, 4  ;;  %v2354_v38 = vsel %vm1905_vm0, %v2313_v6, %v2274_v14 }
 0x235   : > { %5133 = vmatprep.mubr.msk.bf16.mxu1 %vm2381_vm1, %v3762_v13  ;;  %v2902_v30 = vrot.slane %v2900_v33, 4  ;;  %v2905_v0 = vrot.slane %v2903_v60, 5  ;;  %v2910_v58 = vrot.slane %v2908_v54, 4  ;;  %v2913_v11 = vrot.slane %v2911_v42, 5  ;;  %5073 = vmatprep.mubr.msk.bf16.mxu0 %vm2381_vm1, %v2354_v38  ;;  %v5336_v60 = vld [vmem:[#allocation2 + $0x90] sm:$0xf0] }
 0x236   : > { %v6615_v31 = vpop.permute.xlu0 %3659  ;;  %v3764_v46 = vsel %vm1905_vm0, %v3720_v56, %v6478_v41  ;;  %v3723_v32 = vsel %vm1856_vm15, %v2881_v24, %v6509_v63  ;;  %v2917_v9 = vshrl.u32 %v1947_v39, 16  ;;  %v2920_v29 = vshll.u32 %v1947_v39, 16 }
 0x237   : > { %v2925_v15 = vshrl.u32 %v2787_v1, 16  ;;  %v2928_v22 = vshll.u32 %v2787_v1, 16  ;;  %v2889_v36 = vor.u32 %v2888_v2, %v2885_v27  ;;  %v2897_v44 = vor.u32 %v2896_v62, %v2893_v7  ;;  %v3690_v63 = vpop.permute.xlu1 %3689  ;;  %v2790_v2 = vld [vmem:[#allocation2 + $0xa8] sm:$0x1f] }
 0x238   : > { %v3766_v8 = vsel %vm1905_vm0, %v3723_v32, %v6553_v20  ;;  %v2012_v52 = vsel %vm1988_vm9, %v2010_v49, %v2011_v3  ;;  %v2906_v53 = vor.u32 %v2905_v0, %v2902_v30  ;;  %v2914_v10 = vor.u32 %v2913_v11, %v2910_v58  ;;  %v5337_v3 = vld [vmem:[#allocation2 + $0xa0] sm:$0xf0] }
 0x239   : > { %v2316_v5 = vsel %vm1856_vm15, %v2012_v52, %v2244_v35  ;;  %v2934_v4 = vshrl.u32 %v5335_v48, 16  ;;  %v2937_v57 = vshll.u32 %v5335_v48, 16  ;;  %v2942_v21 = vshrl.u32 %v2788_v37, 16  ;;  %v2791_v52 = vld [vmem:[#allocation2 + $0xb8] sm:$0x1f] }
 0x23a   : > { %v2276_v41 = vpop.permute.xlu0 %2275  ;;  %v2945_v26 = vshll.u32 %v2788_v37, 16  ;;  %v2919_v20 = vrot.slane %v2917_v9, 4  ;;  %v2922_v47 = vrot.slane %v2920_v29, 5  ;;  %v2927_v40 = vrot.slane %v2925_v15, 4  ;;  %v5338_v48 = vld [vmem:[#allocation2 + $0xb0] sm:$0xf0] }
 0x23b   : > { %v2356_v23 = vsel %vm1905_vm0, %v2316_v5, %v2276_v41  ;;  %v2930_v43 = vrot.slane %v2928_v22, 5  ;;  %v2898_v12 = vsel %vm2796_vm14, %v2889_v36, %v2897_v44  ;;  %v2915_v50 = vsel %vm2796_vm14, %v2906_v53, %v2914_v10 }
 0x23c   : > { %5134 = vmatmul.mubr.msk.bf16.gmra.mrb[20].mxu1 %vm2381_vm1, %v3764_v46  ;;  %5074 = vmatmul.mubr.msk.bf16.gmra.mrb[44].mxu0 %vm2381_vm1, %v2356_v23  ;;  %v3726_v25 = vsel %vm1856_vm15, %v2898_v12, %v6533_v34  ;;  %v2936_v16 = vrot.slane %v2934_v4, 4  ;;  %v2939_v59 = vrot.slane %v2937_v57, 5  ;;  %v2944_v35 = vrot.slane %v2942_v21, 4 }
 0x23d   : > { %5137 = vmatprep.mubr.msk.bf16.mxu1 %vm2381_vm1, %v3766_v8  ;;  %v2947_v55 = vrot.slane %v2945_v26, 5  ;;  %v3729_v45 = vsel %vm1856_vm15, %v2915_v50, %v6597_v28  ;;  %v2923_v18 = vor.u32 %v2922_v47, %v2919_v20  ;;  %v2931_v19 = vor.u32 %v2930_v43, %v2927_v40 }
 0x23e   : > { %v3662_v33 = vpop.permute.xlu0 %3661  ;;  %v2951_v54 = vshrl.u32 %v5336_v60, 16  ;;  %v3770_v42 = vsel %vm1905_vm0, %v3729_v45, %v3690_v63  ;;  %v3692_v39 = vpop.permute.xlu1 %3691  ;;  %v2954_v56 = vshll.u32 %v5336_v60, 16  ;;  %v2959_v34 = vshrl.u32 %v2789_v61, 16 }
 0x23f   : > { %v2962_v13 = vshll.u32 %v2789_v61, 16  ;;  %v3768_v24 = vsel %vm1905_vm0, %v3726_v25, %v6580_v17  ;;  %v2940_v51 = vor.u32 %v2939_v59, %v2936_v16  ;;  %v2948_v27 = vor.u32 %v2947_v55, %v2944_v35  ;;  %v2792_v61 = vld [vmem:[#allocation2 + $0xc8] sm:$0x1f]  ;;  %v5339_v59 = vld [vmem:[#allocation2 + $0xc0] sm:$0xf0] }
 0x240   : > { %v2932_v28 = vsel %vm2796_vm14, %v2923_v18, %v2931_v19  ;;  %v2953_v7 = vrot.slane %v2951_v54, 4  ;;  %v2956_v6 = vrot.slane %v2954_v56, 5  ;;  %v2961_v14 = vrot.slane %v2959_v34, 4 }
 0x241   : > { %v2964_v62 = vrot.slane %v2962_v13, 5  ;;  %v2968_v38 = vshrl.u32 %v5337_v3, 16  ;;  %v2971_v1 = vshll.u32 %v5337_v3, 16  ;;  %v2976_v30 = vshrl.u32 %v2790_v2, 16 }
 0x242   : > { %v2979_v0 = vshll.u32 %v2790_v2, 16  ;;  %v3732_v17 = vsel %vm1856_vm15, %v2932_v28, %v6615_v31  ;;  %v2949_v58 = vsel %vm2796_vm14, %v2940_v51, %v2948_v27  ;;  %v2957_v9 = vor.u32 %v2956_v6, %v2953_v7  ;;  %v2793_v28 = vld [vmem:[#allocation2 + $0xd8] sm:$0x1f]  ;;  %v5340_v7 = vld [vmem:[#allocation2 + $0xd0] sm:$0xf0] }
 0x243   : > { %v3772_v46 = vsel %vm1905_vm0, %v3732_v17, %v3692_v39  ;;  %v3735_v32 = vsel %vm1856_vm15, %v2949_v58, %v3662_v33  ;;  %v2965_v29 = vor.u32 %v2964_v62, %v2961_v14  ;;  %v2970_v22 = vrot.slane %v2968_v38, 4 }
 0x244   : > { %5138 = vmatmul.mubr.msk.bf16.gmra.mrb[24].mxu1 %vm2381_vm1, %v3768_v24  ;;  %v3664_v11 = vpop.permute.xlu1 %3663  ;;  %v2973_v37 = vrot.slane %v2971_v1, 5  ;;  %v2978_v36 = vrot.slane %v2976_v30, 4  ;;  %v2981_v44 = vrot.slane %v2979_v0, 5  ;;  %v2985_v4 = vshrl.u32 %v5338_v48, 16 }
 0x245   : > { %5141 = vmatprep.mubr.msk.bf16.mxu1 %vm2381_vm1, %v3770_v42  ;;  %v3694_v49 = vpop.permute.xlu0 %3693  ;;  %v2966_v53 = vsel %vm2796_vm14, %v2957_v9, %v2965_v29  ;;  %v2988_v23 = vshll.u32 %v5338_v48, 16  ;;  %v2993_v57 = vshrl.u32 %v2791_v52, 16  ;;  %v2996_v21 = vshll.u32 %v2791_v52, 16  ;;  %v4112_v29 = vld [vmem:[%s6866_s5] sm:$0x3] }
 0x246   : > { %v3774_v15 = vsel %vm1905_vm0, %v3735_v32, %v3694_v49  ;;  %v2974_v10 = vor.u32 %v2973_v37, %v2970_v22  ;;  %v2982_v5 = vor.u32 %v2981_v44, %v2978_v36  ;;  %v3738_v41 = vsel %vm1856_vm15, %v2966_v53, %v3664_v11  ;;  %v5341_v32 = vld [vmem:[#allocation2 + $0xe0] sm:$0xf0]  ;;  %5265 = vmatprep.subr.msk.bf16.mxu0 %vm4168_vm3, %v4112_v29 }
 0x247   : > { %v2987_v47 = vrot.slane %v2985_v4, 4  ;;  %v2990_v43 = vrot.slane %v2988_v23, 5  ;;  %v2995_v12 = vrot.slane %v2993_v57, 4  ;;  %v2998_v25 = vrot.slane %v2996_v21, 5 }
 0x248   : > { %v2983_v26 = vsel %vm2796_vm14, %v2974_v10, %v2982_v5  ;;  %v3002_v35 = vshrl.u32 %v5339_v59, 16  ;;  %v3005_v55 = vshll.u32 %v5339_v59, 16  ;;  %v3010_v19 = vshrl.u32 %v2792_v61, 16 }
 0x249   : > { %v2991_v45 = vor.u32 %v2990_v43, %v2987_v47  ;;  %v2999_v18 = vor.u32 %v2998_v25, %v2995_v12  ;;  %v3013_v33 = vshll.u32 %v2792_v61, 16  ;;  %v3019_v6 = vshrl.u32 %v5340_v7, 16 }
 0x24a   : > { %v3004_v60 = vrot.slane %v3002_v35, 4  ;;  %v3007_v42 = vrot.slane %v3005_v55, 5  ;;  %v3012_v39 = vrot.slane %v3010_v19, 4  ;;  %v3022_v14 = vshll.u32 %v5340_v7, 16 }
 0x24b   : > { %v3000_v54 = vsel %vm2796_vm14, %v2991_v45, %v2999_v18  ;;  %v3015_v56 = vrot.slane %v3013_v33, 5  ;;  %v3027_v62 = vshrl.u32 %v2793_v28, 16  ;;  %v3030_v49 = vshll.u32 %v2793_v28, 16 }
 0x24c   : > { %5142 = vmatmul.mubr.msk.bf16.gmra.mrb[28].mxu1 %vm2381_vm1, %v3772_v46  ;;  %v3696_v31 = vpop.permute.xlu1 %3695  ;;  %v3008_v27 = vor.u32 %v3007_v42, %v3004_v60  ;;  %v3021_v0 = vrot.slane %v3019_v6, 4  ;;  %v3024_v17 = vrot.slane %v3022_v14, 5  ;;  %v2794_v46 = vld [vmem:[#allocation2 + $0xe8] sm:$0x1f]  ;;  %v3036_v9 = vshrl.u32 %v5341_v32, 16 }
 0x24d   : > { %5145 = vmatprep.mubr.msk.bf16.mxu1 %vm2381_vm1, %v3774_v15  ;;  %v3666_v8 = vpop.permute.xlu0 %3665  ;;  %v3776_v63 = vsel %vm1905_vm0, %v3738_v41, %v3696_v31  ;;  %v3016_v2 = vor.u32 %v3015_v56, %v3012_v39  ;;  %v3029_v58 = vrot.slane %v3027_v62, 4  ;;  %v3032_v11 = vrot.slane %v3030_v49, 5 }
 0x24e   : > { %v3741_v20 = vsel %vm1856_vm15, %v2983_v26, %v3666_v8  ;;  %v3039_v22 = vshll.u32 %v5341_v32, 16  ;;  %v3044_v37 = vshrl.u32 %v2794_v46, 16  ;;  %v3047_v36 = vshll.u32 %v2794_v46, 16  ;;  %v2795_v26 = vld [vmem:[#allocation2 + $0xf8] sm:$0x1f] }
 0x24f   : > { %v3017_v3 = vsel %vm2796_vm14, %v3008_v27, %v3016_v2  ;;  %v4170_v44 = vsel %vm4168_vm3, %v4112_v29, 0  ;;  %v3025_v31 = vor.u32 %v3024_v17, %v3021_v0  ;;  %v3033_v8 = vor.u32 %v3032_v11, %v3029_v58 }
 0x250   : > { %5162 = vmatpush3.bf16.msra.mxu0 %v4170_v44  ;;  %v3038_v52 = vrot.slane %v3036_v9, 4  ;;  %v3041_v53 = vrot.slane %v3039_v22, 5  ;;  %v3046_v10 = vrot.slane %v3044_v37, 4  ;;  %v3049_v5 = vrot.slane %v3047_v36, 5 }
 0x251   : > { %v3034_v41 = vsel %vm2796_vm14, %v3025_v31, %v3033_v8  ;;  %v3061_v43 = vshrl.u32 %v2795_v26, 16  ;;  %v3064_v12 = vshll.u32 %v2795_v26, 16  ;;  %vm4589_vm4 = vcmask 125952  }
 0x252   : > { %v3042_v57 = vor.u32 %v3041_v53, %v3038_v52  ;;  %v3050_v21 = vor.u32 %v3049_v5, %v3046_v10 }
 0x253   : > { %v3063_v55 = vrot.slane %v3061_v43, 4  ;;  %v3066_v45 = vrot.slane %v3064_v12, 5 }
 0x254   : > { %5146 = vmatmul.mubr.msk.bf16.gmra.mrb[0].mxu1 %vm2381_vm1, %v3776_v63  ;;  %v3668_v16 = vpop.permute.xlu1 %3667  ;;  %v3051_v25 = vsel %vm2796_vm14, %v3042_v57, %v3050_v21 }
 0x255   : > { %v3698_v40 = vpop.permute.xlu0 %3697  ;;  %v3744_v34 = vsel %vm1856_vm15, %v3000_v54, %v3668_v16  ;;  %v3067_v33 = vor.u32 %v3066_v45, %v3063_v55 }
 0x256   : > { %v3778_v50 = vsel %vm1905_vm0, %v3741_v20, %v3698_v40  ;;  %v5342_v20 = vld [vmem:[#allocation2 + $0xf0] sm:$0xf0] }
 0x257   : > { %5149 = vmatprep.mubr.msk.bf16.mxu1 %vm2381_vm1, %v3778_v50  ;;  %v3053_v47 = vshrl.u32 %v5342_v20, 16  ;;  %v3056_v40 = vshll.u32 %v5342_v20, 16 }
 0x259   : > { %v3055_v59 = vrot.slane %v3053_v47, 4  ;;  %v3058_v35 = vrot.slane %v3056_v40, 5 }
 0x25b   : > { %v3059_v19 = vor.u32 %v3058_v35, %v3055_v59 }
 0x25d   : > { %v3068_v60 = vsel %vm2796_vm14, %v3059_v19, %v3067_v33 }
 0x25f   : > { %v3700_v13 = vpop.permute.xlu1 %3699  ;;  %v3670_v51 = vpop.permute.xlu0 %3669 }
 0x260   : > { %v3780_v24 = vsel %vm1905_vm0, %v3744_v34, %v3700_v13  ;;  %v3747_v38 = vsel %vm1856_vm15, %v3017_v3, %v3670_v51  ;;  %v6684_v3 = vld [vmem:[%s6865_s4] ss:$0 sm:$0xff] }
 0x261   : > { %5150 = vmatmul.mubr.msk.bf16.gmra.mrb[4].mxu1 %vm2381_vm1, %v3780_v24 }
 0x266   : > { %v3672_v15 = vpop.permute.xlu1 %3671 }
 0x267   : > { %v3702_v1 = vpop.permute.xlu0 %3701  ;;  %v3750_v48 = vsel %vm1856_vm15, %v3034_v41, %v3672_v15 }
 0x268   : > { %v3782_v30 = vsel %vm1905_vm0, %v3747_v38, %v3702_v1 }
 0x269   : > { %5153 = vmatprep.mubr.msk.bf16.mxu1 %vm2381_vm1, %v3782_v30 }
 0x272   : > { %v3704_v4 = vpop.permute.xlu1 %3703 }
 0x273   : > { %v3784_v63 = vsel %vm1905_vm0, %v3750_v48, %v3704_v4  ;;  %v3674_v23 = vpop.permute.xlu0 %3673 }
 0x274   : > { %5154 = vmatmul.mubr.msk.bf16.gmra.mrb[8].mxu1 %vm2381_vm1, %v3784_v63  ;;  %v3753_v50 = vsel %vm1856_vm15, %v3051_v25, %v3674_v23 }
 0x278   : > { %v3676_v18 = vpop.permute.xlu1 %3675 }
 0x279   : > { %v3706_v61 = vpop.permute.xlu0 %3705  ;;  %v3756_v54 = vsel %vm1856_vm15, %v3068_v60, %v3676_v18 }
 0x27a   : > { %v3786_v16 = vsel %vm1905_vm0, %v3753_v50, %v3706_v61 }
 0x27b   : > { %5157 = vmatprep.mubr.msk.bf16.mxu1 %vm2381_vm1, %v3786_v16 }
 0x284   : > { %v3708_v42 = vpop.permute.xlu1 %3707 }
 0x285   : > { %v3788_v39 = vsel %vm1905_vm0, %v3756_v54, %v3708_v42 }
 0x286   : > { %5158 = vmatmul.mubr.msk.bf16.gmra.mrb[12].mxu1 %vm2381_vm1, %v3788_v39 }
 0x2e8   : > { %v5063_v56 = vpop.f32.mrb[32].mxu0 }
 0x2e9   : > { %v2452_v34 = vpop.f32.mrb[33].mxu0 }
 0x2ea   : > { %v5064_v13 = vpop.f32.mrb[34].mxu0 }
 0x2eb   : > { %v2455_v24 = vpop.f32.mrb[35].mxu0 }
 0x2f8   : > { %v5067_v51 = vpop.f32.mrb[36].mxu0 }
 0x2f9   : > { %v2468_v27 = vpop.f32.mrb[37].mxu0 }
 0x2fa   : > { %v5068_v2 = vpop.f32.mrb[38].mxu0 }
 0x2fb   : > { %v2471_v28 = vpop.f32.mrb[39].mxu0 }
 0x301   : > { %v5071_v7 = vpop.f32.mrb[40].mxu0 }
 0x302   : > { %v2484_v6 = vpop.f32.mrb[41].mxu0 }
 0x303   : > { %v5072_v14 = vpop.f32.mrb[42].mxu0 }
 0x304   : > { %v2487_v62 = vpop.f32.mrb[43].mxu0 }
 0x307   : > { %v5131_v49 = vpop.f32.mrb[16].mxu1 }
 0x308   : > { %v5197_v38 = vadd.f32 %v5131_v49, %v5063_v56  ;;  %v3866_v1 = vpop.f32.mrb[17].mxu1 }
 0x309   : > { %v5198_v30 = vadd.f32 %v3866_v1, %v2452_v34  ;;  %v5132_v0 = vpop.f32.mrb[18].mxu1 }
 0x30a   : > { %v4034_v17 = vadd.f32 %v5197_v38, %v6684_v3  ;;  %v5199_v58 = vadd.f32 %v5132_v0, %v5064_v13  ;;  %v3869_v11 = vpop.f32.mrb[19].mxu1 }
 0x30b   : > { %v4032_v46 = vadd.f32 %v5198_v30, %v6684_v3  ;;  %v5200_v32 = vadd.f32 %v3869_v11, %v2455_v24 }
 0x30c   : > { %v4035_v9 = vadd.f32 %v5199_v58, %v6684_v3  ;;  %v4066_v15 = vmax.f32 %v4034_v17, 0.0 }
 0x30d   : > { %v4033_v29 = vadd.f32 %v5200_v32, %v6684_v3  ;;  %v4064_v37 = vmax.f32 %v4032_v46, 0.0 }
 0x30e   : > { %v4067_v22 = vmax.f32 %v4035_v9, 0.0 }
 0x30f   : > { %v4065_v36 = vmax.f32 %v4033_v29, 0.0  ;;  %v5135_v44 = vpop.f32.mrb[20].mxu1  ;;  %v5075_v53 = vpop.f32.mrb[44].mxu0 }
 0x310   : > { %v4097_v31 = vpack.c.bf16 %v4067_v22, %v4066_v15  ;;  %v5201_v8 = vadd.f32 %v5135_v44, %v5067_v51  ;;  %v3882_v52 = vpop.f32.mrb[21].mxu1  ;;  %v2500_v48 = vpop.f32.mrb[45].mxu0 }
 0x311   : > { %v4096_v10 = vpack.c.bf16 %v4065_v36, %v4064_v37  ;;  %v5202_v5 = vadd.f32 %v3882_v52, %v2468_v27  ;;  %v5136_v41 = vpop.f32.mrb[22].mxu1  ;;  %v5076_v57 = vpop.f32.mrb[46].mxu0 }
 0x312   : > { %v4038_v4 = vadd.f32 %v5201_v8, %v6684_v3  ;;  %v5203_v63 = vadd.f32 %v5136_v41, %v5068_v2  ;;  %v3885_v23 = vpop.f32.mrb[23].mxu1  ;;  %v2503_v20 = vpop.f32.mrb[47].mxu0 }
 0x313   : > { %v4036_v21 = vadd.f32 %v5202_v5, %v6684_v3  ;;  %v5204_v26 = vadd.f32 %v3885_v23, %v2471_v28  ;;  %5163 = vmatprep.mubr.msk.bf16.mxu0 %vm1856_vm15, %v4096_v10 }
 0x314   : > { %v4039_v47 = vadd.f32 %v5203_v63, %v6684_v3  ;;  %5164 = vmatmul.mubr.msk.bf16.vlgmr.msra.gmra.mrb[48].mxu0 %vm1856_vm15, %v4097_v31  ;;  %v4070_v43 = vmax.f32 %v4038_v4, 0.0 }
 0x315   : > { %v4037_v40 = vadd.f32 %v5204_v26, %v6684_v3  ;;  %v4068_v25 = vmax.f32 %v4036_v21, 0.0 }
 0x316   : > { %v4071_v12 = vmax.f32 %v4039_v47, 0.0 }
 0x317   : > { %v4069_v50 = vmax.f32 %v4037_v40, 0.0  ;;  %v5139_v61 = vpop.f32.mrb[24].mxu1 }
 0x318   : > { %v4099_v16 = vpack.c.bf16 %v4071_v12, %v4070_v43  ;;  %v5205_v59 = vadd.f32 %v5139_v61, %v5071_v7  ;;  %v3898_v35 = vpop.f32.mrb[25].mxu1 }
 0x319   : > { %v4098_v55 = vpack.c.bf16 %v4069_v50, %v4068_v25  ;;  %v5206_v45 = vadd.f32 %v3898_v35, %v2484_v6  ;;  %v5140_v18 = vpop.f32.mrb[26].mxu1 }
 0x31a   : > { %v4042_v19 = vadd.f32 %v5205_v59, %v6684_v3  ;;  %v5207_v33 = vadd.f32 %v5140_v18, %v5072_v14  ;;  %v3901_v60 = vpop.f32.mrb[27].mxu1 }
 0x31b   : > { %v4040_v54 = vadd.f32 %v5206_v45, %v6684_v3  ;;  %v5208_v42 = vadd.f32 %v3901_v60, %v2487_v62  ;;  %5167 = vmatprep.mubr.msk.bf16.mxu0 %vm1856_vm15, %v4098_v55 }
 0x31c   : > { %v4043_v39 = vadd.f32 %v5207_v33, %v6684_v3  ;;  %5168 = vmatmul.mubr.msk.bf16.gmra.mrb[52].mxu0 %vm1856_vm15, %v4099_v16  ;;  %v4074_v34 = vmax.f32 %v4042_v19, 0.0 }
 0x31d   : > { %v4041_v56 = vadd.f32 %v5208_v42, %v6684_v3  ;;  %v4072_v24 = vmax.f32 %v4040_v54, 0.0 }
 0x31e   : > { %v4075_v13 = vmax.f32 %v4043_v39, 0.0 }
 0x31f   : > { %v4073_v51 = vmax.f32 %v4041_v56, 0.0  ;;  %v5143_v27 = vpop.f32.mrb[28].mxu1 }
 0x320   : > { %v4101_v2 = vpack.c.bf16 %v4075_v13, %v4074_v34  ;;  %v5209_v28 = vadd.f32 %v5143_v27, %v5075_v53  ;;  %v3914_v7 = vpop.f32.mrb[29].mxu1 }
 0x321   : > { %v4100_v6 = vpack.c.bf16 %v4073_v51, %v4072_v24  ;;  %v5210_v14 = vadd.f32 %v3914_v7, %v2500_v48  ;;  %v5144_v49 = vpop.f32.mrb[30].mxu1 }
 0x322   : > { %v4046_v62 = vadd.f32 %v5209_v28, %v6684_v3  ;;  %v5211_v38 = vadd.f32 %v5144_v49, %v5076_v57  ;;  %v3917_v1 = vpop.f32.mrb[31].mxu1 }
 0x323   : > { %v4044_v30 = vadd.f32 %v5210_v14, %v6684_v3  ;;  %v5212_v0 = vadd.f32 %v3917_v1, %v2503_v20  ;;  %5171 = vmatprep.mubr.msk.bf16.mxu0 %vm1856_vm15, %v4100_v6 }
 0x324   : > { %v4047_v17 = vadd.f32 %v5211_v38, %v6684_v3  ;;  %5172 = vmatmul.mubr.msk.bf16.gmra.mrb[56].mxu0 %vm1856_vm15, %v4101_v2  ;;  %v4078_v11 = vmax.f32 %v4046_v62, 0.0 }
 0x325   : > { %v4045_v58 = vadd.f32 %v5212_v0, %v6684_v3  ;;  %v4076_v32 = vmax.f32 %v4044_v30, 0.0 }
 0x326   : > { %v4079_v46 = vmax.f32 %v4047_v17, 0.0 }
 0x327   : > { %v4077_v9 = vmax.f32 %v4045_v58, 0.0  ;;  %v5147_v29 = vpop.f32.mrb[0].mxu1  ;;  %v4925_v58 = vld [vmem:[%s5412_s8 + $0x8] sm:$0xff]  }
 0x328   : > { %v4103_v15 = vpack.c.bf16 %v4079_v46, %v4078_v11  ;;  %v4050_v22 = vadd.f32 %v5147_v29, %v6684_v3  ;;  %v3930_v37 = vpop.f32.mrb[1].mxu1  ;;  %v4862_v11 = vld [vmem:[%s5412_s8] sm:$0xff]  }
 0x329   : > { %v4102_v36 = vpack.c.bf16 %v4077_v9, %v4076_v32  ;;  %v4048_v44 = vadd.f32 %v6684_v3, %v3930_v37  ;;  %v5148_v31 = vpop.f32.mrb[2].mxu1  ;;  %v6739_v46 = vld [vmem:[%s6867_s6] ss:$0 sm:$0xff]  ;;  %v4867_v32 = vunpack.c.l.bf16 %v4925_v58  ;;  %v4863_v9 = vunpack.c.l.bf16 %v4862_v11 }
 0x32a   : > { %v4051_v8 = vadd.f32 %v5148_v31, %v6684_v3  ;;  %v3933_v52 = vpop.f32.mrb[3].mxu1  ;;  %v4082_v10 = vmax.f32 %v4050_v22, 0.0  ;;  %v4868_v22 = vunpack.c.h.bf16 %v4925_v58 }
 0x32b   : > { %v4049_v53 = vadd.f32 %v6684_v3, %v3933_v52  ;;  %5175 = vmatprep.mubr.msk.bf16.mxu0 %vm1856_vm15, %v4102_v36  ;;  %v4080_v41 = vmax.f32 %v4048_v44, 0.0  ;;  %v4864_v44 = vunpack.c.h.bf16 %v4862_v11 }
 0x32c   : > { %v4083_v5 = vmax.f32 %v4051_v8, 0.0  ;;  %5176 = vmatmul.mubr.msk.bf16.gmra.mrb[60].mxu0 %vm1856_vm15, %v4103_v15 }
 0x32d   : > { %v4081_v48 = vmax.f32 %v4049_v53, 0.0 }
 0x32e   : > { %v4105_v4 = vpack.c.bf16 %v4083_v5, %v4082_v10  ;;  %v4927_v5 = vld [vmem:[%s5412_s8 + $0x18] sm:$0xff]  }
 0x32f   : > { %v4104_v63 = vpack.c.bf16 %v4081_v48, %v4080_v41 }
 0x331   : > { %5179 = vmatprep.mubr.msk.bf16.mxu0 %vm1856_vm15, %v4104_v63 }
 0x334   : > { %v5151_v23 = vpop.f32.mrb[4].mxu1  ;;  %5180 = vmatmul.mubr.msk.bf16.gmra.mrb[64].mxu0 %vm1856_vm15, %v4105_v4  ;;  %v4926_v4 = vld [vmem:[%s5412_s8 + $0x10] sm:$0xff]  }
 0x335   : > { %v4054_v57 = vadd.f32 %v5151_v23, %v6684_v3  ;;  %v3946_v21 = vpop.f32.mrb[5].mxu1 }
 0x336   : > { %v4052_v26 = vadd.f32 %v6684_v3, %v3946_v21  ;;  %v5152_v20 = vpop.f32.mrb[6].mxu1 }
 0x337   : > { %v4055_v47 = vadd.f32 %v5152_v20, %v6684_v3  ;;  %v3949_v40 = vpop.f32.mrb[7].mxu1  ;;  %v4086_v12 = vmax.f32 %v4054_v57, 0.0 }
 0x338   : > { %v4053_v43 = vadd.f32 %v6684_v3, %v3949_v40  ;;  %v4084_v50 = vmax.f32 %v4052_v26, 0.0  ;;  %v4875_v26 = vunpack.c.l.bf16 %v4927_v5 }
 0x339   : > { %v4087_v25 = vmax.f32 %v4055_v47, 0.0 }
 0x33a   : > { %v4085_v61 = vmax.f32 %v4053_v43, 0.0  ;;  %v4871_v43 = vunpack.c.l.bf16 %v4926_v4 }
 0x33b   : > { %v4107_v16 = vpack.c.bf16 %v4087_v25, %v4086_v12 }
 0x33c   : > { %v4106_v59 = vpack.c.bf16 %v4085_v61, %v4084_v50  ;;  %v4876_v61 = vunpack.c.h.bf16 %v4927_v5 }
 0x33e   : > { %5183 = vmatprep.mubr.msk.bf16.mxu0 %vm1856_vm15, %v4106_v59 }
 0x33f   : > { %5184 = vmatmul.mubr.msk.bf16.gmra.mrb[68].mxu0 %vm1856_vm15, %v4107_v16 }
 0x347   : > { %v5155_v35 = vpop.f32.mrb[8].mxu1 }
 0x348   : > { %v4058_v55 = vadd.f32 %v5155_v35, %v6684_v3  ;;  %v3962_v45 = vpop.f32.mrb[9].mxu1 }
 0x349   : > { %v4056_v18 = vadd.f32 %v6684_v3, %v3962_v45  ;;  %v5156_v19 = vpop.f32.mrb[10].mxu1 }
 0x34a   : > { %v4059_v33 = vadd.f32 %v5156_v19, %v6684_v3  ;;  %v3965_v60 = vpop.f32.mrb[11].mxu1  ;;  %v4090_v42 = vmax.f32 %v4058_v55, 0.0  ;;  %v4872_v55 = vunpack.c.h.bf16 %v4926_v4 }
 0x34b   : > { %v4057_v54 = vadd.f32 %v6684_v3, %v3965_v60  ;;  %v4088_v56 = vmax.f32 %v4056_v18, 0.0 }
 0x34c   : > { %v4091_v39 = vmax.f32 %v4059_v33, 0.0 }
 0x34d   : > { %v4089_v34 = vmax.f32 %v4057_v54, 0.0  ;;  %v4929_v54 = vld [vmem:[%s5412_s8 + $0x28] sm:$0xff]  }
 0x34e   : > { %v4109_v13 = vpack.c.bf16 %v4091_v39, %v4090_v42 }
 0x34f   : > { %v4108_v24 = vpack.c.bf16 %v4089_v34, %v4088_v56  ;;  %v4928_v56 = vld [vmem:[%s5412_s8 + $0x20] sm:$0xff]  }
 0x351   : > { %5187 = vmatprep.mubr.msk.bf16.mxu0 %vm1856_vm15, %v4108_v24 }
 0x352   : > { %5188 = vmatmul.mubr.msk.bf16.gmra.mrb[72].mxu0 %vm1856_vm15, %v4109_v13 }
 0x359   : > { %v5159_v51 = vpop.f32.mrb[12].mxu1 }
 0x35a   : > { %v4062_v27 = vadd.f32 %v5159_v51, %v6684_v3  ;;  %v3978_v2 = vpop.f32.mrb[13].mxu1 }
 0x35b   : > { %v4060_v28 = vadd.f32 %v6684_v3, %v3978_v2  ;;  %v5160_v7 = vpop.f32.mrb[14].mxu1 }
 0x35c   : > { %v4063_v6 = vadd.f32 %v5160_v7, %v6684_v3  ;;  %v3981_v14 = vpop.f32.mrb[15].mxu1  ;;  %v4094_v62 = vmax.f32 %v4062_v27, 0.0  ;;  %v4883_v27 = vunpack.c.l.bf16 %v4929_v54 }
 0x35d   : > { %v4061_v49 = vadd.f32 %v6684_v3, %v3981_v14  ;;  %v4092_v1 = vmax.f32 %v4060_v28, 0.0 }
 0x35e   : > { %v4095_v38 = vmax.f32 %v4063_v6, 0.0  ;;  %v4879_v6 = vunpack.c.l.bf16 %v4928_v56 }
 0x35f   : > { %v4093_v30 = vmax.f32 %v4061_v49, 0.0 }
 0x360   : > { %v4111_v0 = vpack.c.bf16 %v4095_v38, %v4094_v62  ;;  %v4884_v38 = vunpack.c.h.bf16 %v4929_v54 }
 0x361   : > { %v4110_v17 = vpack.c.bf16 %v4093_v30, %v4092_v1 }
 0x363   : > { %5191 = vmatprep.mubr.msk.bf16.mxu0 %vm1856_vm15, %v4110_v17  ;;  %v4880_v17 = vunpack.c.h.bf16 %v4928_v56 }
 0x364   : > { %5192 = vmatmul.mubr.msk.bf16.gmra.mrb[76].mxu0 %vm1856_vm15, %v4111_v0 }
 0x3e7   : > { %v5165_v3 = vpop.f32.mrb[48].mxu0 }
 0x3e8   : > { %v4215_v29 = vadd.f32 %v5165_v3, %v6739_v46  ;;  %v4206_v15 = vpop.f32.mrb[49].mxu0 }
 0x3e9   : > { %v4207_v37 = vadd.f32 %v6739_v46, %v4206_v15  ;;  %v5166_v36 = vpop.f32.mrb[50].mxu0 }
 0x3ea   : > { %v4399_v31 = vadd.f32 %v4867_v32, %v4215_v29  ;;  %v4218_v8 = vadd.f32 %v5166_v36, %v6739_v46  ;;  %v4209_v52 = vpop.f32.mrb[51].mxu0  ;;  %v4931_v29 = vld [vmem:[%s5412_s8 + $0x38] sm:$0xff]  }
 0x3eb   : > { %v4397_v53 = vadd.f32 %v4863_v9, %v4207_v37  ;;  %v4210_v10 = vadd.f32 %v6739_v46, %v4209_v52  ;;  %v4930_v37 = vld [vmem:[%s5412_s8 + $0x30] sm:$0xff]   ;;  %v4891_v52 = vunpack.c.l.bf16 %v4931_v29 }
 0x3ec   : > { %v4431_v41 = vmax.f32 %v4399_v31, 0.0  ;;  %v4400_v48 = vadd.f32 %v4868_v22, %v4218_v8 }
 0x3ed   : > { %v4429_v63 = vmax.f32 %v4397_v53, 0.0  ;;  %v4398_v23 = vadd.f32 %v4864_v44, %v4210_v10 }
 0x3ee   : > { %v4831_v57 = vpack.c.bf16 %v4431_v41, %v4431_v41  ;;  %v4432_v21 = vmax.f32 %v4400_v48, 0.0  ;;  %v4887_v41 = vunpack.c.l.bf16 %v4930_v37 }
 0x3ef   : > { %v4829_v20 = vpack.c.bf16 %v4429_v63, %v4429_v63  ;;  %v4430_v47 = vmax.f32 %v4398_v23, 0.0  ;;  %v5169_v40 = vpop.f32.mrb[52].mxu0  ;;  %v4892_v23 = vunpack.c.h.bf16 %v4931_v29 }
 0x3f0   : > { %4592 = vst.msk [vmem:[%s6752_s30 + $0x8] sm:$0xf] %vm4589_vm4, %v4831_v57  ;;  %v4832_v12 = vpack.c.bf16 %v4432_v21, %v4432_v21  ;;  %v4231_v25 = vadd.f32 %v5169_v40, %v6739_v46  ;;  %v4222_v50 = vpop.f32.mrb[53].mxu0 }
 0x3f1   : > { %4590 = vst.msk [vmem:[%s6752_s30] sm:$0xf] %vm4589_vm4, %v4829_v20  ;;  %v4830_v16 = vpack.c.bf16 %v4430_v47, %v4430_v47  ;;  %v4223_v59 = vadd.f32 %v6739_v46, %v4222_v50  ;;  %v5170_v35 = vpop.f32.mrb[54].mxu0  ;;  %v4888_v20 = vunpack.c.h.bf16 %v4930_v37  ;;  %v4933_v50 = vld [vmem:[%s5412_s8 + $0x48] sm:$0xff]  }
 0x3f2   : > { %4593 = vst.msk [vmem:[%s6752_s30 + $0xc] sm:$0xf] %vm4589_vm4, %v4832_v12  ;;  %v4403_v45 = vadd.f32 %v4875_v26, %v4231_v25  ;;  %v4234_v18 = vadd.f32 %v5170_v35, %v6739_v46  ;;  %v4225_v19 = vpop.f32.mrb[55].mxu0 }
 0x3f3   : > { %4591 = vst.msk [vmem:[%s6752_s30 + $0x4] sm:$0xf] %vm4589_vm4, %v4830_v16  ;;  %v4401_v33 = vadd.f32 %v4871_v43, %v4223_v59  ;;  %v4226_v60 = vadd.f32 %v6739_v46, %v4225_v19  ;;  %v4932_v59 = vld [vmem:[%s5412_s8 + $0x40] sm:$0xff]   ;;  %v4899_v19 = vunpack.c.l.bf16 %v4933_v50 }
 0x3f4   : > { %v4435_v42 = vmax.f32 %v4403_v45, 0.0  ;;  %v4404_v39 = vadd.f32 %v4876_v61, %v4234_v18 }
 0x3f5   : > { %v4433_v34 = vmax.f32 %v4401_v33, 0.0  ;;  %v4402_v13 = vadd.f32 %v4872_v55, %v4226_v60 }
 0x3f6   : > { %v4835_v24 = vpack.c.bf16 %v4435_v42, %v4435_v42  ;;  %v4436_v51 = vmax.f32 %v4404_v39, 0.0  ;;  %v4895_v42 = vunpack.c.l.bf16 %v4932_v59 }
 0x3f7   : > { %v4833_v2 = vpack.c.bf16 %v4433_v34, %v4433_v34  ;;  %v4434_v28 = vmax.f32 %v4402_v13, 0.0  ;;  %v5173_v7 = vpop.f32.mrb[56].mxu0  ;;  %v4900_v13 = vunpack.c.h.bf16 %v4933_v50  ;;  %v4936_v50 = vld [vmem:[%s5412_s8 + $0x60] sm:$0xff]  }
 0x3f8   : > { %4596 = vst.msk [vmem:[%s6752_s30 + $0x18] sm:$0xf] %vm4589_vm4, %v4835_v24  ;;  %v4836_v14 = vpack.c.bf16 %v4436_v51, %v4436_v51  ;;  %v4247_v49 = vadd.f32 %v5173_v7, %v6739_v46  ;;  %v4238_v62 = vpop.f32.mrb[57].mxu0 }
 0x3f9   : > { %4594 = vst.msk [vmem:[%s6752_s30 + $0x10] sm:$0xf] %vm4589_vm4, %v4833_v2  ;;  %v4834_v1 = vpack.c.bf16 %v4434_v28, %v4434_v28  ;;  %v4239_v30 = vadd.f32 %v6739_v46, %v4238_v62  ;;  %v5174_v0 = vpop.f32.mrb[58].mxu0  ;;  %v4896_v2 = vunpack.c.h.bf16 %v4932_v59  ;;  %v4911_v59 = vunpack.c.l.bf16 %v4936_v50 }
 0x3fa   : > { %4597 = vst.msk [vmem:[%s6752_s30 + $0x1c] sm:$0xf] %vm4589_vm4, %v4836_v14  ;;  %v4407_v58 = vadd.f32 %v4883_v27, %v4247_v49  ;;  %v4250_v11 = vadd.f32 %v5174_v0, %v6739_v46  ;;  %v4241_v32 = vpop.f32.mrb[59].mxu0  ;;  %v4935_v0 = vld [vmem:[%s5412_s8 + $0x58] sm:$0xff]  }
 0x3fb   : > { %4595 = vst.msk [vmem:[%s6752_s30 + $0x14] sm:$0xf] %vm4589_vm4, %v4834_v1  ;;  %v4405_v3 = vadd.f32 %v4879_v6, %v4239_v30  ;;  %v4242_v9 = vadd.f32 %v6739_v46, %v4241_v32  ;;  %v4907_v29 = vunpack.c.l.bf16 %v4935_v0 }
 0x3fc   : > { %v4439_v15 = vmax.f32 %v4407_v58, 0.0  ;;  %v4408_v22 = vadd.f32 %v4884_v38, %v4250_v11  ;;  %v4934_v11 = vld [vmem:[%s5412_s8 + $0x50] sm:$0xff]  }
 0x3fd   : > { %v4437_v36 = vmax.f32 %v4405_v3, 0.0  ;;  %v4406_v44 = vadd.f32 %v4880_v17, %v4242_v9  ;;  %v4903_v37 = vunpack.c.l.bf16 %v4934_v11 }
 0x3fe   : > { %v4839_v31 = vpack.c.bf16 %v4439_v15, %v4439_v15  ;;  %v4440_v8 = vmax.f32 %v4408_v22, 0.0 }
 0x3ff   : > { %v4837_v53 = vpack.c.bf16 %v4437_v36, %v4437_v36  ;;  %v4438_v10 = vmax.f32 %v4406_v44, 0.0  ;;  %v5177_v5 = vpop.f32.mrb[60].mxu0 }
 0x400   : > { %4600 = vst.msk [vmem:[%s6752_s30 + $0x28] sm:$0xf] %vm4589_vm4, %v4839_v31  ;;  %v4840_v48 = vpack.c.bf16 %v4440_v8, %v4440_v8  ;;  %v4263_v4 = vadd.f32 %v5177_v5, %v6739_v46  ;;  %v4254_v63 = vpop.f32.mrb[61].mxu0  ;;  %v4908_v31 = vunpack.c.h.bf16 %v4935_v0 }
 0x401   : > { %4598 = vst.msk [vmem:[%s6752_s30 + $0x20] sm:$0xf] %vm4589_vm4, %v4837_v53  ;;  %v4838_v57 = vpack.c.bf16 %v4438_v10, %v4438_v10  ;;  %v4255_v21 = vadd.f32 %v6739_v46, %v4254_v63  ;;  %v5178_v26 = vpop.f32.mrb[62].mxu0  ;;  %v4904_v53 = vunpack.c.h.bf16 %v4934_v11 }
 0x402   : > { %4601 = vst.msk [vmem:[%s6752_s30 + $0x2c] sm:$0xf] %vm4589_vm4, %v4840_v48  ;;  %v4411_v47 = vadd.f32 %v4891_v52, %v4263_v4  ;;  %v4266_v40 = vadd.f32 %v5178_v26, %v6739_v46  ;;  %v4257_v43 = vpop.f32.mrb[63].mxu0 }
 0x403   : > { %4599 = vst.msk [vmem:[%s6752_s30 + $0x24] sm:$0xf] %vm4589_vm4, %v4838_v57  ;;  %v4409_v12 = vadd.f32 %v4887_v41, %v4255_v21  ;;  %v4258_v25 = vadd.f32 %v6739_v46, %v4257_v43 }
 0x404   : > { %v4443_v61 = vmax.f32 %v4411_v47, 0.0  ;;  %v4412_v16 = vadd.f32 %v4892_v23, %v4266_v40 }
 0x405   : > { %v4441_v35 = vmax.f32 %v4409_v12, 0.0  ;;  %v4410_v55 = vadd.f32 %v4888_v20, %v4258_v25  ;;  %v4937_v25 = vld [vmem:[%s5412_s8 + $0x68] sm:$0xff]  }
 0x406   : > { %v4843_v45 = vpack.c.bf16 %v4443_v61, %v4443_v61  ;;  %v4444_v18 = vmax.f32 %v4412_v16, 0.0  ;;  %v4915_v61 = vunpack.c.l.bf16 %v4937_v25 }
 0x407   : > { %v4841_v33 = vpack.c.bf16 %v4441_v35, %v4441_v35  ;;  %v4442_v60 = vmax.f32 %v4410_v55, 0.0  ;;  %v5181_v54 = vpop.f32.mrb[64].mxu0 }
 0x408   : > { %4604 = vst.msk [vmem:[%s6752_s30 + $0x38] sm:$0xf] %vm4589_vm4, %v4843_v45  ;;  %v4844_v39 = vpack.c.bf16 %v4444_v18, %v4444_v18  ;;  %v4279_v56 = vadd.f32 %v5181_v54, %v6739_v46  ;;  %v4270_v34 = vpop.f32.mrb[65].mxu0  ;;  %v4916_v45 = vunpack.c.h.bf16 %v4937_v25 }
 0x409   : > { %4602 = vst.msk [vmem:[%s6752_s30 + $0x30] sm:$0xf] %vm4589_vm4, %v4841_v33  ;;  %v4842_v24 = vpack.c.bf16 %v4442_v60, %v4442_v60  ;;  %v4271_v51 = vadd.f32 %v6739_v46, %v4270_v34  ;;  %v5182_v27 = vpop.f32.mrb[66].mxu0  ;;  %v4912_v33 = vunpack.c.h.bf16 %v4936_v50 }
 0x40a   : > { %4605 = vst.msk [vmem:[%s6752_s30 + $0x3c] sm:$0xf] %vm4589_vm4, %v4844_v39  ;;  %v4415_v28 = vadd.f32 %v4899_v19, %v4279_v56  ;;  %v4282_v7 = vadd.f32 %v5182_v27, %v6739_v46  ;;  %v4273_v6 = vpop.f32.mrb[67].mxu0 }
 0x40b   : > { %4603 = vst.msk [vmem:[%s6752_s30 + $0x34] sm:$0xf] %vm4589_vm4, %v4842_v24  ;;  %v4413_v14 = vadd.f32 %v4895_v42, %v4271_v51  ;;  %v4274_v49 = vadd.f32 %v6739_v46, %v4273_v6 }
 0x40c   : > { %v4447_v62 = vmax.f32 %v4415_v28, 0.0  ;;  %v4416_v38 = vadd.f32 %v4900_v13, %v4282_v7 }
 0x40d   : > { %v4445_v1 = vmax.f32 %v4413_v14, 0.0  ;;  %v4414_v30 = vadd.f32 %v4896_v2, %v4274_v49  ;;  %v4939_v49 = vld [vmem:[%s5412_s8 + $0x78] sm:$0xff]  }
 0x40e   : > { %v4847_v17 = vpack.c.bf16 %v4447_v62, %v4447_v62  ;;  %v4448_v58 = vmax.f32 %v4416_v38, 0.0  ;;  %v4938_v62 = vld [vmem:[%s5412_s8 + $0x70] sm:$0xff]   ;;  %v4923_v38 = vunpack.c.l.bf16 %v4939_v49 }
 0x40f   : > { %v4845_v32 = vpack.c.bf16 %v4445_v1, %v4445_v1  ;;  %v4446_v3 = vmax.f32 %v4414_v30, 0.0  ;;  %v4919_v30 = vunpack.c.l.bf16 %v4938_v62 }
 0x410   : > { %4608 = vst.msk [vmem:[%s6752_s30 + $0x48] sm:$0xf] %vm4589_vm4, %v4847_v17  ;;  %v4848_v9 = vpack.c.bf16 %v4448_v58, %v4448_v58  ;;  %v4924_v58 = vunpack.c.h.bf16 %v4939_v49 }
 0x411   : > { %4606 = vst.msk [vmem:[%s6752_s30 + $0x40] sm:$0xf] %vm4589_vm4, %v4845_v32  ;;  %v4846_v15 = vpack.c.bf16 %v4446_v3, %v4446_v3  ;;  %v4920_v3 = vunpack.c.h.bf16 %v4938_v62 }
 0x412   : > { %v5185_v22 = vpop.f32.mrb[68].mxu0  ;;  %4609 = vst.msk [vmem:[%s6752_s30 + $0x4c] sm:$0xf] %vm4589_vm4, %v4848_v9 }
 0x413   : > { %v4295_v36 = vadd.f32 %v5185_v22, %v6739_v46  ;;  %v4286_v44 = vpop.f32.mrb[69].mxu0  ;;  %4607 = vst.msk [vmem:[%s6752_s30 + $0x44] sm:$0xf] %vm4589_vm4, %v4846_v15 }
 0x414   : > { %v4287_v8 = vadd.f32 %v6739_v46, %v4286_v44  ;;  %v5186_v52 = vpop.f32.mrb[70].mxu0 }
 0x415   : > { %v4419_v10 = vadd.f32 %v4907_v29, %v4295_v36  ;;  %v4298_v5 = vadd.f32 %v5186_v52, %v6739_v46  ;;  %v4289_v41 = vpop.f32.mrb[71].mxu0 }
 0x416   : > { %v4417_v48 = vadd.f32 %v4903_v37, %v4287_v8  ;;  %v4290_v4 = vadd.f32 %v6739_v46, %v4289_v41 }
 0x417   : > { %v4451_v63 = vmax.f32 %v4419_v10, 0.0  ;;  %v4420_v23 = vadd.f32 %v4908_v31, %v4298_v5 }
 0x418   : > { %v4449_v57 = vmax.f32 %v4417_v48, 0.0  ;;  %v4418_v21 = vadd.f32 %v4904_v53, %v4290_v4 }
 0x419   : > { %v4851_v26 = vpack.c.bf16 %v4451_v63, %v4451_v63  ;;  %v4452_v20 = vmax.f32 %v4420_v23, 0.0 }
 0x41a   : > { %v4849_v47 = vpack.c.bf16 %v4449_v57, %v4449_v57  ;;  %v4450_v40 = vmax.f32 %v4418_v21, 0.0 }
 0x41b   : > { %4612 = vst.msk [vmem:[%s6752_s30 + $0x58] sm:$0xf] %vm4589_vm4, %v4851_v26  ;;  %v4852_v43 = vpack.c.bf16 %v4452_v20, %v4452_v20 }
 0x41c   : > { %4610 = vst.msk [vmem:[%s6752_s30 + $0x50] sm:$0xf] %vm4589_vm4, %v4849_v47  ;;  %v4850_v12 = vpack.c.bf16 %v4450_v40, %v4450_v40 }
 0x41d   : > { %4613 = vst.msk [vmem:[%s6752_s30 + $0x5c] sm:$0xf] %vm4589_vm4, %v4852_v43 }
 0x41e   : > { %4611 = vst.msk [vmem:[%s6752_s30 + $0x54] sm:$0xf] %vm4589_vm4, %v4850_v12 }
 0x425   : > { %v5189_v16 = vpop.f32.mrb[72].mxu0 }
 0x426   : > { %v4311_v35 = vadd.f32 %v5189_v16, %v6739_v46  ;;  %v4302_v55 = vpop.f32.mrb[73].mxu0 }
 0x427   : > { %v4303_v18 = vadd.f32 %v6739_v46, %v4302_v55  ;;  %v5190_v19 = vpop.f32.mrb[74].mxu0 }
 0x428   : > { %v4423_v60 = vadd.f32 %v4915_v61, %v4311_v35  ;;  %v4314_v54 = vadd.f32 %v5190_v19, %v6739_v46  ;;  %v4305_v42 = vpop.f32.mrb[75].mxu0 }
 0x429   : > { %v4421_v39 = vadd.f32 %v4911_v59, %v4303_v18  ;;  %v4306_v56 = vadd.f32 %v6739_v46, %v4305_v42 }
 0x42a   : > { %v4455_v34 = vmax.f32 %v4423_v60, 0.0  ;;  %v4424_v13 = vadd.f32 %v4916_v45, %v4314_v54 }
 0x42b   : > { %v4453_v24 = vmax.f32 %v4421_v39, 0.0  ;;  %v4422_v51 = vadd.f32 %v4912_v33, %v4306_v56 }
 0x42c   : > { %v4855_v27 = vpack.c.bf16 %v4455_v34, %v4455_v34  ;;  %v4456_v2 = vmax.f32 %v4424_v13, 0.0 }
 0x42d   : > { %v4853_v28 = vpack.c.bf16 %v4453_v24, %v4453_v24  ;;  %v4454_v7 = vmax.f32 %v4422_v51, 0.0 }
 0x42e   : > { %4616 = vst.msk [vmem:[%s6752_s30 + $0x68] sm:$0xf] %vm4589_vm4, %v4855_v27  ;;  %v4856_v6 = vpack.c.bf16 %v4456_v2, %v4456_v2 }
 0x42f   : > { %4614 = vst.msk [vmem:[%s6752_s30 + $0x60] sm:$0xf] %vm4589_vm4, %v4853_v28  ;;  %v4854_v14 = vpack.c.bf16 %v4454_v7, %v4454_v7 }
 0x430   : > { %4617 = vst.msk [vmem:[%s6752_s30 + $0x6c] sm:$0xf] %vm4589_vm4, %v4856_v6 }
 0x431   : > { %4615 = vst.msk [vmem:[%s6752_s30 + $0x64] sm:$0xf] %vm4589_vm4, %v4854_v14 }
 0x437   : > { %v5193_v1 = vpop.f32.mrb[76].mxu0 }
 0x438   : > { %v4327_v0 = vadd.f32 %v5193_v1, %v6739_v46  ;;  %v4318_v17 = vpop.f32.mrb[77].mxu0 }
 0x439   : > { %v4319_v11 = vadd.f32 %v6739_v46, %v4318_v17  ;;  %v5194_v32 = vpop.f32.mrb[78].mxu0 }
 0x43a   : > { %v4427_v9 = vadd.f32 %v4923_v38, %v4327_v0  ;;  %v4330_v29 = vadd.f32 %v5194_v32, %v6739_v46  ;;  %v4321_v15 = vpop.f32.mrb[79].mxu0 }
 0x43b   : > { %v4425_v22 = vadd.f32 %v4919_v30, %v4319_v11  ;;  %v4322_v37 = vadd.f32 %v6739_v46, %v4321_v15 }
 0x43c   : > { %v4459_v36 = vmax.f32 %v4427_v9, 0.0  ;;  %v4428_v44 = vadd.f32 %v4924_v58, %v4330_v29 }
 0x43d   : > { %v4457_v31 = vmax.f32 %v4425_v22, 0.0  ;;  %v4426_v8 = vadd.f32 %v4920_v3, %v4322_v37 }
 0x43e   : > { %v4859_v52 = vpack.c.bf16 %v4459_v36, %v4459_v36  ;;  %v4460_v53 = vmax.f32 %v4428_v44, 0.0 }
 0x43f   : > { %v4857_v10 = vpack.c.bf16 %v4457_v31, %v4457_v31  ;;  %v4458_v5 = vmax.f32 %v4426_v8, 0.0 }
 0x440   : > { %4620 = vst.msk [vmem:[%s6752_s30 + $0x78] sm:$0xf] %vm4589_vm4, %v4859_v52  ;;  %v4860_v41 = vpack.c.bf16 %v4460_v53, %v4460_v53 }
 0x441   : > { %4618 = vst.msk [vmem:[%s6752_s30 + $0x70] sm:$0xf] %vm4589_vm4, %v4857_v10  ;;  %v4858_v48 = vpack.c.bf16 %v4458_v5, %v4458_v5 }
 0x442   : > { %4621 = vst.msk [vmem:[%s6752_s30 + $0x7c] sm:$0xf] %vm4589_vm4, %v4860_v41 }
 0x443   : > { %4619 = vst.msk [vmem:[%s6752_s30 + $0x74] sm:$0xf] %vm4589_vm4, %v4858_v48 }
 0x444 PF: > { %s17_s24 = sadd.s32 1, %s5349_s24  }
 0x445   : > { %p14_p4 = scmp.ge.s32.totalorder %s17_s24, 4  }
 0x447   :  { %16 = sbr.rel (!%p14_p4) target bundleno = 1 (0x1), region = 83 }

</bundles_post_ra>
